<compile_context>
chip_gen: v6e
topology: v6e:2x2x1
jax: 0.10.0
libtpu: 0.0.40
codegen_flags: <defaults>
</compile_context>

<pallas_src>
import math

import jax
import jax.numpy as jnp
from jax.experimental import pallas as pl
from jax.experimental.pallas import tpu as pltpu

HIDDEN = 32          # __C.HIDDEN_SIZE
HEADS = 4            # __C.MULTI_HEAD
DK = HIDDEN // HEADS
NEG_INF = -1000000000.0


def c_mhatt_kernel(q_ref, k_ref, v_ref, s_ref, mbias_ref,
                   wq_ref, bq_ref, wk_ref, bk_ref, wvm_ref,
                   wcx_ref, bcx_ref, wcp_ref, bcp_ref, bout_ref,
                   o_ref):
    f32, bf16 = jnp.float32, jnp.bfloat16
    BB, S, H = q_ref.shape
    HC = wvm_ref.shape[1]                 # HEADS * H
    heads = HC // H
    dk = H // heads

    q2 = q_ref[...].reshape(BB * S, H).astype(bf16)
    k2 = k_ref[...].reshape(BB * S, H).astype(bf16)
    v2 = v_ref[...].reshape(BB * S, H).astype(bf16)
    s2 = s_ref[...].reshape(BB * S, H).astype(bf16)

    # ---------------- projections (bf16 operands, f32 accumulation) ----------
    # Q weight/bias already carry the 1/sqrt(dk) scale (folded offline).
    qp = (jnp.dot(q2, wq_ref[...], preferred_element_type=f32)
          + bq_ref[...]).astype(bf16).reshape(BB, S, H)
    kp = (jnp.dot(k2, wk_ref[...], preferred_element_type=f32)
          + bk_ref[...]).astype(bf16).reshape(BB, S, H)
    # Value projection with linear_merge folded in per head: lanes
    # [h*H:(h+1)*H] hold v @ (wv_h @ wm_h).  Bias is applied once at the end.
    vm = jnp.dot(v2, wvm_ref[...],
                 preferred_element_type=f32).astype(bf16).reshape(BB, S, HC)

    # ---------------- context gate path --------------------------------------
    # lin_c with (lin_ac -> linear_cc) folded in as an extra output column;
    # AdaptiveAvgPool2d((1, None)) on (B, S, H) == mean over S.
    cx = (jnp.dot(s2, wcx_ref[...], preferred_element_type=f32)
          + bcx_ref[...]).reshape(BB, S, H + 1)
    cc = jnp.mean(cx[:, :, H:], axis=1, keepdims=True)            # (BB, 1, 1)
    context_p = jax.nn.sigmoid(cx[:, :, :H] + cc)                 # (BB, S, H)
    cpp = jnp.dot(context_p.reshape(BB * S, H).astype(bf16), wcp_ref[...],
                  preferred_element_type=f32) + bcp_ref[...]      # (BB*S, 1)
    gate = jax.nn.sigmoid(cpp).reshape(BB, S, 1)                  # context_gp

    # ---------------- multi-head attention (heads folded onto axis 0) --------
    qh = jnp.concatenate(
        [qp[:, :, h * dk:(h + 1) * dk] for h in range(heads)], axis=0)
    kh = jnp.concatenate(
        [kp[:, :, h * dk:(h + 1) * dk] for h in range(heads)], axis=0)
    vh = jnp.concatenate(
        [vm[:, :, h * H:(h + 1) * H] for h in range(heads)], axis=0)
    # qh/kh: (heads*BB, S, dk);  vh: (heads*BB, S, H)

    sc = jnp.einsum('nqd,nkd->nqk', qh, kh,
                    preferred_element_type=f32)                   # (heads*BB, S, S)
    # Single additive mask application across all heads (broadcast, no tiling).
    mb = mbias_ref[...].reshape(1, BB, 1, S)
    sc = (sc.reshape(heads, BB, S, S) + mb).reshape(heads * BB, S, S)
    sc = sc - jnp.max(sc, axis=-1, keepdims=True)
    e = jnp.exp(sc)
    att = e * pl.reciprocal(jnp.sum(e, axis=-1, keepdims=True), approx=True)
    # TODO(synk): F.dropout on the attention map is skipped (eval-mode identity).
    oh = jnp.einsum('nqk,nkd->nqd', att.astype(bf16), vh,
                    preferred_element_type=f32)                   # (heads*BB, S, H)

    # Sum over heads (cheap static leading-axis slices) + folded output bias.
    acc = oh[0:BB]
    for h in range(1, heads):
        acc = acc + oh[h * BB:(h + 1) * BB]
    atted = acc + bout_ref[...]                                   # (BB, S, H)

    out = atted * (1.0 + gate)
    # Lane-dense store: flatten (S, H) -> S*H (multiple of 128) lanes.
    o_ref[...] = out.reshape(BB, S * H).astype(o_ref.dtype)


def _round_up(x, m):
    return ((x + m - 1) // m) * m


def c_mhatt(v, k, q, mask, s, p, *, block_b=None):
    """C_MHAtt forward.  v/k/q/s: (B, S, H) float; mask: (B, S) with
    True/1 == masked key position.  Returns (B, S, H) float32.

    block_b: batch elements per grid step (rounded up to a multiple of 8).
    Default picks min(128, ceil(B/2)) -- >= 2 grid steps when possible so both
    v7x TensorCores get work, and the narrow-lane attention intermediates stay
    well under v7x's 64 MiB VMEM.  On v5e/v6e (128 MiB VMEM) it can be swept
    up to ~256-512; raise vmem_limit_bytes accordingly.
    """
    B, S, H = q.shape
    assert H == HIDDEN and H % HEADS == 0
    dk = H // HEADS
    f32, bf16 = jnp.float32, jnp.bfloat16

    # ---------------- offline weight prep (tiny, once per call) --------------
    scale = 1.0 / math.sqrt(dk)
    w_q = (p["wq"] * scale).astype(bf16)
    b_q = (p["bq"] * scale).astype(f32)
    w_k = p["wk"].astype(bf16)
    b_k = p["bk"].astype(f32)
    # linear_merge folded into the value projection, per head.
    w_vm = jnp.concatenate(
        [p["wv"][:, h * dk:(h + 1) * dk] @ p["wm"][h * dk:(h + 1) * dk, :]
         for h in range(HEADS)], axis=1).astype(bf16)              # (H, HEADS*H)
    # linear_v bias propagated through linear_merge + linear_merge bias,
    # applied once after the head sum (softmax rows sum to 1).
    b_out = (p["bv"] @ p["wm"] + p["bm"]).astype(f32)              # (1, H)
    # lin_ac -> linear_cc folded into an extra output column of lin_c.
    w_sc = p["wac"] @ p["wcc"]                                     # (H, 1)
    b_sc = p["bac"] @ p["wcc"] + p["bcc"]                          # (1, 1)
    w_cx = jnp.concatenate([p["wc"], w_sc], axis=1).astype(bf16)   # (H, H+1)
    b_cx = jnp.concatenate([p["bc"], b_sc], axis=1).astype(f32)    # (1, H+1)
    w_cp = p["wcp"].astype(bf16)
    b_cp = p["bcp"].astype(f32)

    # Additive mask bias (0 keep / -1e9 masked), lane-dense (B, S).
    mask_bias = mask.astype(f32) * NEG_INF                         # (B, S)

    # ---------------- batch tiling --------------------------------------------
    if block_b is None:
        block_b = min(128, max(8, (B + 1) // 2))
    BB = _round_up(min(block_b, max(B, 1)), 8)   # sublane dim of output block
    nblk = pl.cdiv(B, BB)
    Bp = nblk * BB

    def pad_b(x):
        if Bp == B:
            return x
        pad = [(0, Bp - B)] + [(0, 0)] * (x.ndim - 1)
        return jnp.pad(x, pad)

    q_p, k_p, v_p, s_p, mb_p = map(pad_b, (q, k, v, s, mask_bias))

    weights = [w_q, b_q, w_k, b_k, w_vm, w_cx, b_cx, w_cp, b_cp, b_out]

    def const_spec(arr):
        zeros = (0,) * arr.ndim
        return pl.BlockSpec(arr.shape, lambda b, z=zeros: z)

    grid_spec = pltpu.PrefetchScalarGridSpec(
        num_scalar_prefetch=0,
        grid=(nblk,),
        in_specs=[pl.BlockSpec((BB, S, H), lambda b: (b, 0, 0)),   # q
                  pl.BlockSpec((BB, S, H), lambda b: (b, 0, 0)),   # k
                  pl.BlockSpec((BB, S, H), lambda b: (b, 0, 0)),   # v
                  pl.BlockSpec((BB, S, H), lambda b: (b, 0, 0)),   # s
                  pl.BlockSpec((BB, S), lambda b: (b, 0))]         # mask bias
                 + [const_spec(w) for w in weights],
        out_specs=pl.BlockSpec((BB, S * H), lambda b: (b, 0)),     # lane-dense
    )

    out = pl.pallas_call(
        c_mhatt_kernel,
        out_shape=jax.ShapeDtypeStruct((Bp, S * H), jnp.float32),
        grid_spec=grid_spec,
        compiler_params=pltpu.CompilerParams(
            dimension_semantics=("parallel",),
            # v5e default scoped VMEM is 16 MiB; raise it, but stay well under
            # v7x's 64 MiB physical VMEM per TensorCore.
            vmem_limit_bytes=48 * 1024 * 1024),
    )(q_p, k_p, v_p, s_p, mb_p, *weights)
    return out[:B].reshape(B, S, H)


def ref_forward(v, k, q, mask, s, p):
    """Pure-JAX reference mirroring the PyTorch module (eval mode)."""
    lin = lambda x, w, b: x @ w + b
    g_k = lin(jnp.mean(s, axis=1, keepdims=True), p["wac"], p["bac"])
    merge_p = lin(s, p["wc"], p["bc"]) + lin(g_k, p["wcc"], p["bcc"])
    context_gp = jax.nn.sigmoid(lin(jax.nn.sigmoid(merge_p), p["wcp"], p["bcp"]))
    B, S, H = q.shape

    def split_heads(x, w, b):
        return lin(x, w, b).reshape(B, S, HEADS, DK).transpose(0, 2, 1, 3)

    qh = split_heads(q, p["wq"], p["bq"])
    kh = split_heads(k, p["wk"], p["bk"])
    vh = split_heads(v, p["wv"], p["bv"])
    scores = jnp.einsum("bhqd,bhkd->bhqk", qh, kh) / math.sqrt(DK)
    scores = jnp.where(mask[:, None, None, :], NEG_INF, scores)
    att = jax.nn.softmax(scores, axis=-1)
    atted = jnp.einsum("bhqk,bhkd->bhqd", att, vh).transpose(0, 2, 1, 3).reshape(B, S, H)
    atted = lin(atted, p["wm"], p["bm"])
    return context_gp * atted + atted


def init_params(key):
    names_hh = ["wq", "wk", "wv", "wm", "wc", "wac"]
    p = {}
    keys = jax.random.split(key, len(names_hh) + 2)
    for n, kk in zip(names_hh, keys[:len(names_hh)]):
        p[n] = jax.random.normal(kk, (HIDDEN, HIDDEN), jnp.float32) * 0.1
        p["b" + n[1:]] = jnp.full((1, HIDDEN), 0.01, jnp.float32)
    p["wcc"] = jax.random.normal(keys[-2], (HIDDEN, 1), jnp.float32) * 0.1
    p["bcc"] = jnp.full((1, 1), 0.01, jnp.float32)
    p["wcp"] = jax.random.normal(keys[-1], (HIDDEN, 1), jnp.float32) * 0.1
    p["bcp"] = jnp.full((1, 1), 0.01, jnp.float32)
    # note: lin_merge exists in __init__ but is unused in forward -> omitted.
    return p


if __name__ == "__main__":
    B, S = 10, 8
    key = jax.random.PRNGKey(0)
    kv_, kk_, kq_, ks_, km_, kp_ = jax.random.split(key, 6)

    v = jax.random.normal(kv_, (B, S, HIDDEN), jnp.float32)
    k = jax.random.normal(kk_, (B, S, HIDDEN), jnp.float32)
    q = jax.random.normal(kq_, (B, S, HIDDEN), jnp.float32)
    s = jax.random.normal(ks_, (B, S, HIDDEN), jnp.float32)
    mask = jax.random.uniform(km_, (B, S)) > 0.8   # True == masked (padding)
    mask = mask.at[:, 0].set(False)                # keep >=1 unmasked key per row

    params = init_params(kp_)

    # block_b=8 -> padded batch 16, 2 grid steps (exercises padding + nblk>=2).
    out = c_mhatt(v, k, q, mask, s, params, block_b=8)
    out = jax.block_until_ready(out)

    ref = ref_forward(v, k, q, mask, s, params)
    assert out.shape == ref.shape
    # bf16 matmul operands + approx reciprocal -> ~1e-3-level error; 2e-2 is safe.
    assert jnp.allclose(out, ref, atol=2e-2, rtol=2e-2), "mismatch vs reference"

    print("KERNEL_OK")
</pallas_src>

<mosaic_0001>
module attributes {stable_mosaic.version = 11 : i64} {
  func.func @c_mhatt_kernel(%arg0: i32, %arg1: memref<8x8x32xf32, #tpu.memory_space<vmem>>, %arg2: memref<8x8x32xf32, #tpu.memory_space<vmem>>, %arg3: memref<8x8x32xf32, #tpu.memory_space<vmem>>, %arg4: memref<8x8x32xf32, #tpu.memory_space<vmem>>, %arg5: memref<8x8xf32, #tpu.memory_space<vmem>>, %arg6: memref<32x32xbf16, #tpu.memory_space<vmem>>, %arg7: memref<1x32xf32, #tpu.memory_space<vmem>>, %arg8: memref<32x32xbf16, #tpu.memory_space<vmem>>, %arg9: memref<1x32xf32, #tpu.memory_space<vmem>>, %arg10: memref<32x128xbf16, #tpu.memory_space<vmem>>, %arg11: memref<32x33xbf16, #tpu.memory_space<vmem>>, %arg12: memref<1x33xf32, #tpu.memory_space<vmem>>, %arg13: memref<32x1xbf16, #tpu.memory_space<vmem>>, %arg14: memref<1x1xf32, #tpu.memory_space<vmem>>, %arg15: memref<1x32xf32, #tpu.memory_space<vmem>>, %arg16: memref<8x256xf32, #tpu.memory_space<vmem>>) attributes {dimension_semantics = [#tpu.dimension_semantics<parallel>], iteration_bounds = array<i64: 2>, scalar_prefetch = 0 : i64, scratch_operands = 0 : i64, tpu.core_type = #tpu.core_type<tc>, window_params = [{transform_indices = @transform_0, window_bounds = array<i64: 8, 8, 32>}, {transform_indices = @transform_1, window_bounds = array<i64: 8, 8, 32>}, {transform_indices = @transform_2, window_bounds = array<i64: 8, 8, 32>}, {transform_indices = @transform_3, window_bounds = array<i64: 8, 8, 32>}, {transform_indices = @transform_4, window_bounds = array<i64: 8, 8>}, {pipeline_mode = #tpu.pipeline_mode<synchronous>, transform_indices = @transform_5, window_bounds = array<i64: 32, 32>}, {pipeline_mode = #tpu.pipeline_mode<synchronous>, transform_indices = @transform_6, window_bounds = array<i64: 1, 32>}, {pipeline_mode = #tpu.pipeline_mode<synchronous>, transform_indices = @transform_7, window_bounds = array<i64: 32, 32>}, {pipeline_mode = #tpu.pipeline_mode<synchronous>, transform_indices = @transform_8, window_bounds = array<i64: 1, 32>}, {pipeline_mode = #tpu.pipeline_mode<synchronous>, transform_indices = @transform_9, window_bounds = array<i64: 32, 128>}, {pipeline_mode = #tpu.pipeline_mode<synchronous>, transform_indices = @transform_10, window_bounds = array<i64: 32, 33>}, {pipeline_mode = #tpu.pipeline_mode<synchronous>, transform_indices = @transform_11, window_bounds = array<i64: 1, 33>}, {pipeline_mode = #tpu.pipeline_mode<synchronous>, transform_indices = @transform_12, window_bounds = array<i64: 32, 1>}, {pipeline_mode = #tpu.pipeline_mode<synchronous>, transform_indices = @transform_13, window_bounds = array<i64: 1, 1>}, {pipeline_mode = #tpu.pipeline_mode<synchronous>, transform_indices = @transform_14, window_bounds = array<i64: 1, 32>}, {transform_indices = @transform_15, window_bounds = array<i64: 8, 256>}]} {
    %c0 = arith.constant 0 : index
    %c0_0 = arith.constant 0 : index
    %c0_1 = arith.constant 0 : index
    %0 = vector.load %arg1[%c0, %c0_0, %c0_1] : memref<8x8x32xf32, #tpu.memory_space<vmem>>, vector<8x8x32xf32>
    %1 = vector.shape_cast %0 : vector<8x8x32xf32> to vector<64x32xf32>
    %2 = arith.truncf %1 : vector<64x32xf32> to vector<64x32xbf16>
    %c0_2 = arith.constant 0 : index
    %c0_3 = arith.constant 0 : index
    %c0_4 = arith.constant 0 : index
    %3 = vector.load %arg2[%c0_2, %c0_3, %c0_4] : memref<8x8x32xf32, #tpu.memory_space<vmem>>, vector<8x8x32xf32>
    %4 = vector.shape_cast %3 : vector<8x8x32xf32> to vector<64x32xf32>
    %5 = arith.truncf %4 : vector<64x32xf32> to vector<64x32xbf16>
    %c0_5 = arith.constant 0 : index
    %c0_6 = arith.constant 0 : index
    %c0_7 = arith.constant 0 : index
    %6 = vector.load %arg3[%c0_5, %c0_6, %c0_7] : memref<8x8x32xf32, #tpu.memory_space<vmem>>, vector<8x8x32xf32>
    %7 = vector.shape_cast %6 : vector<8x8x32xf32> to vector<64x32xf32>
    %8 = arith.truncf %7 : vector<64x32xf32> to vector<64x32xbf16>
    %c0_8 = arith.constant 0 : index
    %c0_9 = arith.constant 0 : index
    %c0_10 = arith.constant 0 : index
    %9 = vector.load %arg4[%c0_8, %c0_9, %c0_10] : memref<8x8x32xf32, #tpu.memory_space<vmem>>, vector<8x8x32xf32>
    %10 = vector.shape_cast %9 : vector<8x8x32xf32> to vector<64x32xf32>
    %11 = arith.truncf %10 : vector<64x32xf32> to vector<64x32xbf16>
    %c0_11 = arith.constant 0 : index
    %c0_12 = arith.constant 0 : index
    %12 = vector.load %arg6[%c0_11, %c0_12] : memref<32x32xbf16, #tpu.memory_space<vmem>>, vector<32x32xbf16>
    %cst = arith.constant dense<0.000000e+00> : vector<64x32xf32>
    %13 = tpu.matmul %2, %12, %cst {dimension_numbers = #tpu.dot_dimension_numbers<[1], [0], [0], [1], [0, 0, 1, 1], [], []>} : vector<64x32xbf16>, vector<32x32xbf16>, vector<64x32xf32> -> vector<64x32xf32>
    %c0_13 = arith.constant 0 : index
    %c0_14 = arith.constant 0 : index
    %14 = vector.load %arg7[%c0_13, %c0_14] : memref<1x32xf32, #tpu.memory_space<vmem>>, vector<1x32xf32>
    %15 = vector.broadcast %14 : vector<1x32xf32> to vector<64x32xf32>
    %16 = arith.addf %13, %15 : vector<64x32xf32>
    %17 = arith.truncf %16 : vector<64x32xf32> to vector<64x32xbf16>
    %18 = vector.shape_cast %17 : vector<64x32xbf16> to vector<8x8x32xbf16>
    %c0_15 = arith.constant 0 : index
    %c0_16 = arith.constant 0 : index
    %19 = vector.load %arg8[%c0_15, %c0_16] : memref<32x32xbf16, #tpu.memory_space<vmem>>, vector<32x32xbf16>
    %cst_17 = arith.constant dense<0.000000e+00> : vector<64x32xf32>
    %20 = tpu.matmul %5, %19, %cst_17 {dimension_numbers = #tpu.dot_dimension_numbers<[1], [0], [0], [1], [0, 0, 1, 1], [], []>} : vector<64x32xbf16>, vector<32x32xbf16>, vector<64x32xf32> -> vector<64x32xf32>
    %c0_18 = arith.constant 0 : index
    %c0_19 = arith.constant 0 : index
    %21 = vector.load %arg9[%c0_18, %c0_19] : memref<1x32xf32, #tpu.memory_space<vmem>>, vector<1x32xf32>
    %22 = vector.broadcast %21 : vector<1x32xf32> to vector<64x32xf32>
    %23 = arith.addf %20, %22 : vector<64x32xf32>
    %24 = arith.truncf %23 : vector<64x32xf32> to vector<64x32xbf16>
    %25 = vector.shape_cast %24 : vector<64x32xbf16> to vector<8x8x32xbf16>
    %c0_20 = arith.constant 0 : index
    %c0_21 = arith.constant 0 : index
    %26 = vector.load %arg10[%c0_20, %c0_21] : memref<32x128xbf16, #tpu.memory_space<vmem>>, vector<32x128xbf16>
    %cst_22 = arith.constant dense<0.000000e+00> : vector<64x128xf32>
    %27 = tpu.matmul %8, %26, %cst_22 {dimension_numbers = #tpu.dot_dimension_numbers<[1], [0], [0], [1], [0, 0, 1, 1], [], []>} : vector<64x32xbf16>, vector<32x128xbf16>, vector<64x128xf32> -> vector<64x128xf32>
    %28 = arith.truncf %27 : vector<64x128xf32> to vector<64x128xbf16>
    %29 = vector.shape_cast %28 : vector<64x128xbf16> to vector<8x8x128xbf16>
    %c0_23 = arith.constant 0 : index
    %c0_24 = arith.constant 0 : index
    %30 = vector.load %arg11[%c0_23, %c0_24] : memref<32x33xbf16, #tpu.memory_space<vmem>>, vector<32x33xbf16>
    %cst_25 = arith.constant dense<0.000000e+00> : vector<64x33xf32>
    %31 = tpu.matmul %11, %30, %cst_25 {dimension_numbers = #tpu.dot_dimension_numbers<[1], [0], [0], [1], [0, 0, 1, 1], [], []>} : vector<64x32xbf16>, vector<32x33xbf16>, vector<64x33xf32> -> vector<64x33xf32>
    %c0_26 = arith.constant 0 : index
    %c0_27 = arith.constant 0 : index
    %32 = vector.load %arg12[%c0_26, %c0_27] : memref<1x33xf32, #tpu.memory_space<vmem>>, vector<1x33xf32>
    %33 = vector.broadcast %32 : vector<1x33xf32> to vector<64x33xf32>
    %34 = arith.addf %31, %33 : vector<64x33xf32>
    %35 = vector.shape_cast %34 : vector<64x33xf32> to vector<8x8x33xf32>
    %36 = vector.extract_strided_slice %35 {offsets = [0, 0, 32], sizes = [8, 8, 1], strides = [1, 1, 1]} : vector<8x8x33xf32> to vector<8x8x1xf32>
    %cst_28 = arith.constant dense<0.000000e+00> : vector<8x1xf32>
    %37 = vector.multi_reduction <add>, %36, %cst_28 [1] : vector<8x8x1xf32> to vector<8x1xf32>
    %38 = vector.shape_cast %37 : vector<8x1xf32> to vector<8x1x1xf32>
    %cst_29 = arith.constant 8.000000e+00 : f32
    %39 = vector.broadcast %cst_29 : f32 to vector<8x1x1xf32>
    %40 = arith.divf %38, %39 : vector<8x1x1xf32>
    %41 = vector.extract_strided_slice %35 {offsets = [0, 0, 0], sizes = [8, 8, 32], strides = [1, 1, 1]} : vector<8x8x33xf32> to vector<8x8x32xf32>
    %42 = vector.broadcast %40 : vector<8x1x1xf32> to vector<8x8x32xf32>
    %43 = arith.addf %41, %42 : vector<8x8x32xf32>
    %44 = arith.negf %43 : vector<8x8x32xf32>
    %45 = math.exp %44 : vector<8x8x32xf32>
    %cst_30 = arith.constant 1.000000e+00 : f32
    %46 = vector.broadcast %cst_30 : f32 to vector<8x8x32xf32>
    %47 = arith.addf %46, %45 : vector<8x8x32xf32>
    %48 = arith.divf %46, %47 : vector<8x8x32xf32>
    %49 = vector.shape_cast %48 : vector<8x8x32xf32> to vector<64x32xf32>
    %50 = arith.truncf %49 : vector<64x32xf32> to vector<64x32xbf16>
    %c0_31 = arith.constant 0 : index
    %c0_32 = arith.constant 0 : index
    %51 = vector.load %arg13[%c0_31, %c0_32] : memref<32x1xbf16, #tpu.memory_space<vmem>>, vector<32x1xbf16>
    %cst_33 = arith.constant dense<0.000000e+00> : vector<64x1xf32>
    %52 = tpu.matmul %50, %51, %cst_33 {dimension_numbers = #tpu.dot_dimension_numbers<[1], [0], [0], [1], [0, 0, 1, 1], [], []>} : vector<64x32xbf16>, vector<32x1xbf16>, vector<64x1xf32> -> vector<64x1xf32>
    %c0_34 = arith.constant 0 : index
    %c0_35 = arith.constant 0 : index
    %53 = vector.load %arg14[%c0_34, %c0_35] : memref<1x1xf32, #tpu.memory_space<vmem>>, vector<1x1xf32>
    %54 = vector.broadcast %53 : vector<1x1xf32> to vector<64x1xf32>
    %55 = arith.addf %52, %54 : vector<64x1xf32>
    %56 = arith.negf %55 : vector<64x1xf32>
    %57 = math.exp %56 : vector<64x1xf32>
    %cst_36 = arith.constant 1.000000e+00 : f32
    %58 = vector.broadcast %cst_36 : f32 to vector<64x1xf32>
    %59 = arith.addf %58, %57 : vector<64x1xf32>
    %60 = arith.divf %58, %59 : vector<64x1xf32>
    %61 = vector.shape_cast %60 : vector<64x1xf32> to vector<8x8x1xf32>
    %62 = vector.extract_strided_slice %18 {offsets = [0, 0, 0], sizes = [8, 8, 8], strides = [1, 1, 1]} : vector<8x8x32xbf16> to vector<8x8x8xbf16>
    %63 = vector.extract_strided_slice %18 {offsets = [0, 0, 8], sizes = [8, 8, 8], strides = [1, 1, 1]} : vector<8x8x32xbf16> to vector<8x8x8xbf16>
    %64 = vector.extract_strided_slice %18 {offsets = [0, 0, 16], sizes = [8, 8, 8], strides = [1, 1, 1]} : vector<8x8x32xbf16> to vector<8x8x8xbf16>
    %65 = vector.extract_strided_slice %18 {offsets = [0, 0, 24], sizes = [8, 8, 8], strides = [1, 1, 1]} : vector<8x8x32xbf16> to vector<8x8x8xbf16>
    %66 = tpu.concatenate %62, %63, %64, %65 in 0 : vector<8x8x8xbf16>, vector<8x8x8xbf16>, vector<8x8x8xbf16>, vector<8x8x8xbf16> -> vector<32x8x8xbf16>
    %67 = vector.extract_strided_slice %25 {offsets = [0, 0, 0], sizes = [8, 8, 8], strides = [1, 1, 1]} : vector<8x8x32xbf16> to vector<8x8x8xbf16>
    %68 = vector.extract_strided_slice %25 {offsets = [0, 0, 8], sizes = [8, 8, 8], strides = [1, 1, 1]} : vector<8x8x32xbf16> to vector<8x8x8xbf16>
    %69 = vector.extract_strided_slice %25 {offsets = [0, 0, 16], sizes = [8, 8, 8], strides = [1, 1, 1]} : vector<8x8x32xbf16> to vector<8x8x8xbf16>
    %70 = vector.extract_strided_slice %25 {offsets = [0, 0, 24], sizes = [8, 8, 8], strides = [1, 1, 1]} : vector<8x8x32xbf16> to vector<8x8x8xbf16>
    %71 = tpu.concatenate %67, %68, %69, %70 in 0 : vector<8x8x8xbf16>, vector<8x8x8xbf16>, vector<8x8x8xbf16>, vector<8x8x8xbf16> -> vector<32x8x8xbf16>
    %72 = vector.extract_strided_slice %29 {offsets = [0, 0, 0], sizes = [8, 8, 32], strides = [1, 1, 1]} : vector<8x8x128xbf16> to vector<8x8x32xbf16>
    %73 = vector.extract_strided_slice %29 {offsets = [0, 0, 32], sizes = [8, 8, 32], strides = [1, 1, 1]} : vector<8x8x128xbf16> to vector<8x8x32xbf16>
    %74 = vector.extract_strided_slice %29 {offsets = [0, 0, 64], sizes = [8, 8, 32], strides = [1, 1, 1]} : vector<8x8x128xbf16> to vector<8x8x32xbf16>
    %75 = vector.extract_strided_slice %29 {offsets = [0, 0, 96], sizes = [8, 8, 32], strides = [1, 1, 1]} : vector<8x8x128xbf16> to vector<8x8x32xbf16>
    %76 = tpu.concatenate %72, %73, %74, %75 in 0 : vector<8x8x32xbf16>, vector<8x8x32xbf16>, vector<8x8x32xbf16>, vector<8x8x32xbf16> -> vector<32x8x32xbf16>
    "tpu.trace_start"() <{level = 10 : i32, message = "nqd,nkd->nqk"}> : () -> ()
    %cst_37 = arith.constant dense<0.000000e+00> : vector<32x8x8xf32>
    %77 = tpu.matmul %66, %71, %cst_37 {dimension_numbers = #tpu.dot_dimension_numbers<[2], [2], [1], [1], [0, 0, 0, 1, 1, 1], [0], [0]>} : vector<32x8x8xbf16>, vector<32x8x8xbf16>, vector<32x8x8xf32> -> vector<32x8x8xf32>
    "tpu.trace_stop"() : () -> ()
    %c0_38 = arith.constant 0 : index
    %c0_39 = arith.constant 0 : index
    %78 = vector.load %arg5[%c0_38, %c0_39] : memref<8x8xf32, #tpu.memory_space<vmem>>, vector<8x8xf32>
    %79 = vector.shape_cast %78 : vector<8x8xf32> to vector<1x8x1x8xf32>
    %80 = vector.shape_cast %77 : vector<32x8x8xf32> to vector<4x8x8x8xf32>
    %81 = vector.broadcast %79 : vector<1x8x1x8xf32> to vector<4x8x8x8xf32>
    %82 = arith.addf %80, %81 : vector<4x8x8x8xf32>
    %83 = vector.shape_cast %82 : vector<4x8x8x8xf32> to vector<32x8x8xf32>
    %cst_40 = arith.constant dense<0xFF800000> : vector<32x8xf32>
    %84 = vector.multi_reduction <maximumf>, %83, %cst_40 [2] : vector<32x8x8xf32> to vector<32x8xf32>
    %85 = vector.shape_cast %84 : vector<32x8xf32> to vector<32x8x1xf32>
    %86 = vector.broadcast %85 : vector<32x8x1xf32> to vector<32x8x8xf32>
    %87 = arith.subf %83, %86 : vector<32x8x8xf32>
    %88 = math.exp %87 : vector<32x8x8xf32>
    %cst_41 = arith.constant dense<0.000000e+00> : vector<32x8xf32>
    %89 = vector.multi_reduction <add>, %88, %cst_41 [2] : vector<32x8x8xf32> to vector<32x8xf32>
    %90 = vector.shape_cast %89 : vector<32x8xf32> to vector<32x8x1xf32>
    %91 = tpu.reciprocal %90 {approx = true} : vector<32x8x1xf32> -> vector<32x8x1xf32>
    %92 = vector.broadcast %91 : vector<32x8x1xf32> to vector<32x8x8xf32>
    %93 = arith.mulf %88, %92 : vector<32x8x8xf32>
    %94 = arith.truncf %93 : vector<32x8x8xf32> to vector<32x8x8xbf16>
    "tpu.trace_start"() <{level = 10 : i32, message = "nqk,nkd->nqd"}> : () -> ()
    %cst_42 = arith.constant dense<0.000000e+00> : vector<32x8x32xf32>
    %95 = tpu.matmul %94, %76, %cst_42 {dimension_numbers = #tpu.dot_dimension_numbers<[2], [1], [1], [2], [0, 0, 0, 1, 1, 2], [0], [0]>} : vector<32x8x8xbf16>, vector<32x8x32xbf16>, vector<32x8x32xf32> -> vector<32x8x32xf32>
    "tpu.trace_stop"() : () -> ()
    %96 = vector.extract_strided_slice %95 {offsets = [0, 0, 0], sizes = [8, 8, 32], strides = [1, 1, 1]} : vector<32x8x32xf32> to vector<8x8x32xf32>
    %97 = vector.extract_strided_slice %95 {offsets = [8, 0, 0], sizes = [8, 8, 32], strides = [1, 1, 1]} : vector<32x8x32xf32> to vector<8x8x32xf32>
    %98 = arith.addf %96, %97 : vector<8x8x32xf32>
    %99 = vector.extract_strided_slice %95 {offsets = [16, 0, 0], sizes = [8, 8, 32], strides = [1, 1, 1]} : vector<32x8x32xf32> to vector<8x8x32xf32>
    %100 = arith.addf %98, %99 : vector<8x8x32xf32>
    %101 = vector.extract_strided_slice %95 {offsets = [24, 0, 0], sizes = [8, 8, 32], strides = [1, 1, 1]} : vector<32x8x32xf32> to vector<8x8x32xf32>
    %102 = arith.addf %100, %101 : vector<8x8x32xf32>
    %c0_43 = arith.constant 0 : index
    %c0_44 = arith.constant 0 : index
    %103 = vector.load %arg15[%c0_43, %c0_44] : memref<1x32xf32, #tpu.memory_space<vmem>>, vector<1x32xf32>
    %104 = vector.shape_cast %103 : vector<1x32xf32> to vector<1x1x32xf32>
    %105 = vector.broadcast %104 : vector<1x1x32xf32> to vector<8x8x32xf32>
    %106 = arith.addf %102, %105 : vector<8x8x32xf32>
    %cst_45 = arith.constant 1.000000e+00 : f32
    %107 = vector.broadcast %cst_45 : f32 to vector<8x8x1xf32>
    %108 = arith.addf %107, %61 : vector<8x8x1xf32>
    %109 = vector.broadcast %108 : vector<8x8x1xf32> to vector<8x8x32xf32>
    %110 = arith.mulf %106, %109 : vector<8x8x32xf32>
    %111 = vector.shape_cast %110 : vector<8x8x32xf32> to vector<8x256xf32>
    %c0_46 = arith.constant 0 : index
    %c0_47 = arith.constant 0 : index
    %112 = vector.load %arg16[%c0_46, %c0_47] : memref<8x256xf32, #tpu.memory_space<vmem>>, vector<8x256xf32>
    tpu.vector_store %arg16[%c0_46, %c0_47], %111 {strides = array<i32>} : memref<8x256xf32, #tpu.memory_space<vmem>>, vector<8x256xf32>,
    return
  }
  func.func @transform_0(%arg0: i32) -> (i32, i32, i32) {
    %c0_i32 = arith.constant 0 : i32
    %c0_i32_0 = arith.constant 0 : i32
    %c0_i32_1 = arith.constant 0 : i32
    return %arg0, %c0_i32, %c0_i32_0 : i32, i32, i32
  }
  func.func @transform_1(%arg0: i32) -> (i32, i32, i32) {
    %c0_i32 = arith.constant 0 : i32
    %c0_i32_0 = arith.constant 0 : i32
    %c0_i32_1 = arith.constant 0 : i32
    return %arg0, %c0_i32, %c0_i32_0 : i32, i32, i32
  }
  func.func @transform_2(%arg0: i32) -> (i32, i32, i32) {
    %c0_i32 = arith.constant 0 : i32
    %c0_i32_0 = arith.constant 0 : i32
    %c0_i32_1 = arith.constant 0 : i32
    return %arg0, %c0_i32, %c0_i32_0 : i32, i32, i32
  }
  func.func @transform_3(%arg0: i32) -> (i32, i32, i32) {
    %c0_i32 = arith.constant 0 : i32
    %c0_i32_0 = arith.constant 0 : i32
    %c0_i32_1 = arith.constant 0 : i32
    return %arg0, %c0_i32, %c0_i32_0 : i32, i32, i32
  }
  func.func @transform_4(%arg0: i32) -> (i32, i32) {
    %c0_i32 = arith.constant 0 : i32
    %c0_i32_0 = arith.constant 0 : i32
    return %arg0, %c0_i32 : i32, i32
  }
  func.func @transform_5(%arg0: i32) -> (i32, i32) {
    %c0_i32 = arith.constant 0 : i32
    %c0_i32_0 = arith.constant 0 : i32
    %c0_i32_1 = arith.constant 0 : i32
    return %c0_i32, %c0_i32_0 : i32, i32
  }
  func.func @transform_6(%arg0: i32) -> (i32, i32) {
    %c0_i32 = arith.constant 0 : i32
    %c0_i32_0 = arith.constant 0 : i32
    %c0_i32_1 = arith.constant 0 : i32
    return %c0_i32, %c0_i32_0 : i32, i32
  }
  func.func @transform_7(%arg0: i32) -> (i32, i32) {
    %c0_i32 = arith.constant 0 : i32
    %c0_i32_0 = arith.constant 0 : i32
    %c0_i32_1 = arith.constant 0 : i32
    return %c0_i32, %c0_i32_0 : i32, i32
  }
  func.func @transform_8(%arg0: i32) -> (i32, i32) {
    %c0_i32 = arith.constant 0 : i32
    %c0_i32_0 = arith.constant 0 : i32
    %c0_i32_1 = arith.constant 0 : i32
    return %c0_i32, %c0_i32_0 : i32, i32
  }
  func.func @transform_9(%arg0: i32) -> (i32, i32) {
    %c0_i32 = arith.constant 0 : i32
    %c0_i32_0 = arith.constant 0 : i32
    %c0_i32_1 = arith.constant 0 : i32
    return %c0_i32, %c0_i32_0 : i32, i32
  }
  func.func @transform_10(%arg0: i32) -> (i32, i32) {
    %c0_i32 = arith.constant 0 : i32
    %c0_i32_0 = arith.constant 0 : i32
    %c0_i32_1 = arith.constant 0 : i32
    return %c0_i32, %c0_i32_0 : i32, i32
  }
  func.func @transform_11(%arg0: i32) -> (i32, i32) {
    %c0_i32 = arith.constant 0 : i32
    %c0_i32_0 = arith.constant 0 : i32
    %c0_i32_1 = arith.constant 0 : i32
    return %c0_i32, %c0_i32_0 : i32, i32
  }
  func.func @transform_12(%arg0: i32) -> (i32, i32) {
    %c0_i32 = arith.constant 0 : i32
    %c0_i32_0 = arith.constant 0 : i32
    %c0_i32_1 = arith.constant 0 : i32
    return %c0_i32, %c0_i32_0 : i32, i32
  }
  func.func @transform_13(%arg0: i32) -> (i32, i32) {
    %c0_i32 = arith.constant 0 : i32
    %c0_i32_0 = arith.constant 0 : i32
    %c0_i32_1 = arith.constant 0 : i32
    return %c0_i32, %c0_i32_0 : i32, i32
  }
  func.func @transform_14(%arg0: i32) -> (i32, i32) {
    %c0_i32 = arith.constant 0 : i32
    %c0_i32_0 = arith.constant 0 : i32
    %c0_i32_1 = arith.constant 0 : i32
    return %c0_i32, %c0_i32_0 : i32, i32
  }
  func.func @transform_15(%arg0: i32) -> (i32, i32) {
    %c0_i32 = arith.constant 0 : i32
    %c0_i32_0 = arith.constant 0 : i32
    return %arg0, %c0_i32 : i32, i32
  }
}

</mosaic_0001>

<bundles_post_ra>
// kernel: tpu_custom_call.1
= control target key start
LH: loop header
LB: loop body
LE: loop exit
PB: predicated region body
PF: predicated region fallthrough
CT: control target
= control target key end

     0   :  { %s8574_s0 = inlined_call_operand.hbm [shape: f32[16,8,32], index: 0, kind: input, shape index: {}]   ;;  %s8575_s1 = inlined_call_operand.hbm [shape: f32[16,8,32], index: 1, kind: input, shape index: {}]   ;;  %s8576_s2 = inlined_call_operand.hbm [shape: f32[16,8,32], index: 2, kind: input, shape index: {}]   ;;  %s8577_s3 = inlined_call_operand.hbm [shape: f32[16,8,32], index: 3, kind: input, shape index: {}]   ;;  %s8578_s4 = inlined_call_operand.vmem [shape: f32[16,8], index: 4, kind: input, shape index: {}]   ;;  %s8579_s5 = inlined_call_operand.vmem [shape: bf16[32,32], index: 5, kind: input, shape index: {}]   ;;  %s8580_s6 = inlined_call_operand.vmem [shape: f32[1,32], index: 6, kind: input, shape index: {}]   ;;  %s8581_s7 = inlined_call_operand.vmem [shape: bf16[32,32], index: 7, kind: input, shape index: {}]   ;;  %s8582_s8 = inlined_call_operand.vmem [shape: f32[1,32], index: 8, kind: input, shape index: {}]   ;;  %s8583_s9 = inlined_call_operand.vmem [shape: bf16[32,128], index: 9, kind: input, shape index: {}]   ;;  %s8584_s10 = inlined_call_operand.hbm [shape: bf16[32,33], index: 10, kind: input, shape index: {}]   ;;  %s8585_s11 = inlined_call_operand.vmem [shape: f32[1,33], index: 11, kind: input, shape index: {}]   ;;  %s8586_s12 = inlined_call_operand.vmem [shape: bf16[32,1], index: 12, kind: input, shape index: {}]   ;;  %s8587_s13 = inlined_call_operand.<no memory space> [shape: f32[1,1], index: 13, kind: input, shape index: {}]   ;;  %s8588_s14 = inlined_call_operand.vmem [shape: f32[1,32], index: 14, kind: input, shape index: {}]   ;;  %s8589_s15 = inlined_call_operand.hbm [shape: f32[16,256], index: 15, kind: output, shape index: {}]  }
   0x1   :  { %8615 = sst [smem:[#allocation31_spill]] %s8574_s0  ;;  %v20_v0 = vstv %s8587_s13 }
   0x2   :  { %8616 = sst [smem:[#allocation32_spill]] %s8575_s1  ;;  %21 = vst [vmem:[#allocation2] sm:$0x1] %v20_v0 }
   0x3   :  { %8617 = sst [smem:[#allocation33_spill]] %s8578_s4 }
   0x4   :  { %8618 = sst [smem:[#allocation34_spill]] %s8583_s9 }
   0x5   :  { %8619 = sst [smem:[#allocation35_spill]] %s8584_s10 }
   0x6   :  { %8620 = sst [smem:[#allocation36_spill]] %s8586_s12 }
   0x7   :  { %8621 = sst [smem:[#allocation37_spill]] %s8588_s14 }
   0x8   :  { %8622 = sst [smem:[#allocation38_spill]] %s8589_s15 }
   0x9   :  { %22 = vsyncpa [#allocation4], 0 }
   0xa   :  { %24 = vsyncpa [#allocation4 + $0x1], 0 }
   0xb   :  { %25 = vsyncpa [#allocation7], 0 }
   0xc   :  { %27 = vsyncpa [#allocation7 + $0x1], 0 }
   0xd   :  { %28 = vsyncpa [#allocation10], 0 }
   0xe   :  { %30 = vsyncpa [#allocation10 + $0x1], 0 }
   0xf   :  { %31 = vsyncpa [#allocation5], 0 }
  0x10   :  { %33 = vsyncpa [#allocation5 + $0x1], 0  ;;  %s6947_s20 = smov 0   ;;  %s6949_s21 = smov 0  }
  0x11   :  { %s6951_s22 = smov 0   ;;  %s6953_s23 = smov 0  }
  0x12 LB: > { %8623 = sst [smem:[#allocation18_spill]] %s6827_s20  ;;  %s6968_s13 = sadd.s32 4294967295, %s6839_s23   ;;  %s6839_s23 = sphi %s6953_s23, %s8675_s23   ;;  %s6835_s22 = sphi %s6951_s22, %s8679_s22   ;;  %s6831_s21 = sphi %s6949_s21, %s8678_s21   ;;  %s6827_s20 = sphi %s6947_s20, %s8677_s20  }
  0x13   : > { %s5530_s24 = sadd.s32 4294967294, %s6839_s23   ;;  %s6972_s25 = sadd.s32 1, %s6839_s23  }
  0x14   : > { %8624 = sst [smem:[#allocation19_spill]] %s6972_s25  ;;  %s46_s26 = sadd.s32 1, %s6835_s22 }
  0x15   : > { %s43_s27 = ssub.s32 %s6839_s23, %s6972_s25  ;;  %p53_p0 = scmp.ne.s32.totalorder %s6835_s22, %s6831_s21 }
  0x16   : > { %p44_p1 = scmp.eq.s32.totalorder %s43_s27, 0  ;;  %p54_p2 = scmp.eq.s32.totalorder %s6839_s23, 0 }
  0x17   : > { %p59_p3 = scmp.ne.s32.totalorder %s6831_s21, %s6827_s20  ;;  %p8602_p4 = scmp.eq.s32.totalorder %s6968_s13, 0 }
  0x18   : > { %s6984_s28 = scalar_select %p44_p1, %s6835_s22, %s46_s26  }
  0x19   : > { %p6986_p5 = por %p54_p2, %p53_p0  ;;  %p6992_p6 = por %p8602_p4, %p59_p3 }
  0x1a   : > { %8625 = sst [smem:[#allocation20_spill]] %s6984_s28  ;;  %p397_p7 = scmp.eq.s32.totalorder %s6968_s13, 1 }
  0x1b   : > { %s8627_s30 = scalar_select %p6992_p6, 1, 0 }
  0x1c   : > { %p403_p8 = scmp.eq.s32.totalorder %s5530_s24, 1  ;;  %p5531_p9 = scmp.ge.s32.totalorder %s6839_s23, 1 }
  0x1d   : > { %p410_p10 = scmp.lt.s32.totalorder %s6839_s23, 3  ;;  %p6999_p11 = por %p397_p7, %p53_p0 }
  0x1e   : > { %p7003_p12 = por %p403_p8, %p59_p3  ;;  %s6841_s19 = smov [#allocation11]  }
  0x1f   : > { %s8628_s16 = scalar_select %p6999_p11, 1, 0 }
  0x20   : > { %s8630_s17 = scalar_select %p7003_p12, 1, 0 }
  0x21   : > { %8629 = sst [smem:[#allocation21_spill]] %s8628_s16  ;;  %p7007_p13 = pnand %p5531_p9, %p410_p10 }
  0x22   : > { %8631 = sst [smem:[#allocation22_spill]] %s8630_s17  ;;  %s437_s26 = sshll.u32 %s6841_s19, 4  ;;  %s438_s26 = int_to_ptr.vmem [resolvable:$true] %s437_s26 }
  0x23   : > { %s8632_s18 = scalar_select %p7007_p13, 1, 0 }
  0x24   : > { %p6343_p1 = pneg %p7007_p13  ;;  %p6365_p3 = scmp.lt.s32.totalorder %s6839_s23, 2 }
  0x25   : > { %s8594_s27 = sand.u32 1, %s6835_s22   ;;  %s6636_s25 = scalar_lea.vmem %s438_s26, 256 }
  0x26   : > { %p7015_p2 = pnand %p6343_p1, %p8602_p4  ;;  %s7024_s28 = sshll.u32 %s8594_s27, 6 }
  0x27   : > { %p6637_p8 = scmp.ne.s32.totalorder %s438_s26, %s6636_s25  ;;  %p6644_p12 = scmp.lt.s32.totalorder %s438_s26, %s438_s26 }
  0x28   : > { %p6627_p7 = pneg %p7015_p2  ;;  %p6645_p11 = scmp.lt.s32.totalorder %s6636_s25, %s6636_s25 }
  0x2a   : > { %p6639_p9 = pnand %p6637_p8, %p6627_p7  ;;  %p6646_p6 = por %p6645_p11, %p6644_p12 }
  0x2c   : > { %p6640_p10 = pneg %p6639_p9 }
  0x2e   : > { %p6647_p1 = pnand %p6646_p6, %p6640_p10 }
  0x30   : > { %6650 = shalt.err (!%p6647_p1)
}
  0x31   : > { %s6842_s19 = smov 64   ;;  %s6843_s27 = smov 4  }
  0x32   : > { %s8634_s10 = sld [smem:[#allocation35_spill]]  ;;  %s7034_s15 = sshll.u32 %s6839_s23, 10 }
  0x33   : > { %p7040_p6 = pnand %p6365_p3, %p6986_p5  ;;  %s8601_s16 = sand.u32 1, %s6839_s23  }
  0x34   : > { %s8636_s1 = sld [smem:[#allocation32_spill]]  ;;  %s488_s20 = scalar_lea.vmem [#allocation6], %s7024_s28 }
  0x35   : > { %s495_s17 = sshll.u32 %s488_s20, 4  ;;  %s7056_s29 = scalar_lea.sflag [#allocation7], %s8601_s16  ;;  %s7052_s17 = int_to_ptr.vmem [resolvable:$true] %s495_s17 }
  0x36   : > { %p7062_p11 = pneg %p7040_p6 }
  0x38   : > { %6346 = dma.hbm_to_vmem [thread:$0]  (!%p7015_p2), %s8634_s10, 256, %s438_s26, [#allocation10], %s6842_s19, %s6842_s19, %s6843_s27  }
  0x3a   : > { %s7049_s12 = scalar_lea.hbm %s8636_s1, %s7034_s15  ;;  %s6656_s27 = scalar_lea.hbm %s8636_s1, 2048 }
  0x3b   : > { %s6651_s26 = scalar_lea.hbm %s7049_s12, 1024  ;;  %p6657_p3 = scmp.lt.s32.totalorder %s7049_s12, %s8636_s1 }
  0x3c   : > { %p6652_p5 = scmp.ne.s32.totalorder %s7049_s12, %s6651_s26  ;;  %p6658_p7 = scmp.lt.s32.totalorder %s6656_s27, %s6651_s26 }
  0x3e   : > { %p6654_p12 = pnand %p7062_p11, %p6652_p5  ;;  %p6659_p8 = por %p6658_p7, %p6657_p3 }
  0x40   : > { %p6655_p2 = pneg %p6654_p12 }
  0x42   : > { %p6660_p9 = pnand %p6659_p8, %p6655_p2 }
  0x44   : > { %6663 = shalt.err (!%p6660_p9)
}
  0x45   : > { %s6664_s16 = scalar_lea.vmem %s7052_s17, 1024  ;;  %s6844_s10 = smov [#allocation6]  }
  0x46   : > { %p6665_p10 = scmp.ne.s32.totalorder %s7052_s17, %s6664_s16  ;;  %s6669_s4 = sshll.u32 %s6844_s10, 4  ;;  %s6670_s4 = int_to_ptr.vmem [resolvable:$false] %s6669_s4 }
  0x47   : > { %s6671_s14 = scalar_lea.vmem %s6670_s4, 2048  ;;  %p6672_p12 = scmp.lt.s32.totalorder %s7052_s17, %s6670_s4 }
  0x48   : > { %p6667_p1 = pnand %p6665_p10, %p7062_p11  ;;  %p6673_p0 = scmp.lt.s32.totalorder %s6671_s14, %s6664_s16 }
  0x4a   : > { %p6668_p5 = pneg %p6667_p1  ;;  %p6674_p4 = por %p6673_p0, %p6672_p12 }
  0x4c   : > { %p6675_p13 = pnand %p6674_p4, %p6668_p5 }
  0x4e   : > { %6678 = shalt.err (!%p6675_p13)
}
  0x4f   : > { %s8605_s26 = smov 128   ;;  %s8607_s27 = smov 8  }
  0x50   : > { %6353 = dma.hbm_to_vmem [thread:$0]  (!%p7040_p6), %s7049_s12, 1024, %s7052_s17, %s7056_s29, %s8605_s26, %s8605_s26, %s8607_s27  }
  0x51   : > { %s8638_s0 = sld [smem:[#allocation31_spill]]  ;;  %s467_s20 = scalar_lea.vmem [#allocation3], %s7024_s28 }
  0x52   : > { %s474_s4 = sshll.u32 %s467_s20, 4  ;;  %s8639_s14 = sand.u32 1, %s6835_s22   ;;  %s7095_s4 = int_to_ptr.vmem [resolvable:$true] %s474_s4 }
  0x53   : > { %s464_s1 = scalar_lea.sflag [#allocation4], %s8639_s14 }
  0x57   : > { %s7092_s19 = scalar_lea.hbm %s8638_s0, %s7034_s15  ;;  %s6684_s10 = scalar_lea.hbm %s8638_s0, 2048 }
  0x58   : > { %s6679_s9 = scalar_lea.hbm %s7092_s19, 1024  ;;  %p6685_p2 = scmp.lt.s32.totalorder %s7092_s19, %s8638_s0 }
  0x59   : > { %p6680_p4 = scmp.ne.s32.totalorder %s7092_s19, %s6679_s9  ;;  %p6686_p3 = scmp.lt.s32.totalorder %s6684_s10, %s6679_s9 }
  0x5b   : > { %p6682_p13 = pnand %p6680_p4, %p7062_p11  ;;  %p6687_p7 = por %p6686_p3, %p6685_p2 }
  0x5d   : > { %p6683_p0 = pneg %p6682_p13 }
  0x5f   : > { %p6688_p8 = pnand %p6687_p7, %p6683_p0 }
  0x61   : > { %6691 = shalt.err (!%p6688_p8)
}
  0x62   : > { %s6692_s20 = scalar_lea.vmem %s7095_s4, 1024  ;;  %s6847_s14 = smov [#allocation3]  }
  0x63   : > { %p6693_p9 = scmp.ne.s32.totalorder %s7095_s4, %s6692_s20  ;;  %s6697_s12 = sshll.u32 %s6847_s14, 4  ;;  %s6698_s12 = int_to_ptr.vmem [resolvable:$false] %s6697_s12 }
  0x64   : > { %s6699_s17 = scalar_lea.vmem %s6698_s12, 2048  ;;  %p6700_p5 = scmp.lt.s32.totalorder %s7095_s4, %s6698_s12 }
  0x65   : > { %p6695_p10 = pnand %p6693_p9, %p7062_p11  ;;  %p6701_p12 = scmp.lt.s32.totalorder %s6699_s17, %s6692_s20 }
  0x67   : > { %p6696_p1 = pneg %p6695_p10  ;;  %p6702_p4 = por %p6701_p12, %p6700_p5 }
  0x69   : > { %p6703_p13 = pnand %p6702_p4, %p6696_p1 }
  0x6b   : > { %6706 = shalt.err (!%p6703_p13)
}
  0x6c   : > { %s8640_s9 = smov 128   ;;  %s7126_s16 = scalar_lea.hbm %s8576_s2, %s7034_s15 }
  0x6d   : > { %6350 = dma.hbm_to_vmem [thread:$0]  (!%p7040_p6), %s7092_s19, 1024, %s7095_s4, %s464_s1, %s8640_s9, %s8640_s9, %s8607_s27  }
  0x6e   : > { %s509_s20 = scalar_lea.vmem [#allocation8], %s7024_s28  ;;  %s6707_s12 = scalar_lea.hbm %s7126_s16, 1024 }
  0x6f   : > { %s516_s14 = sshll.u32 %s509_s20, 4  ;;  %p6708_p0 = scmp.ne.s32.totalorder %s7126_s16, %s6707_s12  ;;  %s517_s14 = int_to_ptr.vmem [resolvable:$true] %s516_s14 }
  0x70   : > { %s6712_s1 = scalar_lea.hbm %s8576_s2, 2048  ;;  %p6713_p7 = scmp.lt.s32.totalorder %s7126_s16, %s8576_s2 }
  0x71   : > { %p6710_p2 = pnand %p6708_p0, %p7062_p11  ;;  %p6714_p8 = scmp.lt.s32.totalorder %s6712_s1, %s6707_s12 }
  0x73   : > { %p6711_p3 = pneg %p6710_p2  ;;  %p6715_p9 = por %p6714_p8, %p6713_p7 }
  0x75   : > { %p6716_p10 = pnand %p6715_p9, %p6711_p3 }
  0x77   : > { %6719 = shalt.err (!%p6716_p10)
}
  0x78   : > { %s6720_s26 = scalar_lea.vmem %s517_s14, 1024  ;;  %s6848_s10 = smov [#allocation8]  }
  0x79   : > { %p6721_p1 = scmp.ne.s32.totalorder %s517_s14, %s6720_s26  ;;  %s6725_s20 = sshll.u32 %s6848_s10, 4  ;;  %s6726_s20 = int_to_ptr.vmem [resolvable:$false] %s6725_s20 }
  0x7a   : > { %s6727_s27 = scalar_lea.vmem %s6726_s20, 2048  ;;  %p6728_p4 = scmp.lt.s32.totalorder %s517_s14, %s6726_s20 }
  0x7b   : > { %p6723_p5 = pnand %p6721_p1, %p7062_p11  ;;  %p6729_p13 = scmp.lt.s32.totalorder %s6727_s27, %s6720_s26 }
  0x7d   : > { %p6724_p12 = pneg %p6723_p5  ;;  %p6730_p0 = por %p6729_p13, %p6728_p4 }
  0x7f   : > { %p6731_p2 = pnand %p6730_p0, %p6724_p12 }
  0x81   : > { %6734 = shalt.err (!%p6731_p2)
}
  0x82   : > { %s8641_s0 = smov 8   ;;  %s7153_s1 = scalar_lea.hbm %s8577_s3, %s7034_s15 }
  0x83   : > { %6356 = dma.hbm_to_vmem [thread:$0]  (!%p7040_p6), %s7126_s16, 1024, %s517_s14, %s7056_s29, %s8640_s9, %s8640_s9, %s8641_s0  }
  0x84   : > { %s530_s27 = scalar_lea.vmem [#allocation9], %s7024_s28  ;;  %s8642_s4 = sand.u32 1, %s6839_s23  }
  0x85   : > { %s537_s19 = sshll.u32 %s530_s27, 4  ;;  %s527_s26 = scalar_lea.sflag [#allocation10], %s8642_s4  ;;  %s7156_s19 = int_to_ptr.vmem [resolvable:$true] %s537_s19 }
  0x86   : > { %s6735_s10 = scalar_lea.hbm %s7153_s1, 1024  ;;  %s6740_s14 = scalar_lea.hbm %s8577_s3, 2048 }
  0x87   : > { %p6736_p3 = scmp.ne.s32.totalorder %s7153_s1, %s6735_s10  ;;  %p6741_p9 = scmp.lt.s32.totalorder %s7153_s1, %s8577_s3 }
  0x88   : > { %p6742_p10 = scmp.lt.s32.totalorder %s6740_s14, %s6735_s10 }
  0x89   : > { %p6738_p7 = pnand %p6736_p3, %p7062_p11 }
  0x8a   : > { %p6743_p1 = por %p6742_p10, %p6741_p9 }
  0x8b   : > { %p6739_p8 = pneg %p6738_p7 }
  0x8d   : > { %p6744_p5 = pnand %p6743_p1, %p6739_p8 }
  0x8f   : > { %6747 = shalt.err (!%p6744_p5)
}
  0x90   : > { %s6748_s28 = scalar_lea.vmem %s7156_s19, 1024  ;;  %s6849_s12 = smov [#allocation9]  }
  0x91   : > { %p6749_p12 = scmp.ne.s32.totalorder %s7156_s19, %s6748_s28  ;;  %s6753_s17 = sshll.u32 %s6849_s12, 4  ;;  %s6754_s17 = int_to_ptr.vmem [resolvable:$false] %s6753_s17 }
  0x92   : > { %s6755_s27 = scalar_lea.vmem %s6754_s17, 2048  ;;  %p6756_p0 = scmp.lt.s32.totalorder %s7156_s19, %s6754_s17 }
  0x93   : > { %p6751_p4 = pnand %p6749_p12, %p7062_p11  ;;  %p6757_p2 = scmp.lt.s32.totalorder %s6755_s27, %s6748_s28 }
  0x95   : > { %p6752_p13 = pneg %p6751_p4  ;;  %p6758_p3 = por %p6757_p2, %p6756_p0 }
  0x97   : > { %p6759_p7 = pnand %p6758_p3, %p6752_p13 }
  0x99   : > { %6762 = shalt.err (!%p6759_p7)
}
  0x9a   : > { %6359 = dma.hbm_to_vmem [thread:$0]  (!%p7040_p6), %s7153_s1, 1024, %s7156_s19, %s527_s26, %s8640_s9, %s8640_s9, %s8641_s0  }
  0x9b   : > { %p8643_p11 = scmp.ne.s32.totalorder %s8632_s18, 0 }
  0x9d   : > { %556 = sbr.rel (%p8643_p11) target bundleno = 1650 (0x672), region = 80 }
  0xa2   : > { %s7186_s24 = sand.u32 1, %s6831_s21   ;;  %p8644_p8 = scmp.ne.s32.totalorder %s8627_s30, 0 }
  0xa3   : > { %s5547_s4 = sshll.u32 %s7186_s24, 6  ;;  %s559_s10 = scalar_lea.sflag [#allocation4], %s7186_s24 }
  0xa4   : > { %s7190_s29 = scalar_lea.vmem [#allocation3], %s5547_s4 }
  0xa5   : > { %6806 = dma.done.wait (%p8644_p8), %s559_s10, 1024  }
  0xa6   : > { %6808 = vsyncadd (%p8644_p8), %s559_s10, 4294966272  ;;  %s567_s25 = sand.u32 1, %s6968_s13   ;;  %s7197_s9 = scalar_lea.vmem [#allocation6], %s5547_s4 }
  0xa7   : > { %s568_s18 = scalar_lea.sflag [#allocation7], %s567_s25 }
  0xa8   : > { %6810 = dma.done.wait (%p8644_p8), %s568_s18, 2048  }
  0xa9   : > { %6812 = vsyncadd (%p8644_p8), %s568_s18, 4294965248  ;;  %s7203_s0 = scalar_lea.vmem [#allocation8], %s5547_s4  ;;  %s586_s1 = scalar_lea.sflag [#allocation10], %s567_s25 }
  0xaa   : > { %s7205_s19 = scalar_lea.vmem [#allocation9], %s5547_s4 }
  0xab   : > { %6814 = dma.done.wait (%p8644_p8), %s586_s1, 1024  }
  0xac   : > { %6816 = vsyncadd (%p8644_p8), %s586_s1, 4294966272  ;;  %p8645_p6 = scmp.eq.s32.totalorder %s6968_s13, 0 }
  0xae   : > { %6818 = dma.done.wait (%p8645_p6), [#allocation10], 256   ;;  %p8646_p9 = pmov %p8645_p6 }
  0xaf   : > { %v6422_v1 = vld [vmem:[%s8581_s7 + $0x8] sm:$0xff]   ;;  %v6423_v2 = vld [vmem:[%s8581_s7] sm:$0xff]   ;;  %vm739_vm0 = vcmask 261120   ;;  %v682_v7 = vld [vmem:[%s7197_s9 + $0x10] sm:$0xff]  ;;  %v8609_v43 = vmov 0.0   ;;  %vm6851_vm1 = vmmov 0  }
  0xb0   : > { %6820 = vsyncadd (%p8646_p9), [#allocation10], 4294967040  ;;  %5897 = vmatprep.subr.bf16.mxu1 %v6422_v1  ;;  %v680_v3 = vld [vmem:[%s7197_s9] sm:$0xff]  ;;  %v681_v4 = vld [vmem:[%s7197_s9 + $0x8] sm:$0xff]  ;;  %v6852_v44 = vmov 32   ;;  %vm1640_vm2 = vcmask 64512  }
  0xb1   : > { %5898 = vmatpush3.bf16.msra.mxu1 %v6422_v1  ;;  %v688_v5 = vpack.c.bf16 %v681_v4, %v680_v3  ;;  %v6424_v6 = vld [vmem:[%s8579_s5 + $0x8] sm:$0xff]   ;;  %v683_v8 = vld [vmem:[%s7197_s9 + $0x18] sm:$0xff]  ;;  %v670_v16 = vld [vmem:[%s7190_s29 + $0x10] sm:$0xff]  ;;  %6419 = vset.pattern.permute.xlu1 %v6852_v44  ;;  %vm1182_vm3 = vcmask 269568   ;;  %s8647_s1 = sld [smem:[#allocation34_spill]]  ;;  %s6853_s16 = smov 120  }
  0xb2   : > { %5899 = vmatprep.subr.bf16.mxu1 %v6423_v2  ;;  %5885 = vmatprep.subr.bf16.mxu0 %v6424_v6  ;;  %v6425_v9 = vld [vmem:[%s8579_s5] sm:$0xff]   ;;  %v669_v11 = vld [vmem:[%s7190_s29 + $0x8] sm:$0xff]  ;;  %v689_v12 = vpack.c.bf16 %v683_v8, %v682_v7  ;;  %v686_v22 = vld [vmem:[%s7197_s9 + $0x30] sm:$0xff]  ;;  %s8648_s30 = sld [smem:[#allocation36_spill]]  ;;  %s6854_s28 = smov 112   ;;  %vm3623_vm4 = vcmask 1043456  }
  0xb3   : > { %5901 = vmatprep.mubr.msk.bf16.mxu1 %vm739_vm0, %v688_v5  ;;  %v668_v10 = vld [vmem:[%s7190_s29] sm:$0xff]  ;;  %5886 = vmatpush3.bf16.msra.mxu0 %v6424_v6  ;;  %v685_v15 = vld [vmem:[%s7197_s9 + $0x28] sm:$0xff]  ;;  %v671_v18 = vld [vmem:[%s7190_s29 + $0x18] sm:$0xff]  ;;  %s6855_s12 = smov 104   ;;  %p663_p10 = scmp.lt.s32.totalorder %s6968_s13, 1  ;;  %vm5349_vm5 = vcmask 523264  }
  0xb4   : > { %v676_v13 = vpack.c.bf16 %v669_v11, %v668_v10  ;;  %v684_v14 = vld [vmem:[%s7197_s9 + $0x20] sm:$0xff]  ;;  %5887 = vmatprep.subr.bf16.mxu0 %v6425_v9  ;;  %v6426_v19 = vld [vmem:[#allocation11 + $0x8] sm:$0xff]   ;;  %v677_v20 = vpack.c.bf16 %v671_v18, %v670_v16  ;;  %v687_v23 = vld [vmem:[%s7197_s9 + $0x38] sm:$0xff]  ;;  %6418 = vset.pattern.permute.xlu0 %v6852_v44  ;;  %s6857_s18 = smov 96   ;;  %s6858_s9 = smov 64   ;;  %vm5351_vm6 = vcmask 785408  }
  0xb5   : > { %5900 = vmatpush3.bf16.msra.mxu1 %v6423_v2  ;;  %v690_v17 = vpack.c.bf16 %v685_v15, %v684_v14  ;;  %v6427_v21 = vld [vmem:[#allocation11] sm:$0xff]   ;;  %v705_v25 = vld [vmem:[%s7205_s19 + $0x8] sm:$0xff]  ;;  %v674_v28 = vld [vmem:[%s7190_s29 + $0x30] sm:$0xff]  ;;  %v691_v30 = vpack.c.bf16 %v687_v23, %v686_v22  ;;  %s664_s17 = scalar_select %p663_p10, %s6968_s13, 1 }
  0xb6   : > { %5889 = vmatprep.mubr.msk.bf16.mxu0 %vm739_vm0, %v676_v13  ;;  %5921 = vmatprep.subr.bf16.mxu1 %v6426_v19  ;;  %v704_v24 = vld [vmem:[%s7205_s19] sm:$0xff]  ;;  %v673_v27 = vld [vmem:[%s7190_s29 + $0x28] sm:$0xff]  ;;  %v675_v29 = vld [vmem:[%s7190_s29 + $0x38] sm:$0xff]  ;;  %s8665_s14 = sld [smem:[#allocation37_spill]]  ;;  %s5552_s15 = sshll.u32 %s7186_s24, 4 }
  0xb7   : > { %5888 = vmatpush3.bf16.msra.mxu0 %v6425_v9  ;;  %v672_v26 = vld [vmem:[%s7190_s29 + $0x20] sm:$0xff]  ;;  %v712_v32 = vpack.c.bf16 %v705_v25, %v704_v24  ;;  %v679_v33 = vpack.c.bf16 %v675_v29, %v674_v28  ;;  %v706_v34 = vld [vmem:[%s7205_s19 + $0x10] sm:$0xff]  ;;  %v707_v35 = vld [vmem:[%s7205_s19 + $0x18] sm:$0xff]  ;;  %s5553_s27 = sshll.u32 %s664_s17, 3  ;;  %s8650_s29 = sld [smem:[#allocation33_spill]] }
  0xb8   : > { %5902 = vmatmul.mubr.msk.bf16.vlgmr.msra.gmra.mxu1 %vm739_vm0, %v689_v12  ;;  %v678_v31 = vpack.c.bf16 %v673_v27, %v672_v26  ;;  %v708_v36 = vld [vmem:[%s7205_s19 + $0x20] sm:$0xff]  ;;  %v709_v37 = vld [vmem:[%s7205_s19 + $0x28] sm:$0xff]  ;;  %v713_v38 = vpack.c.bf16 %v707_v35, %v706_v34  ;;  %v710_v40 = vld [vmem:[%s7205_s19 + $0x30] sm:$0xff]  ;;  %s8669_s4 = sld [smem:[#allocation38_spill]] }
  0xb9   : > { %5905 = vmatprep.mubr.msk.bf16.mxu1 %vm739_vm0, %v690_v17  ;;  %5922 = vmatpush3.bf16.msra.mxu1 %v6426_v19  ;;  %v714_v39 = vpack.c.bf16 %v709_v37, %v708_v36  ;;  %v711_v41 = vld [vmem:[%s7205_s19 + $0x38] sm:$0xff]  ;;  %s6859_s19 = smov 32  }
  0xba   : > { %5890 = vmatmul.mubr.msk.bf16.vlgmr.msra.gmra.mxu0 %vm739_vm0, %v677_v20  ;;  %5923 = vmatprep.subr.bf16.mxu1 %v6427_v21  ;;  %v715_v42 = vpack.c.bf16 %v711_v41, %v710_v40  ;;  %v7271_v46 = vld [vmem:[%s8582_s8] ss:$0 sm:$0xff] }
  0xbb   : > { %5893 = vmatprep.mubr.msk.bf16.mxu0 %vm739_vm0, %v678_v31  ;;  %v7281_v54 = vld [vmem:[%s8580_s6] ss:$0 sm:$0xff] }
  0xbc   : > { %v7302_v4 = vld [vmem:[%s8585_s11] ss:$0 sm:$0xff] }
  0xbd   : > { %5924 = vmatpush3.bf16.msra.mxu1 %v6427_v21  ;;  %s666_s25 = scalar_lea.vmem %s8650_s29, %s5553_s27 }
  0xbe   : > { %5945 = vmatprep.subr.bf16.mxu1 %v8609_v43 }
  0xc0   : > { %5906 = vmatmul.mubr.msk.bf16.gmra.mxu1 %vm739_vm0, %v691_v30 }
  0xc1   : > { %5925 = vmatprep.mubr.msk.bf16.mxu1 %vm739_vm0, %v712_v32 }
  0xc2   : > { %5894 = vmatmul.mubr.msk.bf16.gmra.mxu0 %vm739_vm0, %v679_v33 }
  0xc8   : > { %5926 = vmatmul.mubr.msk.bf16.vlgmr.msra.gmra.mxu1 %vm739_vm0, %v713_v38 }
  0xc9   : > { %5929 = vmatprep.mubr.msk.bf16.mxu1 %vm739_vm0, %v714_v39 }
  0xd0   : > { %5930 = vmatmul.mubr.msk.bf16.gmra.mxu1 %vm739_vm0, %v715_v42 }
  0xd1   : > { %5947 = vmatprep.mubr.msk.bf16.mxu1 %vm6851_vm1, %v8609_v43 }
 0x178   : > { %v7266_v45 = vpop.f32.mrf.mxu1 }
 0x17a   : > { %v910_v47 = vpop.f32.mrf.mxu1  ;;  %v7274_v49 = vpop.f32.mrf.mxu0 }
 0x17b   : > { %v911_v48 = vadd.f32 %v7271_v46, %v910_v47 }
 0x17c   : > { %v5904_v50 = vpop.f32.mrf.mxu1  ;;  %v786_v52 = vpop.f32.mrf.mxu0 }
 0x17d   : > { %v7276_v51 = vpack.c.bf16 %v911_v48, %v911_v48  ;;  %v787_v60 = vadd.f32 %v7281_v54, %v786_v52  ;;  %v922_v5 = vadd.f32 %v5904_v50, %v7271_v46 }
 0x17e   : > { %v913_v53 = vpop.f32.mrf.mxu1  ;;  %v5892_v57 = vpop.f32.mrf.mxu0 }
 0x17f   : > { %v914_v55 = vadd.f32 %v7271_v46, %v913_v53  ;;  %v1645_v56 = vsel %vm1640_vm2, %v7276_v51, 0  ;;  %v7297_v2 = vpack.c.bf16 %v787_v60, %v787_v60  ;;  %v7318_v12 = vpack.c.bf16 %v922_v5, %v922_v5 }
 0x180   : > { %v5907_v58 = vpop.f32.mrf.mxu1  ;;  %5946 = vmatpush3.bf16.xpose.msra.mxu1 %v1645_v56  ;;  %v789_v62 = vpop.f32.mrf.mxu0  ;;  %v798_v15 = vadd.f32 %v5892_v57, %v7281_v54 }
 0x181   : > { %v7287_v59 = vadd.f32 %v5907_v58, %v7271_v46  ;;  %5951 = vmatprep.subr.bf16.mxu1 %v8609_v43  ;;  %v7293_v63 = vpack.c.bf16 %v914_v55, %v914_v55  ;;  %v790_v10 = vadd.f32 %v7281_v54, %v789_v62  ;;  %v1783_v29 = vsel %vm1640_vm2, %v7318_v12, 0 }
 0x182   : > { %v7291_v61 = vpop.f32.mrf.mxu1  ;;  %v7295_v1 = vpop.f32.mrf.mxu0  ;;  %v7350_v36 = vpack.c.bf16 %v798_v15, %v798_v15 }
 0x183   : > { %v1691_v6 = vsel %vm1640_vm2, %v7293_v63, 0  ;;  %v7329_v20 = vpack.c.bf16 %v790_v10, %v790_v10 }
 0x184   : > { %v5908_v0 = vpop.f32.mrf.mxu1  ;;  %v7311_v8 = vpop.f32.mrf.mxu0 }
 0x185   : > { %v938_v26 = vadd.f32 %v5908_v0, %v7271_v46 }
 0x186   : > { %v929_v3 = vpop.f32.mrf.mxu1  ;;  %v7326_v18 = vpop.f32.mrf.mxu0 }
 0x187   : > { %5948 = vmatmul.mubr.msk.bf16.vlgmr.msra.gmra.mxu1 %vm1640_vm2, %v7297_v2  ;;  %v930_v19 = vadd.f32 %v7271_v46, %v929_v3  ;;  %v7358_v47 = vpack.c.bf16 %v938_v26, %v938_v26 }
 0x188   : > { %v5927_v7 = vpop.f32.mrf.mxu1  ;;  %5952 = vmatpush3.bf16.xpose.msra.mxu1 %v1691_v6  ;;  %5953 = vmatprep.mubr.msk.bf16.mxu1 %vm6851_vm1, %v8609_v43  ;;  %v805_v34 = vpop.f32.mrf.mxu0 }
 0x189   : > { %v7314_v9 = vadd.f32 %v5927_v7, %v7302_v4  ;;  %5963 = vmatprep.subr.bf16.mxu1 %v8609_v43  ;;  %v7348_v35 = vpack.c.bf16 %v930_v19, %v930_v19  ;;  %v806_v52 = vadd.f32 %v7281_v54, %v805_v34 }
 0x18a   : > { %v1151_v11 = vpop.f32.mrf.mxu1 }
 0x18b   : > { %v1197_v13 = vsel %vm1182_vm3, %v7314_v9, 0.0  ;;  %v7323_v14 = vadd.f32 %v7302_v4, %v1151_v11  ;;  %v1875_v0 = vsel %vm1640_vm2, %v7348_v35, 0 }
 0x18c   : > { %v1198_v16 = vrot.slane %v1197_v13, 4  ;;  %v5928_v17 = vpop.f32.mrf.mxu1 }
 0x18d   : > { %v1183_v21 = vsel %vm1182_vm3, %v7323_v14, 0.0  ;;  %v7334_v22 = vadd.f32 %v5928_v17, %v7302_v4 }
 0x18e   : > { %v1199_v23 = vadd.f32 %v1198_v16, %v1197_v13  ;;  %v1184_v24 = vrot.slane %v1183_v21, 4  ;;  %v1154_v25 = vpop.f32.mrf.mxu1 }
 0x18f   : > { %v1204_v27 = vsel %vm1182_vm3, %v7334_v22, 0.0  ;;  %v7340_v28 = vadd.f32 %v7302_v4, %v1154_v25  ;;  %5954 = vmatmul.mubr.msk.bf16.vlgmr.msra.gmra.mxu1 %vm1640_vm2, %v7329_v20 }
 0x190   : > { %v1200_v30 = vrot.slane %v1199_v23, 2  ;;  %v1185_v31 = vadd.f32 %v1184_v24, %v1183_v21  ;;  %v1205_v32 = vrot.slane %v1204_v27, 4  ;;  %v5931_v33 = vpop.f32.mrf.mxu1  ;;  %5964 = vmatpush3.bf16.xpose.msra.mxu1 %v1783_v29  ;;  %5965 = vmatprep.mubr.msk.bf16.mxu1 %vm6851_vm1, %v8609_v43 }
 0x191   : > { %v1190_v37 = vsel %vm1182_vm3, %v7340_v28, 0.0  ;;  %v7355_v38 = vadd.f32 %v5931_v33, %v7302_v4  ;;  %5975 = vmatprep.subr.bf16.mxu1 %v8609_v43  ;;  %v7385_v33 = vpack.c.bf16 %v806_v52, %v806_v52 }
 0x192   : > { %v1186_v39 = vrot.slane %v1185_v31, 2  ;;  %v1206_v40 = vadd.f32 %v1205_v32, %v1204_v27  ;;  %v1191_v41 = vrot.slane %v1190_v37, 4  ;;  %v1167_v42 = vpop.f32.mrf.mxu1  ;;  %v1201_v44 = vadd.f32 %v1200_v30, %v1199_v23 }
 0x193   : > { %v1225_v48 = vsel %vm1182_vm3, %v7355_v38, 0.0  ;;  %v7363_v50 = vadd.f32 %v7302_v4, %v1167_v42 }
 0x194   : > { %v1207_v53 = vrot.slane %v1206_v40, 2  ;;  %v1192_v55 = vadd.f32 %v1191_v41, %v1190_v37  ;;  %v1226_v56 = vrot.slane %v1225_v48, 4  ;;  %v5932_v57 = vpop.f32.mrf.mxu1  ;;  %v1202_v58 = vrot.slane %v1201_v44, 1 }
 0x195   : > { %v1211_v60 = vsel %vm1182_vm3, %v7363_v50, 0.0  ;;  %v7369_v62 = vadd.f32 %v5932_v57, %v7302_v4  ;;  %v1187_v3 = vadd.f32 %v1186_v39, %v1185_v31 }
 0x196   : > { %v1208_v5 = vadd.f32 %v1207_v53, %v1206_v40  ;;  %v1193_v6 = vrot.slane %v1192_v55, 2  ;;  %v1227_v7 = vadd.f32 %v1226_v56, %v1225_v48  ;;  %v1212_v10 = vrot.slane %v1211_v60, 4  ;;  %v1170_v11 = vpop.f32.mrf.mxu1 }
 0x197   : > { %v1232_v13 = vsel %vm1182_vm3, %v7369_v62, 0.0  ;;  %v7376_v15 = vadd.f32 %v7302_v4, %v1170_v11  ;;  %5966 = vmatmul.mubr.msk.bf16.vlgmr.msra.gmra.mxu1 %vm1640_vm2, %v7350_v36  ;;  %v1203_v16 = vadd.f32 %v1202_v58, %v1201_v44  ;;  %v1188_v17 = vrot.slane %v1187_v3, 1 }
 0x198   : > { %v1228_v19 = vrot.slane %v1227_v7, 2  ;;  %v1213_v21 = vadd.f32 %v1212_v10, %v1211_v60  ;;  %v1233_v23 = vrot.slane %v1232_v13, 4  ;;  %5976 = vmatpush3.bf16.xpose.msra.mxu1 %v1875_v0  ;;  %v1209_v24 = vrot.slane %v1208_v5, 1  ;;  %5977 = vmatprep.mubr.msk.bf16.mxu1 %vm6851_vm1, %v8609_v43 }
 0x199   : > { %v1218_v25 = vsel %vm1182_vm3, %v7376_v15, 0.0  ;;  %v1242_v26 = vmul.f32 0.125, %v1203_v16  ;;  %v1189_v27 = vadd.f32 %v1188_v17, %v1187_v3  ;;  %5987 = vmatprep.subr.bf16.mxu1 %v8609_v43  ;;  %v1194_v4 = vadd.f32 %v1193_v6, %v1192_v55  ;;  %v6428_v16 = vld [vmem:[%s8647_s1 + $0x8] sm:$0xff]  }
 0x19a   : > { %v1229_v29 = vadd.f32 %v1228_v19, %v1227_v7  ;;  %v1214_v30 = vrot.slane %v1213_v21, 2  ;;  %v1234_v31 = vadd.f32 %v1233_v23, %v1232_v13  ;;  %v1219_v32 = vrot.slane %v1218_v25, 4  ;;  %5909 = vmatprep.subr.bf16.mxu0 %v6428_v16 }
 0x19b   : > { %1260 = vperm.xlu1 %6419, %v1242_v26   ;;  %v1240_v34 = vmul.f32 0.125, %v1189_v27  ;;  %v1210_v37 = vadd.f32 %v1209_v24, %v1208_v5  ;;  %v1195_v39 = vrot.slane %v1194_v4, 1  ;;  %v814_v58 = vadd.f32 %v7326_v18, %v7281_v54  ;;  %5910 = vmatpush3.bf16.msra.mxu0 %v6428_v16  ;;  %v692_v24 = vld [vmem:[%s7203_s0] sm:$0xff]  ;;  %v694_v27 = vld [vmem:[%s7203_s0 + $0x10] sm:$0xff] }
 0x19c   : > { %v1215_v40 = vadd.f32 %v1214_v30, %v1213_v21  ;;  %v1235_v41 = vrot.slane %v1234_v31, 2  ;;  %v1220_v42 = vadd.f32 %v1219_v32, %v1218_v25  ;;  %v1230_v53 = vrot.slane %v1229_v29, 1  ;;  %v6429_v21 = vld [vmem:[%s8647_s1] sm:$0xff]   ;;  %v693_v25 = vld [vmem:[%s7203_s0 + $0x8] sm:$0xff] }
 0x19d   : > { %1250 = vperm.xlu0 %6418, %v1240_v34   ;;  %v1243_v44 = vmul.f32 0.125, %v1210_v37  ;;  %v1196_v48 = vadd.f32 %v1195_v39, %v1194_v4  ;;  %v1967_v60 = vsel %vm1640_vm2, %v7358_v47, 0  ;;  %v7396_v10 = vpack.c.bf16 %v814_v58, %v814_v58  ;;  %5911 = vmatprep.subr.bf16.mxu0 %v6429_v21  ;;  %v695_v4 = vld [vmem:[%s7203_s0 + $0x18] sm:$0xff]  ;;  %v696_v34 = vld [vmem:[%s7203_s0 + $0x20] sm:$0xff]  ;;  %v697_v37 = vld [vmem:[%s7203_s0 + $0x28] sm:$0xff] }
 0x19e   : > { %v1236_v56 = vadd.f32 %v1235_v41, %v1234_v31  ;;  %v1221_v57 = vrot.slane %v1220_v42, 2  ;;  %v1216_v55 = vrot.slane %v1215_v40, 1  ;;  %v1231_v5 = vadd.f32 %v1230_v53, %v1229_v29 }
 0x19f   : > { %1265 = vperm.xlu1 %6419, %v1243_v44   ;;  %5978 = vmatmul.mubr.msk.bf16.vlgmr.msra.gmra.mxu1 %vm1640_vm2, %v7385_v33  ;;  %v1241_v52 = vmul.f32 0.125, %v1196_v48  ;;  %v700_v26 = vpack.c.bf16 %v693_v25, %v692_v24  ;;  %v701_v29 = vpack.c.bf16 %v695_v4, %v694_v27  ;;  %v919_v30 = vadd.f32 %v7266_v45, %v7271_v46  ;;  %v698_v45 = vld [vmem:[%s7203_s0 + $0x30] sm:$0xff] }
 0x1a0   : > { %5988 = vmatpush3.bf16.xpose.msra.mxu1 %v1967_v60  ;;  %v1217_v0 = vadd.f32 %v1216_v55, %v1215_v40  ;;  %5989 = vmatprep.mubr.msk.bf16.mxu1 %vm6851_vm1, %v8609_v43  ;;  %v1222_v3 = vadd.f32 %v1221_v57, %v1220_v42  ;;  %v1237_v7 = vrot.slane %v1236_v56, 1  ;;  %v1246_v13 = vmul.f32 0.125, %v1231_v5  ;;  %v699_v40 = vld [vmem:[%s7203_s0 + $0x38] sm:$0xff]  ;;  %s658_s0 = scalar_lea.vmem [#allocation12], %s5552_s15 }
 0x1a1   : > { %1255 = vperm.xlu0 %6418, %v1241_v52   ;;  %5999 = vmatprep.subr.bf16.mxu1 %v8609_v43  ;;  %v7422_v31 = vpack.c.bf16 %v919_v30, %v919_v30  ;;  %v795_v32 = vadd.f32 %v7274_v49, %v7281_v54  ;;  %v702_v39 = vpack.c.bf16 %v697_v37, %v696_v34  ;;  %v6430_v49 = vld [vmem:[%s8648_s30 + $0x8] sm:$0xff]   ;;  %s5373_s20 = sshll.u32 %s658_s0, 4  ;;  %s8533_s20 = int_to_ptr.vmem [resolvable:$true] %s5373_s20 }
 0x1a2   : > { %v1244_v6 = vmul.f32 0.125, %v1217_v0  ;;  %v1223_v18 = vrot.slane %v1222_v3, 1  ;;  %v1238_v19 = vadd.f32 %v1237_v7, %v1236_v56  ;;  %5912 = vmatpush3.bf16.msra.mxu0 %v6429_v21  ;;  %5913 = vmatprep.mubr.msk.bf16.mxu0 %vm739_vm0, %v700_v26  ;;  %v703_v41 = vpack.c.bf16 %v699_v40, %v698_v45  ;;  %s6763_s29 = scalar_lea.vmem %s8533_s20, 256 }
 0x1a3   : > { %v7435_v42 = vpack.c.bf16 %v795_v32, %v795_v32  ;;  %v927_v44 = vadd.f32 %v7271_v46, %v7291_v61  ;;  %v803_v48 = vadd.f32 %v7281_v54, %v7311_v8  ;;  %5933 = vmatprep.subr.bf16.mxu0 %v6430_v49  ;;  %v6431_v46 = vld [vmem:[%s8648_s30] sm:$0xff]   ;;  %v811_v8 = vadd.f32 %v7295_v1, %v7281_v54  ;;  %p6764_p1 = scmp.ne.s32.totalorder %s8533_s20, %s6763_s29 }
 0x1a4   : > { %v1224_v11 = vadd.f32 %v1223_v18, %v1222_v3  ;;  %v1247_v23 = vmul.f32 0.125, %v1238_v19  ;;  %v7469_v56 = vpack.c.bf16 %v7287_v59, %v7287_v59  ;;  %v6856_v19 = vmov 1966171168  }
 0x1a5   : > { %1270 = vperm.xlu0 %6418, %v1244_v6   ;;  %5914 = vmatmul.mubr.msk.bf16.vlgmr.msra.gmra.mxu0 %vm739_vm0, %v701_v29  ;;  %v7449_v53 = vpack.c.bf16 %v927_v44, %v927_v44  ;;  %v7456_v61 = vpack.c.bf16 %v803_v48, %v803_v48  ;;  %v7473_v57 = vpack.c.bf16 %v811_v8, %v811_v8  ;;  %v3117_v21 = vunpack.c.l.s4 %v6856_v19  ;;  %v7542_v44 = vld [vmem:[%s666_s25] sm:$0xff]  ;;  %s6863_s25 = smov [#allocation12]  }
 0x1a6   : > { %v1245_v17 = vmul.f32 0.125, %v1224_v11  ;;  %5917 = vmatprep.mubr.msk.bf16.mxu0 %vm739_vm0, %v702_v39  ;;  %5934 = vmatpush3.bf16.msra.mxu0 %v6430_v49 }
 0x1a7   : > { %5990 = vmatmul.mubr.msk.bf16.vlgmr.msra.gmra.mxu1 %vm1640_vm2, %v7396_v10  ;;  %5935 = vmatprep.subr.bf16.mxu0 %v6431_v46  ;;  %v3118_v29 = vunpack.c.0.s8 %v3117_v21 }
 0x1a8   : > { %1275 = vperm.xlu1 %6419, %v1245_v17   ;;  %6001 = vmatprep.mubr.msk.bf16.mxu1 %vm6851_vm1, %v8609_v43 }
 0x1a9   : > { %1280 = vperm.xlu0 %6418, %v1246_v13  }
 0x1aa   : > { %5936 = vmatpush3.bf16.msra.mxu0 %v6431_v46 }
 0x1ab   : > { %5957 = vmatprep.subr.bf16.mxu0 %v8609_v43 }
 0x1ac   : > { %1285 = vperm.xlu1 %6419, %v1247_v23   ;;  %v3119_v23 = vlaneseq }
 0x1ad   : > { %1544 = vrot.lane.b32.xlu0 %v7276_v51, %s6853_s16  ;;  %5918 = vmatmul.mubr.msk.bf16.gmra.mxu0 %vm739_vm0, %v703_v41 }
 0x1ae   : > { %v7531_v30 = vshrl.u32 %v3119_v23, 7 }
 0x1b0   : > { %1546 = vrot.lane.b32.xlu1 %v7293_v63, %s6853_s16  ;;  %8649 = vst [vmem:[#allocation23_spill] sm:$0xff] %v7531_v30  ;;  %v7540_v40 = vsub.s32 %v3118_v29, %v7531_v30 }
 0x1b1   : > { %1496 = vrot.lane.b32.xlu0 %v7297_v2, %s6853_s16 }
 0x1b4   : > { %1498 = vrot.lane.b32.xlu1 %v7329_v20, %s6853_s16 }
 0x1b5   : > { %1548 = vrot.lane.b32.xlu0 %v7422_v31, %s6853_s16 }
 0x1b8   : > { %1550 = vrot.lane.b32.xlu1 %v7318_v12, %s6853_s16 }
 0x1b9   : > { %1500 = vrot.lane.b32.xlu0 %v7435_v42, %s6853_s16 }
 0x1bc   : > { %1502 = vrot.lane.b32.xlu1 %v7350_v36, %s6853_s16 }
 0x1bd   : > { %1552 = vrot.lane.b32.xlu0 %v7449_v53, %s6853_s16 }
 0x1c0   : > { %1554 = vrot.lane.b32.xlu1 %v7348_v35, %s6853_s16 }
 0x1c1   : > { %1504 = vrot.lane.b32.xlu0 %v7456_v61, %s6853_s16 }
 0x1c4   : > { %1506 = vrot.lane.b32.xlu1 %v7385_v33, %s6853_s16 }
 0x1c5   : > { %1556 = vrot.lane.b32.xlu0 %v7469_v56, %s6853_s16 }
 0x1c8   : > { %1558 = vrot.lane.b32.xlu1 %v7358_v47, %s6853_s16 }
 0x1c9   : > { %1508 = vrot.lane.b32.xlu0 %v7473_v57, %s6853_s16 }
 0x1cc   : > { %1510 = vrot.lane.b32.xlu1 %v7396_v10, %s6853_s16 }
 0x1cd   : > { %1560 = vrot.lane.b32.xlu0 %v7276_v51, %s6854_s28 }
 0x1d0   : > { %1562 = vrot.lane.b32.xlu1 %v7293_v63, %s6854_s28 }
 0x1d1   : > { %1512 = vrot.lane.b32.xlu0 %v7297_v2, %s6854_s28 }
 0x1d4   : > { %1514 = vrot.lane.b32.xlu1 %v7329_v20, %s6854_s28 }
 0x1d5   : > { %1564 = vrot.lane.b32.xlu0 %v7422_v31, %s6854_s28 }
 0x1d8   : > { %1566 = vrot.lane.b32.xlu1 %v7318_v12, %s6854_s28 }
 0x1d9   : > { %1516 = vrot.lane.b32.xlu0 %v7435_v42, %s6854_s28 }
 0x1dc   : > { %1518 = vrot.lane.b32.xlu1 %v7350_v36, %s6854_s28 }
 0x1dd   : > { %1568 = vrot.lane.b32.xlu0 %v7449_v53, %s6854_s28 }
 0x1e0   : > { %1570 = vrot.lane.b32.xlu1 %v7348_v35, %s6854_s28 }
 0x1e1   : > { %1520 = vrot.lane.b32.xlu0 %v7456_v61, %s6854_s28 }
 0x1e4   : > { %1522 = vrot.lane.b32.xlu1 %v7385_v33, %s6854_s28 }
 0x1e5   : > { %1572 = vrot.lane.b32.xlu0 %v7469_v56, %s6854_s28 }
 0x1e8   : > { %1574 = vrot.lane.b32.xlu1 %v7358_v47, %s6854_s28 }
 0x1e9   : > { %1524 = vrot.lane.b32.xlu0 %v7473_v57, %s6854_s28 }
 0x1ec   : > { %1526 = vrot.lane.b32.xlu1 %v7396_v10, %s6854_s28  ;;  %s5726_s28 = sshll.u32 %s6968_s13, 8  ;;  %s5359_s13 = scalar_lea.sflag [#allocation5], %s7186_s24 }
 0x1ed   : > { %1576 = vrot.lane.b32.xlu0 %v7276_v51, %s6855_s12  ;;  %s8531_s10 = scalar_lea.hbm %s8669_s4, %s5726_s28 }
 0x1f0   : > { %1578 = vrot.lane.b32.xlu1 %v7293_v63, %s6855_s12 }
 0x1f1   : > { %1528 = vrot.lane.b32.xlu0 %v7297_v2, %s6855_s12 }
 0x1f4   : > { %1530 = vrot.lane.b32.xlu1 %v7329_v20, %s6855_s12 }
 0x1f5   : > { %1580 = vrot.lane.b32.xlu0 %v7422_v31, %s6855_s12 }
 0x1f8   : > { %1582 = vrot.lane.b32.xlu1 %v7318_v12, %s6855_s12 }
 0x1f9   : > { %1532 = vrot.lane.b32.xlu0 %v7435_v42, %s6855_s12 }
 0x1fc   : > { %1534 = vrot.lane.b32.xlu1 %v7350_v36, %s6855_s12 }
 0x1fd   : > { %1584 = vrot.lane.b32.xlu0 %v7449_v53, %s6855_s12 }
 0x200   : > { %1586 = vrot.lane.b32.xlu1 %v7348_v35, %s6855_s12 }
 0x201   : > { %1536 = vrot.lane.b32.xlu0 %v7456_v61, %s6855_s12 }
 0x204   : > { %1538 = vrot.lane.b32.xlu1 %v7385_v33, %s6855_s12 }
 0x205   : > { %1588 = vrot.lane.b32.xlu0 %v7469_v56, %s6855_s12 }
 0x208   : > { %1590 = vrot.lane.b32.xlu1 %v7358_v47, %s6855_s12 }
 0x209   : > { %1540 = vrot.lane.b32.xlu0 %v7473_v57, %s6855_s12 }
 0x20c   : > { %1542 = vrot.lane.b32.xlu1 %v7396_v10, %s6855_s12  ;;  %s8668_s12 = sld [smem:[#allocation21_spill]] }
 0x212   : > { %p8670_p5 = scmp.ne.s32.totalorder %s8668_s12, 0 }
 0x214   : > { %p6765_p12 = pnand %p6764_p1, %p8670_p5 }
 0x216   : > { %v1261_v51 = vpop.permute.xlu1 %1260  ;;  %p6766_p4 = pneg %p6765_p12 }
 0x217   : > { %v1290_v54 = vadd.f32 %v1261_v51, %v7314_v9 }
 0x218   : > { %v1251_v59 = vpop.permute.xlu0 %1250 }
 0x219   : > { %v1288_v63 = vadd.f32 %v1251_v59, %v7323_v14  ;;  %v5607_v1 = vmul.f32 -1.442695, %v1290_v54  ;;  %v3122_v54 = vrot.slane %v7542_v44, %v7540_v40 }
 0x21a   : > { %v1266_v2 = vpop.permute.xlu1 %1265 }
 0x21b   : > { %v5605_v12 = vmul.f32 -1.442695, %v1288_v63  ;;  %v1291_v20 = vadd.f32 %v1266_v2, %v7334_v22 }
 0x21c   : > { %v1256_v35 = vpop.permute.xlu0 %1255 }
 0x21d   : > { %6433 = vpow2.f32 %v5605_v12  ;;  %v5608_v36 = vmul.f32 -1.442695, %v1291_v20  ;;  %v1289_v47 = vadd.f32 %v1256_v35, %v7340_v28 }
 0x21e   : > { %6435 = vpow2.f32 %v5607_v1 }
 0x21f   : > { %6437 = vpow2.f32 %v5608_v36  ;;  %v5606_v33 = vmul.f32 -1.442695, %v1289_v47  ;;  %v7556_v36 = vrot.slane %v3122_v54, %v7540_v40  ;;  %v7559_v47 = vsub.s32 0, %v7531_v30 }
 0x220   : > { %v1271_v55 = vpop.permute.xlu0 %1270 }
 0x221   : > { %6439 = vpow2.f32 %v5606_v33  ;;  %v1292_v9 = vadd.f32 %v1271_v55, %v7363_v50  ;;  %v1737_v33 = vsel %vm1640_vm2, %v7422_v31, 0 }
 0x223   : > { %v5609_v58 = vmul.f32 -1.442695, %v1292_v9  ;;  %v1276_v52 = vpop.permute.xlu1 %1275 }
 0x224   : > { %v1293_v14 = vadd.f32 %v1276_v52, %v7376_v15  ;;  %v1281_v60 = vpop.permute.xlu0 %1280  ;;  %v7569_v52 = vrot.slane %v7556_v36, %v7559_v47 }
 0x225   : > { %6441 = vpow2.f32 %v5609_v58  ;;  %v1294_v22 = vadd.f32 %v1281_v60, %v7355_v38 }
 0x226   : > { %v5610_v0 = vmul.f32 -1.442695, %v1293_v14  ;;  %v3130_v14 = vcombine.high %v3122_v54, %v3122_v54 }
 0x227   : > { %v5611_v3 = vmul.f32 -1.442695, %v1294_v22  ;;  %v1286_v5 = vpop.permute.xlu1 %1285 }
 0x228   : > { %6443 = vpow2.f32 %v5610_v0  ;;  %v1295_v28 = vadd.f32 %v1286_v5, %v7369_v62  ;;  %v7527_v27 = vpop.permute.xlu0 %1544 }
 0x229   : > { %6445 = vpow2.f32 %v5611_v3 }
 0x22a   : > { %v6434_v6 = vpop.eup %6433  ;;  %v5612_v18 = vmul.f32 -1.442695, %v1295_v28 }
 0x22b   : > { %v6436_v50 = vpop.eup %6435  ;;  %v1320_v7 = vadd.f32 1.0, %v6434_v6  ;;  %v1547_v10 = vpop.permute.xlu1 %1546  ;;  %v3152_v6 = vrot.slane %v3130_v14, %v7540_v40 }
 0x22c   : > { %v6438_v11 = vpop.eup %6437  ;;  %6447 = vpow2.f32 %v5612_v18  ;;  %v2059_v15 = vsel %vm1640_vm2, %v1547_v10, 0  ;;  %v1322_v16 = vadd.f32 1.0, %v6436_v50  ;;  %v7544_v48 = vpop.permute.xlu0 %1496 }
 0x22d   : > { %v1323_v13 = vadd.f32 1.0, %v6438_v11  ;;  %6000 = vmatpush3.bf16.xpose.msra.mxu1 %v2059_v15  ;;  %6449 = vrcp.f32 %v1320_v7 }
 0x22e   : > { %v6440_v38 = vpop.eup %6439  ;;  %6011 = vmatprep.subr.bf16.mxu1 %v8609_v43 }
 0x22f   : > { %v1321_v62 = vadd.f32 1.0, %v6440_v38  ;;  %v1499_v17 = vpop.permute.xlu1 %1498  ;;  %6451 = vrcp.f32 %v1323_v13  ;;  %v3115_v38 = vcombine.high %v7542_v44, %v7542_v44 }
 0x230   : > { %v7553_v20 = vpop.permute.xlu0 %1548 }
 0x231   : > { %6453 = vrcp.f32 %v1321_v62  ;;  %v7592_v62 = vrot.slane %v3152_v6, %v7559_v47 }
 0x232   : > { %v6442_v24 = vpop.eup %6441  ;;  %6455 = vrcp.f32 %v1322_v16 }
 0x233   : > { %v1324_v25 = vadd.f32 1.0, %v6442_v24  ;;  %v1551_v26 = vpop.permute.xlu1 %1550  ;;  %v3162_v24 = vcombine.high %v3152_v6, %v3152_v6 }
 0x234   : > { %v2151_v4 = vsel %vm1640_vm2, %v1551_v26, 0  ;;  %6002 = vmatmul.mubr.msk.bf16.vlgmr.msra.gmra.mxu1 %vm1640_vm2, %v1499_v17  ;;  %v7574_v31 = vpop.permute.xlu0 %1500 }
 0x235   : > { %v6444_v32 = vpop.eup %6443  ;;  %6012 = vmatpush3.bf16.xpose.msra.mxu1 %v2151_v4  ;;  %6013 = vmatprep.mubr.msk.bf16.mxu1 %vm6851_vm1, %v8609_v43  ;;  %6457 = vrcp.f32 %v1324_v25  ;;  %v7603_v25 = vrot.slane %v3115_v38, %v7540_v40 }
 0x236   : > { %v6446_v34 = vpop.eup %6445  ;;  %v1325_v37 = vadd.f32 1.0, %v6444_v32  ;;  %6023 = vmatprep.subr.bf16.mxu1 %v8609_v43 }
 0x237   : > { %v1326_v39 = vadd.f32 1.0, %v6446_v34  ;;  %v1503_v45 = vpop.permute.xlu1 %1502 }
 0x238   : > { %6459 = vrcp.f32 %v1325_v37  ;;  %v7584_v13 = vpop.permute.xlu0 %1552 }
 0x239   : > { %v6448_v41 = vpop.eup %6447  ;;  %6461 = vrcp.f32 %v1326_v39  ;;  %v1829_v39 = vsel %vm1640_vm2, %v7449_v53, 0 }
 0x23a   : > { %v1327_v49 = vadd.f32 1.0, %v6448_v41  ;;  %v6450_v8 = vpop.eup %6449  ;;  %v3131_v41 = vcombine.high %v7603_v25, %v7603_v25 }
 0x23b   : > { %v1555_v46 = vpop.permute.xlu1 %1554 }
 0x23c   : > { %6463 = vrcp.f32 %v1327_v49  ;;  %v2243_v51 = vsel %vm1640_vm2, %v1555_v46, 0  ;;  %6014 = vmatmul.mubr.msk.bf16.vlgmr.msra.gmra.mxu1 %vm1640_vm2, %v1503_v45  ;;  %v6452_v59 = vpop.eup %6451  ;;  %v7605_v4 = vpop.permute.xlu0 %1504  ;;  %v7616_v45 = vrot.slane %v3162_v24, %v7559_v47 }
 0x23d   : > { %6024 = vmatpush3.bf16.xpose.msra.mxu1 %v2243_v51  ;;  %6025 = vmatprep.mubr.msk.bf16.mxu1 %vm6851_vm1, %v8609_v43 }
 0x23e   : > { %v6454_v63 = vpop.eup %6453  ;;  %6035 = vmatprep.subr.bf16.mxu1 %v8609_v43 }
 0x23f   : > { %v6456_v1 = vpop.eup %6455  ;;  %v1507_v2 = vpop.permute.xlu1 %1506  ;;  %v1344_v12 = vpack.c.bf16 %v6454_v63, %v6450_v8  ;;  %v3159_v8 = vrot.slane %v3131_v41, %v7540_v40 }
 0x240   : > { %v1345_v35 = vpack.c.bf16 %v6452_v59, %v6456_v1  ;;  %v7626_v53 = vpop.permute.xlu0 %1556 }
 0x241   : > { %5937 = vmatprep.mubr.msk.bf16.mxu0 %vm739_vm0, %v1344_v12  ;;  %v7641_v12 = vrot.slane %v3159_v8, %v7559_v47 }
 0x242   : > { %5938 = vmatmul.mubr.msk.bf16.vlgmr.msra.gmra.mxu0 %vm739_vm0, %v1345_v35  ;;  %v6458_v9 = vpop.eup %6457 }
 0x243   : > { %5958 = vmatpush3.bf16.xpose.msra.mxu0 %v1737_v33  ;;  %v1559_v55 = vpop.permute.xlu1 %1558 }
 0x244   : > { %v2335_v58 = vsel %vm1640_vm2, %v1559_v55, 0  ;;  %6026 = vmatmul.mubr.msk.bf16.vlgmr.msra.gmra.mxu1 %vm1640_vm2, %v1507_v2  ;;  %5969 = vmatprep.subr.bf16.mxu0 %v8609_v43  ;;  %v1921_v2 = vsel %vm1640_vm2, %v7469_v56, 0  ;;  %v7643_v33 = vpop.permute.xlu0 %1508 }
 0x245   : > { %v6460_v60 = vpop.eup %6459  ;;  %6036 = vmatpush3.bf16.xpose.msra.mxu1 %v2335_v58  ;;  %6037 = vmatprep.mubr.msk.bf16.mxu1 %vm6851_vm1, %v8609_v43 }
 0x246   : > { %v1346_v22 = vpack.c.bf16 %v6460_v60, %v6458_v9  ;;  %6047 = vmatprep.subr.bf16.mxu1 %v8609_v43  ;;  %v6462_v5 = vpop.eup %6461  ;;  %v3163_v9 = vcombine.high %v3159_v8, %v3159_v8 }
 0x247   : > { %v1511_v0 = vpop.permute.xlu1 %1510  ;;  %v1681_v3 = vpop.f32.mrf.mxu1 }
 0x248   : > { %v7578_v28 = vadd.f32 %v7569_v52, %v1681_v3  ;;  %5941 = vmatprep.mubr.msk.bf16.mxu0 %vm739_vm0, %v1346_v22  ;;  %v7658_v3 = vpop.permute.xlu0 %1560  ;;  %v7665_v6 = vrot.slane %v3163_v9, %v7559_v47 }
 0x249   : > { %v6464_v18 = vpop.eup %6463  ;;  %v5949_v50 = vpop.f32.mrf.mxu1 }
 0x24a   : > { %v3236_v7 = vsel %vm1640_vm2, %v7578_v28, -inf  ;;  %v1347_v10 = vpack.c.bf16 %v6464_v18, %v6462_v5 }
 0x24b   : > { %v1563_v11 = vpop.permute.xlu1 %1562  ;;  %3237 = vmax.xlane.f32.xlu0 %v3236_v7  ;;  %v1684_v15 = vpop.f32.mrf.mxu1 }
 0x24c   : > { %v2427_v16 = vsel %vm1640_vm2, %v1563_v11, 0  ;;  %5942 = vmatmul.mubr.msk.bf16.gmra.mxu0 %vm739_vm0, %v1347_v10  ;;  %6038 = vmatmul.mubr.msk.bf16.vlgmr.msra.gmra.mxu1 %vm1640_vm2, %v1511_v0  ;;  %v2013_v0 = vsel %vm1640_vm2, %v7527_v27, 0  ;;  %v7676_v10 = vpop.permute.xlu0 %1512 }
 0x24d   : > { %v5950_v17 = vpop.f32.mrf.mxu1  ;;  %6048 = vmatpush3.bf16.xpose.msra.mxu1 %v2427_v16  ;;  %5959 = vmatprep.mubr.msk.bf16.mxu0 %vm6851_vm1, %v8609_v43  ;;  %v2105_v16 = vsel %vm1640_vm2, %v7553_v20, 0 }
 0x24e   : > { %6049 = vmatprep.mubr.msk.bf16.mxu1 %vm6851_vm1, %v8609_v43  ;;  %6059 = vmatprep.subr.bf16.mxu1 %v8609_v43 }
 0x24f   : > { %v1515_v19 = vpop.permute.xlu1 %1514  ;;  %v1727_v21 = vpop.f32.mrf.mxu1 }
 0x250   : > { %v7600_v23 = vadd.f32 %v7592_v62, %v1727_v21  ;;  %v1565_v20 = vpop.permute.xlu0 %1564 }
 0x251   : > { %v5955_v26 = vpop.f32.mrf.mxu1 }
 0x252   : > { %v3239_v29 = vsel %vm1640_vm2, %v7600_v23, -inf }
 0x253   : > { %v1567_v32 = vpop.permute.xlu1 %1566  ;;  %3240 = vmax.xlane.f32.xlu1 %v3239_v29  ;;  %v1730_v34 = vpop.f32.mrf.mxu1 }
 0x254   : > { %v2519_v37 = vsel %vm1640_vm2, %v1567_v32, 0  ;;  %5960 = vmatmul.mubr.msk.bf16.vlgmr.msra.gmra.mxu0 %vm1640_vm2, %v7435_v42  ;;  %6050 = vmatmul.mubr.msk.bf16.vlgmr.msra.gmra.mxu1 %vm1640_vm2, %v1515_v19  ;;  %v1517_v29 = vpop.permute.xlu0 %1516 }
 0x255   : > { %5970 = vmatpush3.bf16.xpose.msra.mxu0 %v1829_v39  ;;  %v5956_v44 = vpop.f32.mrf.mxu1  ;;  %6060 = vmatpush3.bf16.xpose.msra.mxu1 %v2519_v37 }
 0x256   : > { %5971 = vmatprep.mubr.msk.bf16.mxu0 %vm6851_vm1, %v8609_v43  ;;  %5981 = vmatprep.subr.bf16.mxu0 %v8609_v43 }
 0x257   : > { %v1519_v42 = vpop.permute.xlu1 %1518  ;;  %v1819_v49 = vpop.f32.mrf.mxu1  ;;  %6061 = vmatprep.mubr.msk.bf16.mxu1 %vm6851_vm1, %v8609_v43  ;;  %6071 = vmatprep.subr.bf16.mxu1 %v8609_v43 }
 0x258   : > { %v7629_v46 = vadd.f32 %v7616_v45, %v1819_v49  ;;  %v1569_v41 = vpop.permute.xlu0 %1568 }
 0x259   : > { %v5967_v51 = vpop.f32.mrf.mxu1 }
 0x25a   : > { %v3245_v54 = vsel %vm1640_vm2, %v7629_v46, -inf }
 0x25b   : > { %v1571_v59 = vpop.permute.xlu1 %1570  ;;  %3246 = vmax.xlane.f32.xlu0 %v3245_v54  ;;  %v1822_v63 = vpop.f32.mrf.mxu1 }
 0x25c   : > { %v2611_v1 = vsel %vm1640_vm2, %v1571_v59, 0  ;;  %5972 = vmatmul.mubr.msk.bf16.vlgmr.msra.gmra.mxu0 %vm1640_vm2, %v7456_v61  ;;  %6062 = vmatmul.mubr.msk.bf16.vlgmr.msra.gmra.mxu1 %vm1640_vm2, %v1519_v42 }
 0x25d   : > { %5982 = vmatpush3.bf16.xpose.msra.mxu0 %v1921_v2  ;;  %v5968_v35 = vpop.f32.mrf.mxu1  ;;  %6072 = vmatpush3.bf16.xpose.msra.mxu1 %v2611_v1  ;;  %v2473_v2 = vsel %vm1640_vm2, %v1565_v20, 0 }
 0x25e   : > { %5983 = vmatprep.mubr.msk.bf16.mxu0 %vm6851_vm1, %v8609_v43  ;;  %5993 = vmatprep.subr.bf16.mxu0 %v8609_v43 }
 0x25f   : > { %v1523_v55 = vpop.permute.xlu1 %1522  ;;  %v1911_v61 = vpop.f32.mrf.mxu1  ;;  %6073 = vmatprep.mubr.msk.bf16.mxu1 %vm6851_vm1, %v8609_v43  ;;  %6083 = vmatprep.subr.bf16.mxu1 %v8609_v43 }
 0x260   : > { %v7652_v56 = vadd.f32 %v7641_v12, %v1911_v61 }
 0x261   : > { %v5979_v58 = vpop.f32.mrf.mxu1 }
 0x262   : > { %v3251_v14 = vsel %vm1640_vm2, %v7652_v56, -inf }
 0x263   : > { %v1575_v60 = vpop.permute.xlu1 %1574  ;;  %3252 = vmax.xlane.f32.xlu0 %v3251_v14  ;;  %v1914_v22 = vpop.f32.mrf.mxu1 }
 0x264   : > { %v2703_v5 = vsel %vm1640_vm2, %v1575_v60, 0  ;;  %5984 = vmatmul.mubr.msk.bf16.vlgmr.msra.gmra.mxu0 %vm1640_vm2, %v7473_v57  ;;  %6074 = vmatmul.mubr.msk.bf16.vlgmr.msra.gmra.mxu1 %vm1640_vm2, %v1523_v55 }
 0x265   : > { %5994 = vmatpush3.bf16.xpose.msra.mxu0 %v2013_v0  ;;  %v5980_v18 = vpop.f32.mrf.mxu1  ;;  %6084 = vmatpush3.bf16.xpose.msra.mxu1 %v2703_v5 }
 0x266   : > { %5995 = vmatprep.mubr.msk.bf16.mxu0 %vm6851_vm1, %v8609_v43  ;;  %6005 = vmatprep.subr.bf16.mxu0 %v8609_v43 }
 0x267   : > { %v1527_v27 = vpop.permute.xlu1 %1526  ;;  %v2003_v50 = vpop.f32.mrf.mxu1  ;;  %6085 = vmatprep.mubr.msk.bf16.mxu1 %vm6851_vm1, %v8609_v43  ;;  %6095 = vmatprep.subr.bf16.mxu1 %v8609_v43 }
 0x268   : > { %v7674_v57 = vadd.f32 %v7665_v6, %v2003_v50 }
 0x269   : > { %v5991_v7 = vpop.f32.mrf.mxu1 }
 0x26a   : > { %v3257_v11 = vsel %vm1640_vm2, %v7674_v57, -inf }
 0x26b   : > { %v1579_v15 = vpop.permute.xlu1 %1578  ;;  %3258 = vmax.xlane.f32.xlu0 %v3257_v11  ;;  %v2006_v38 = vpop.f32.mrf.mxu1 }
 0x26c   : > { %v2795_v17 = vsel %vm1640_vm2, %v1579_v15, 0  ;;  %5996 = vmatmul.mubr.msk.bf16.vlgmr.msra.gmra.mxu0 %vm1640_vm2, %v7544_v48  ;;  %6086 = vmatmul.mubr.msk.bf16.vlgmr.msra.gmra.mxu1 %vm1640_vm2, %v1527_v27  ;;  %v2197_v48 = vsel %vm1640_vm2, %v7584_v13, 0  ;;  %v7704_v13 = vpop.f32.mrf.mxu0 }
 0x26d   : > { %6006 = vmatpush3.bf16.xpose.msra.mxu0 %v2105_v16  ;;  %6096 = vmatpush3.bf16.xpose.msra.mxu1 %v2795_v17  ;;  %v5992_v19 = vpop.f32.mrf.mxu1 }
 0x26e   : > { %6007 = vmatprep.mubr.msk.bf16.mxu0 %vm6851_vm1, %v8609_v43  ;;  %6017 = vmatprep.subr.bf16.mxu0 %v8609_v43  ;;  %v7712_v39 = vpop.f32.mrf.mxu0 }
 0x26f   : > { %v1531_v21 = vpop.permute.xlu1 %1530  ;;  %6097 = vmatprep.mubr.msk.bf16.mxu1 %vm6851_vm1, %v8609_v43  ;;  %6107 = vmatprep.subr.bf16.mxu1 %v8609_v43  ;;  %v7779_v50 = vpack.c.bf16 %v7712_v39, %v7712_v39 }
 0x270   : > { %v7720_v42 = vpop.f32.mrf.mxu0 }
 0x271   : > { %v3625_v7 = vsel %vm3623_vm4, %v7779_v50, 0 }
 0x272   : > { %v1030_v51 = vpop.f32.mrf.mxu0 }
 0x273   : > { %v1583_v24 = vpop.permute.xlu1 %1582  ;;  %v7733_v54 = vpack.c.bf16 %v1030_v51, %v1030_v51 }
 0x274   : > { %v2887_v26 = vsel %vm1640_vm2, %v1583_v24, 0  ;;  %6008 = vmatmul.mubr.msk.bf16.vlgmr.msra.gmra.mxu0 %vm1640_vm2, %v7574_v31  ;;  %6098 = vmatmul.mubr.msk.bf16.vlgmr.msra.gmra.mxu1 %vm1640_vm2, %v1531_v21  ;;  %v2289_v31 = vsel %vm1640_vm2, %v7626_v53, 0  ;;  %v2381_v53 = vsel %vm1640_vm2, %v7658_v3, 0  ;;  %v5919_v21 = vpop.f32.mrf.mxu0 }
 0x275   : > { %6018 = vmatpush3.bf16.xpose.msra.mxu0 %v2197_v48  ;;  %6108 = vmatpush3.bf16.xpose.msra.mxu1 %v2887_v26  ;;  %v3671_v1 = vsel %vm3623_vm4, %v7733_v54, 0 }
 0x276   : > { %6019 = vmatprep.mubr.msk.bf16.mxu0 %vm6851_vm1, %v8609_v43  ;;  %6029 = vmatprep.subr.bf16.mxu0 %v8609_v43 }
 0x277   : > { %v1535_v32 = vpop.permute.xlu1 %1534  ;;  %6109 = vmatprep.mubr.msk.bf16.mxu1 %vm6851_vm1, %v8609_v43  ;;  %6119 = vmatprep.subr.bf16.mxu1 %v8609_v43 }
 0x27b   : > { %v1587_v34 = vpop.permute.xlu1 %1586 }
 0x27c   : > { %v2979_v37 = vsel %vm1640_vm2, %v1587_v34, 0  ;;  %6020 = vmatmul.mubr.msk.bf16.vlgmr.msra.gmra.mxu0 %vm1640_vm2, %v7605_v4  ;;  %6110 = vmatmul.mubr.msk.bf16.vlgmr.msra.gmra.mxu1 %vm1640_vm2, %v1535_v32  ;;  %v1521_v4 = vpop.permute.xlu0 %1520  ;;  %v7802_v32 = vpack.c.bf16 %v7704_v13, %v7704_v13 }
 0x27d   : > { %6030 = vmatpush3.bf16.xpose.msra.mxu0 %v2289_v31  ;;  %6120 = vmatpush3.bf16.xpose.msra.mxu1 %v2979_v37 }
 0x27e   : > { %6031 = vmatprep.mubr.msk.bf16.mxu0 %vm6851_vm1, %v8609_v43  ;;  %6041 = vmatprep.subr.bf16.mxu0 %v8609_v43 }
 0x27f   : > { %v1539_v44 = vpop.permute.xlu1 %1538  ;;  %6121 = vmatprep.mubr.msk.bf16.mxu1 %vm6851_vm1, %v8609_v43  ;;  %6131 = vmatprep.subr.bf16.mxu1 %v8609_v43 }
 0x280   : > { %v1573_v59 = vpop.permute.xlu0 %1572 }
 0x281   : > { %v2657_v9 = vsel %vm1640_vm2, %v1573_v59, 0 }
 0x283   : > { %v1591_v49 = vpop.permute.xlu1 %1590 }
 0x284   : > { %v3071_v8 = vsel %vm1640_vm2, %v1591_v49, 0  ;;  %6032 = vmatmul.mubr.msk.bf16.vlgmr.msra.gmra.mxu0 %vm1640_vm2, %v7643_v33  ;;  %6122 = vmatmul.mubr.msk.bf16.vlgmr.msra.gmra.mxu1 %vm1640_vm2, %v1539_v44  ;;  %v1525_v35 = vpop.permute.xlu0 %1524  ;;  %v2565_v33 = vsel %vm1640_vm2, %v1569_v41, 0 }
 0x285   : > { %6042 = vmatpush3.bf16.xpose.msra.mxu0 %v2381_v53  ;;  %6132 = vmatpush3.bf16.xpose.msra.mxu1 %v3071_v8  ;;  %v7821_v8 = vpack.c.bf16 %v5919_v21, %v5919_v21 }
 0x286   : > { %6043 = vmatprep.mubr.msk.bf16.mxu0 %vm6851_vm1, %v8609_v43  ;;  %6053 = vmatprep.subr.bf16.mxu0 %v8609_v43 }
 0x287   : > { %6133 = vmatprep.mubr.msk.bf16.mxu1 %vm6851_vm1, %v8609_v43  ;;  %6143 = vmatprep.subr.bf16.mxu1 %v8609_v43  ;;  %v1543_v63 = vpop.permute.xlu1 %1542 }
 0x288   : > { %v1577_v55 = vpop.permute.xlu0 %1576 }
 0x289   : > { %v2749_v14 = vsel %vm1640_vm2, %v1577_v55, 0 }
 0x28c   : > { %6044 = vmatmul.mubr.msk.bf16.vlgmr.msra.gmra.mxu0 %vm1640_vm2, %v7676_v10  ;;  %6134 = vmatmul.mubr.msk.bf16.vlgmr.msra.gmra.mxu1 %vm1640_vm2, %v1543_v63  ;;  %v1529_v61 = vpop.permute.xlu0 %1528 }
 0x28d   : > { %6054 = vmatpush3.bf16.xpose.msra.mxu0 %v2473_v2  ;;  %6055 = vmatprep.mubr.msk.bf16.mxu0 %vm6851_vm1, %v8609_v43 }
 0x28e   : > { %6065 = vmatprep.subr.bf16.mxu0 %v8609_v43  ;;  %6144 = vmatpush3.bf16.msra.mxu1 %v3671_v1 }
 0x28f   : > { %6145 = vmatprep.mubr.msk.bf16.mxu1 %vm6851_vm1, %v8609_v43  ;;  %6155 = vmatprep.subr.bf16.mxu1 %v8609_v43 }
 0x290   : > { %v1581_v58 = vpop.permute.xlu0 %1580 }
 0x291   : > { %v2841_v22 = vsel %vm1640_vm2, %v1581_v58, 0 }
 0x294   : > { %6056 = vmatmul.mubr.msk.bf16.vlgmr.msra.gmra.mxu0 %vm1640_vm2, %v1517_v29  ;;  %v1533_v60 = vpop.permute.xlu0 %1532 }
 0x295   : > { %6066 = vmatpush3.bf16.xpose.msra.mxu0 %v2565_v33  ;;  %6067 = vmatprep.mubr.msk.bf16.mxu0 %vm6851_vm1, %v8609_v43 }
 0x296   : > { %6077 = vmatprep.subr.bf16.mxu0 %v8609_v43 }
 0x298   : > { %v1585_v0 = vpop.permute.xlu0 %1584 }
 0x299   : > { %v2933_v5 = vsel %vm1640_vm2, %v1585_v0, 0 }
 0x29c   : > { %6068 = vmatmul.mubr.msk.bf16.vlgmr.msra.gmra.mxu0 %vm1640_vm2, %v1521_v4  ;;  %v1537_v3 = vpop.permute.xlu0 %1536 }
 0x29d   : > { %6078 = vmatpush3.bf16.xpose.msra.mxu0 %v2657_v9  ;;  %6079 = vmatprep.mubr.msk.bf16.mxu0 %vm6851_vm1, %v8609_v43 }
 0x29e   : > { %6089 = vmatprep.subr.bf16.mxu0 %v8609_v43 }
 0x2a0   : > { %v1589_v18 = vpop.permute.xlu0 %1588 }
 0x2a1   : > { %v3025_v27 = vsel %vm1640_vm2, %v1589_v18, 0 }
 0x2a4   : > { %6080 = vmatmul.mubr.msk.bf16.vlgmr.msra.gmra.mxu0 %vm1640_vm2, %v1525_v35  ;;  %v1541_v10 = vpop.permute.xlu0 %1540 }
 0x2a5   : > { %6090 = vmatpush3.bf16.xpose.msra.mxu0 %v2749_v14  ;;  %6091 = vmatprep.mubr.msk.bf16.mxu0 %vm6851_vm1, %v8609_v43 }
 0x2a6   : > { %6101 = vmatprep.subr.bf16.mxu0 %v8609_v43 }
 0x2ac   : > { %6092 = vmatmul.mubr.msk.bf16.vlgmr.msra.gmra.mxu0 %vm1640_vm2, %v1529_v61 }
 0x2ad   : > { %6102 = vmatpush3.bf16.xpose.msra.mxu0 %v2841_v22  ;;  %6103 = vmatprep.mubr.msk.bf16.mxu0 %vm6851_vm1, %v8609_v43 }
 0x2ae   : > { %6113 = vmatprep.subr.bf16.mxu0 %v8609_v43 }
 0x2b4   : > { %6104 = vmatmul.mubr.msk.bf16.vlgmr.msra.gmra.mxu0 %vm1640_vm2, %v1533_v60 }
 0x2b5   : > { %6114 = vmatpush3.bf16.xpose.msra.mxu0 %v2933_v5  ;;  %6115 = vmatprep.mubr.msk.bf16.mxu0 %vm6851_vm1, %v8609_v43 }
 0x2b6   : > { %6125 = vmatprep.subr.bf16.mxu0 %v8609_v43 }
 0x2bc   : > { %6116 = vmatmul.mubr.msk.bf16.vlgmr.msra.gmra.mxu0 %vm1640_vm2, %v1537_v3 }
 0x2bd   : > { %6126 = vmatpush3.bf16.xpose.msra.mxu0 %v3025_v27  ;;  %6127 = vmatprep.mubr.msk.bf16.mxu0 %vm6851_vm1, %v8609_v43 }
 0x2be   : > { %6137 = vmatprep.subr.bf16.mxu0 %v8609_v43 }
 0x2c4   : > { %6128 = vmatmul.mubr.msk.bf16.vlgmr.msra.gmra.mxu0 %vm1640_vm2, %v1541_v10 }
 0x2c5   : > { %6138 = vmatpush3.bf16.msra.mxu0 %v3625_v7  ;;  %6139 = vmatprep.mubr.msk.bf16.mxu0 %vm6851_vm1, %v8609_v43 }
 0x2c6   : > { %6149 = vmatprep.subr.bf16.mxu0 %v8609_v43 }
 0x2d4   : > { %v3238_v11 = vpop.xlane.xlu0 %3237 }
 0x2d5   : > { %v3332_v15 = vsub.f32 %v7578_v28, %v3238_v11  ;;  %v1043_v28 = vpop.f32.mrf.mxu0 }
 0x2d6   : > { %v7811_v41 = vpack.c.bf16 %v1043_v28, %v1043_v28 }
 0x2d7   : > { %v3364_v38 = vmul.f32 1.442695, %v3332_v15  ;;  %v7804_v31 = vpop.f32.mrf.mxu0 }
 0x2d9   : > { %6465 = vpow2.f32 %v3364_v38  ;;  %v7815_v4 = vpop.f32.mrf.mxu0 }
 0x2dc   : > { %v3241_v33 = vpop.xlane.xlu1 %3240 }
 0x2dd   : > { %v3333_v58 = vsub.f32 %v7600_v23, %v3241_v33 }
 0x2df   : > { %v3366_v5 = vmul.f32 1.442695, %v3333_v58 }
 0x2e1   : > { %6467 = vpow2.f32 %v3366_v5 }
 0x2e4   : > { %v3247_v18 = vpop.xlane.xlu0 %3246 }
 0x2e5   : > { %v3335_v15 = vsub.f32 %v7629_v46, %v3247_v18 }
 0x2e6   : > { %v7789_v16 = vpop.eup %6465 }
 0x2e7   : > { %v3428_v17 = vsel %vm1640_vm2, %v7789_v16, 0.0 }
 0x2e8   : > { %3429 = vadd.xlane.f32.xlu1 %v3428_v17 }
 0x2f4   : > { %v2095_v19 = vpop.f32.mrf.mxu1 }
 0x2f5   : > { %v7794_v20 = vadd.f32 %v7592_v62, %v2095_v19 }
 0x2f6   : > { %v6003_v24 = vpop.f32.mrf.mxu1 }
 0x2f7   : > { %v3263_v48 = vsel %vm1640_vm2, %v7794_v20, -inf }
 0x2f8   : > { %3264 = vmax.xlane.f32.xlu0 %v3263_v48  ;;  %v2098_v26 = vpop.f32.mrf.mxu1  ;;  %v3370_v48 = vmul.f32 1.442695, %v3335_v15 }
 0x2f9   : > { %1592 = vrot.lane.b32.xlu1 %v7779_v50, %s6857_s18 }
 0x2fa   : > { %v6004_v29 = vpop.f32.mrf.mxu1  ;;  %6469 = vpow2.f32 %v3370_v48 }
 0x2fc   : > { %v2187_v34 = vpop.f32.mrf.mxu1 }
 0x2fd   : > { %v7807_v37 = vadd.f32 %v7616_v45, %v2187_v34  ;;  %1596 = vrot.lane.b32.xlu1 %v7802_v32, %s6857_s18 }
 0x2fe   : > { %v6015_v39 = vpop.f32.mrf.mxu1 }
 0x2ff   : > { %v3269_v44 = vsel %vm1640_vm2, %v7807_v37, -inf }
 0x300   : > { %3270 = vmax.xlane.f32.xlu0 %v3269_v44  ;;  %v2190_v13 = vpop.f32.mrf.mxu1 }
 0x301   : > { %1600 = vrot.lane.b32.xlu1 %v7811_v41, %s6857_s18 }
 0x302   : > { %v7819_v49 = vpop.f32.mrf.mxu0  ;;  %v6016_v53 = vpop.f32.mrf.mxu1 }
 0x304   : > { %v7823_v51 = vpop.f32.mrf.mxu0  ;;  %v2279_v59 = vpop.f32.mrf.mxu1 }
 0x305   : > { %v7826_v63 = vadd.f32 %v7641_v12, %v2279_v59  ;;  %1604 = vrot.lane.b32.xlu1 %v7821_v8, %s6857_s18 }
 0x306   : > { %v7830_v1 = vpop.f32.mrf.mxu0  ;;  %v6027_v2 = vpop.f32.mrf.mxu1 }
 0x307   : > { %v3275_v35 = vsel %vm1640_vm2, %v7826_v63, -inf }
 0x308   : > { %3276 = vmax.xlane.f32.xlu0 %v3275_v35  ;;  %v2282_v55 = vpop.f32.mrf.mxu1  ;;  %v7836_v61 = vpop.f32.mrf.mxu0 }
 0x309   : > { %1608 = vrot.lane.b32.xlu1 %v7779_v50, %s6858_s9  ;;  %v7877_v35 = vpop.eup %6467 }
 0x30a   : > { %v6028_v9 = vpop.f32.mrf.mxu1  ;;  %v3431_v58 = vsel %vm1640_vm2, %v7877_v35, 0.0  ;;  %v7886_v15 = vpop.eup %6469 }
 0x30c   : > { %v7839_v14 = vpop.f32.mrf.mxu0  ;;  %v2371_v60 = vpop.f32.mrf.mxu1 }
 0x30d   : > { %v7842_v22 = vadd.f32 %v7665_v6, %v2371_v60  ;;  %1612 = vrot.lane.b32.xlu1 %v7802_v32, %s6858_s9 }
 0x30e   : > { %v7846_v0 = vpop.f32.mrf.mxu0  ;;  %v6039_v3 = vpop.f32.mrf.mxu1 }
 0x30f   : > { %v3281_v27 = vsel %vm1640_vm2, %v7842_v22, -inf }
 0x310   : > { %v7850_v7 = vpop.f32.mrf.mxu0  ;;  %3282 = vmax.xlane.f32.xlu0 %v3281_v27  ;;  %v2374_v23 = vpop.f32.mrf.mxu1 }
 0x311   : > { %1616 = vrot.lane.b32.xlu1 %v7811_v41, %s6858_s9  ;;  %v3253_v23 = vpop.xlane.xlu0 %3252 }
 0x312   : > { %v7854_v10 = vpop.f32.mrf.mxu0  ;;  %v6040_v11 = vpop.f32.mrf.mxu1 }
 0x314   : > { %v7857_v38 = vpop.f32.mrf.mxu0  ;;  %v2463_v17 = vpop.f32.mrf.mxu1 }
 0x315   : > { %1620 = vrot.lane.b32.xlu1 %v7821_v8, %s6858_s9  ;;  %v7862_v19 = vadd.f32 %v7592_v62, %v2463_v17 }
 0x316   : > { %v5961_v21 = vpop.f32.mrf.mxu0  ;;  %v6051_v24 = vpop.f32.mrf.mxu1 }
 0x317   : > { %v3287_v28 = vsel %vm1640_vm2, %v7862_v19, -inf }
 0x318   : > { %v1776_v26 = vpop.f32.mrf.mxu0  ;;  %v2466_v29 = vpop.f32.mrf.mxu1  ;;  %3288 = vmax.xlane.f32.xlu0 %v3287_v28  ;;  %v3437_v28 = vsel %vm1640_vm2, %v7886_v15, 0.0 }
 0x319   : > { %1624 = vrot.lane.b32.xlu1 %v7779_v50, %s6859_s19  ;;  %v3337_v26 = vsub.f32 %v7652_v56, %v3253_v23 }
 0x31a   : > { %v5962_v46 = vpop.f32.mrf.mxu0  ;;  %v6052_v34 = vpop.f32.mrf.mxu1 }
 0x31c   : > { %v7868_v39 = vpop.f32.mrf.mxu0  ;;  %v2555_v44 = vpop.f32.mrf.mxu1 }
 0x31d   : > { %v7871_v13 = vadd.f32 %v7616_v45, %v2555_v44  ;;  %1628 = vrot.lane.b32.xlu1 %v7802_v32, %s6859_s19 }
 0x31e   : > { %v5973_v53 = vpop.f32.mrf.mxu0  ;;  %v6063_v59 = vpop.f32.mrf.mxu1 }
 0x31f   : > { %v3293_v2 = vsel %vm1640_vm2, %v7871_v13, -inf  ;;  %v3374_v59 = vmul.f32 1.442695, %v3337_v26 }
 0x320   : > { %v1868_v50 = vpop.f32.mrf.mxu0  ;;  %3294 = vmax.xlane.f32.xlu0 %v3293_v2  ;;  %v2558_v33 = vpop.f32.mrf.mxu1 }
 0x321   : > { %v3259_v2 = vpop.xlane.xlu0 %3258  ;;  %v3160_v50 = vcombine.high %v7556_v36, %v7556_v36  ;;  %6471 = vpow2.f32 %v3374_v59 }
 0x322   : > { %v5974_v55 = vpop.f32.mrf.mxu0  ;;  %v6064_v9 = vpop.f32.mrf.mxu1 }
 0x324   : > { %v1957_v60 = vpop.f32.mrf.mxu0  ;;  %3432 = vadd.xlane.f32.xlu0 %v3431_v58  ;;  %v2647_v3 = vpop.f32.mrf.mxu1 }
 0x325   : > { %v7882_v5 = vadd.f32 %v7641_v12, %v2647_v3  ;;  %v3339_v3 = vsub.f32 %v7674_v57, %v3259_v2 }
 0x326   : > { %v5985_v18 = vpop.f32.mrf.mxu0  ;;  %v6075_v27 = vpop.f32.mrf.mxu1 }
 0x327   : > { %v3299_v11 = vsel %vm1640_vm2, %v7882_v5, -inf  ;;  %v7900_v18 = vrot.slane %v3160_v50, %v7559_v47  ;;  %v3145_v27 = vrot.slane %v7603_v25, %v7540_v40 }
 0x328   : > { %v1960_v17 = vpop.f32.mrf.mxu0  ;;  %3300 = vmax.xlane.f32.xlu0 %v3299_v11  ;;  %v2650_v21 = vpop.f32.mrf.mxu1 }
 0x329   : > { %v7914_v26 = vrot.slane %v3145_v27, %v7559_v47 }
 0x32a   : > { %v5986_v24 = vpop.f32.mrf.mxu0  ;;  %v6076_v48 = vpop.f32.mrf.mxu1 }
 0x32b   : > { %v3378_v24 = vmul.f32 1.442695, %v3339_v3  ;;  %v7909_v48 = vadd.f32 %v7900_v18, %v7857_v38  ;;  %v7920_v38 = vadd.f32 %v7914_v26, %v7868_v39 }
 0x32c   : > { %v2049_v29 = vpop.f32.mrf.mxu0  ;;  %3438 = vadd.xlane.f32.xlu0 %v3437_v28  ;;  %v2739_v46 = vpop.f32.mrf.mxu1  ;;  %v3161_v28 = vcombine.high %v3145_v27, %v3145_v27 }
 0x32d   : > { %v7892_v34 = vadd.f32 %v7665_v6, %v2739_v46  ;;  %6473 = vpow2.f32 %v3378_v24  ;;  %v3248_v3 = vsel %vm1640_vm2, %v7920_v38, -inf }
 0x32e   : > { %v5997_v44 = vpop.f32.mrf.mxu0  ;;  %v6087_v53 = vpop.f32.mrf.mxu1 }
 0x32f   : > { %v3305_v33 = vsel %vm1640_vm2, %v7892_v34, -inf  ;;  %v3242_v44 = vsel %vm1640_vm2, %v7909_v48, -inf  ;;  %v7923_v53 = vrot.slane %v3161_v28, %v7559_v47 }
 0x330   : > { %v2052_v56 = vpop.f32.mrf.mxu0  ;;  %3306 = vmax.xlane.f32.xlu0 %v3305_v33  ;;  %v2742_v55 = vpop.f32.mrf.mxu1 }
 0x332   : > { %v5998_v9 = vpop.f32.mrf.mxu0  ;;  %v6088_v58 = vpop.f32.mrf.mxu1 }
 0x333   : > { %v7930_v9 = vpop.eup %6471  ;;  %v7933_v58 = vadd.f32 %v7923_v53, %v1957_v60 }
 0x334   : > { %v2141_v23 = vpop.f32.mrf.mxu0  ;;  %v2831_v11 = vpop.f32.mrf.mxu1 }
 0x335   : > { %v7905_v36 = vadd.f32 %v7592_v62, %v2831_v11  ;;  %v3443_v11 = vsel %vm1640_vm2, %v7930_v9, 0.0  ;;  %v3254_v60 = vsel %vm1640_vm2, %v7933_v58, -inf }
 0x336   : > { %v6009_v17 = vpop.f32.mrf.mxu0  ;;  %v6099_v21 = vpop.f32.mrf.mxu1 }
 0x337   : > { %v3311_v57 = vsel %vm1640_vm2, %v7905_v36, -inf  ;;  %v7940_v17 = vadd.f32 %v7569_v52, %v2049_v29  ;;  %v7952_v29 = vadd.f32 %v7900_v18, %v2141_v23 }
 0x338   : > { %v2144_v40 = vpop.f32.mrf.mxu0  ;;  %3312 = vmax.xlane.f32.xlu0 %v3311_v57  ;;  %v2834_v25 = vpop.f32.mrf.mxu1 }
 0x339   : > { %v3266_v23 = vsel %vm1640_vm2, %v7952_v29, -inf }
 0x33a   : > { %v6010_v46 = vpop.f32.mrf.mxu0  ;;  %v6100_v62 = vpop.f32.mrf.mxu1 }
 0x33b   : > { %v7949_v46 = vpop.eup %6473 }
 0x33c   : > { %v2233_v59 = vpop.f32.mrf.mxu0  ;;  %3243 = vmax.xlane.f32.xlu0 %v3242_v44  ;;  %v2923_v2 = vpop.f32.mrf.mxu1 }
 0x33d   : > { %v7926_v50 = vadd.f32 %v7616_v45, %v2923_v2  ;;  %v3260_v2 = vsel %vm1640_vm2, %v7940_v17, -inf }
 0x33e   : > { %v6021_v33 = vpop.f32.mrf.mxu0  ;;  %v6111_v56 = vpop.f32.mrf.mxu1 }
 0x33f   : > { %v3317_v55 = vsel %vm1640_vm2, %v7926_v50, -inf  ;;  %v3449_v56 = vsel %vm1640_vm2, %v7949_v46, 0.0 }
 0x340   : > { %v2236_v39 = vpop.f32.mrf.mxu0  ;;  %3318 = vmax.xlane.f32.xlu0 %v3317_v55  ;;  %v2926_v47 = vpop.f32.mrf.mxu1  ;;  %v7959_v55 = vadd.f32 %v7914_v26, %v2233_v59 }
 0x341   : > { %3249 = vmax.xlane.f32.xlu1 %v3248_v3 }
 0x342   : > { %v6022_v27 = vpop.f32.mrf.mxu0  ;;  %v6112_v45 = vpop.f32.mrf.mxu1 }
 0x344   : > { %v2325_v21 = vpop.f32.mrf.mxu0  ;;  %3444 = vadd.xlane.f32.xlu0 %v3443_v11  ;;  %v3015_v24 = vpop.f32.mrf.mxu1 }
 0x345   : > { %v7945_v57 = vadd.f32 %v7641_v12, %v3015_v24  ;;  %3255 = vmax.xlane.f32.xlu1 %v3254_v60  ;;  %v7966_v45 = vadd.f32 %v7923_v53, %v2325_v21  ;;  %v3272_v60 = vsel %vm1640_vm2, %v7959_v55, -inf }
 0x346   : > { %v6033_v28 = vpop.f32.mrf.mxu0  ;;  %v6123_v40 = vpop.f32.mrf.mxu1 }
 0x347   : > { %v3323_v25 = vsel %vm1640_vm2, %v7945_v57, -inf }
 0x348   : > { %v2328_v62 = vpop.f32.mrf.mxu0  ;;  %3324 = vmax.xlane.f32.xlu0 %v3323_v25  ;;  %v3018_v44 = vpop.f32.mrf.mxu1  ;;  %v3278_v25 = vsel %vm1640_vm2, %v7966_v45, -inf }
 0x349   : > { %3261 = vmax.xlane.f32.xlu1 %v3260_v2 }
 0x34a   : > { %v6034_v12 = vpop.f32.mrf.mxu0  ;;  %v6124_v33 = vpop.f32.mrf.mxu1 }
 0x34c   : > { %v2417_v39 = vpop.f32.mrf.mxu0  ;;  %3450 = vadd.xlane.f32.xlu0 %v3449_v56  ;;  %v7961_v47 = vpop.f32.mrf.mxu1 }
 0x34d   : > { %3267 = vmax.xlane.f32.xlu1 %v3266_v23  ;;  %v7976_v23 = vpack.c.bf16 %v7720_v42, %v7720_v42  ;;  %v7990_v42 = vpack.c.bf16 %v7804_v31, %v7804_v31 }
 0x34e   : > { %v6045_v3 = vpop.f32.mrf.mxu0  ;;  %v6135_v27 = vpop.f32.mrf.mxu1 }
 0x350   : > { %v2420_v11 = vpop.f32.mrf.mxu0  ;;  %v3110_v24 = vpop.f32.mrf.mxu1 }
 0x351   : > { %3273 = vmax.xlane.f32.xlu1 %v3272_v60  ;;  %v7984_v11 = vpack.c.bf16 %v7815_v4, %v7815_v4 }
 0x352   : > { %v6046_v59 = vpop.f32.mrf.mxu0  ;;  %v6136_v28 = vpop.f32.mrf.mxu1 }
 0x354   : > { %v2509_v40 = vpop.f32.mrf.mxu0 }
 0x355   : > { %3279 = vmax.xlane.f32.xlu1 %v3278_v25 }
 0x356   : > { %v6057_v62 = vpop.f32.mrf.mxu0 }
 0x358   : > { %v2512_v44 = vpop.f32.mrf.mxu0 }
 0x35a   : > { %v6058_v2 = vpop.f32.mrf.mxu0 }
 0x35c   : > { %v2601_v12 = vpop.f32.mrf.mxu0 }
 0x35e   : > { %v6069_v33 = vpop.f32.mrf.mxu0 }
 0x360   : > { %v2604_v21 = vpop.f32.mrf.mxu0 }
 0x362   : > { %v6070_v56 = vpop.f32.mrf.mxu0  ;;  %1594 = vrot.lane.b32.xlu0 %v7733_v54, %s6857_s18 }
 0x364   : > { %v2693_v3 = vpop.f32.mrf.mxu0 }
 0x366   : > { %v6081_v27 = vpop.f32.mrf.mxu0  ;;  %1630 = vrot.lane.b32.xlu1 %v7976_v23, %s6859_s19  ;;  %1598 = vrot.lane.b32.xlu0 %v7976_v23, %s6857_s18 }
 0x368   : > { %v2696_v24 = vpop.f32.mrf.mxu0 }
 0x36a   : > { %v6082_v60 = vpop.f32.mrf.mxu0  ;;  %1602 = vrot.lane.b32.xlu0 %v7984_v11, %s6857_s18 }
 0x36c   : > { %v2785_v59 = vpop.f32.mrf.mxu0 }
 0x36e   : > { %v6093_v28 = vpop.f32.mrf.mxu0  ;;  %1606 = vrot.lane.b32.xlu0 %v7990_v42, %s6857_s18 }
 0x370   : > { %v2788_v25 = vpop.f32.mrf.mxu0 }
 0x371   : > { %v3430_v62 = vpop.xlane.xlu1 %3429 }
 0x372   : > { %6475 = vrcp.f32 %v3430_v62  ;;  %v6094_v44 = vpop.f32.mrf.mxu0  ;;  %1610 = vrot.lane.b32.xlu0 %v7733_v54, %s6858_s9 }
 0x373   : > { %v3717_v44 = vsel %vm3623_vm4, %v7802_v32, 0 }
 0x374   : > { %v2877_v4 = vpop.f32.mrf.mxu0 }
 0x376   : > { %v6105_v2 = vpop.f32.mrf.mxu0  ;;  %1614 = vrot.lane.b32.xlu0 %v7976_v23, %s6858_s9 }
 0x377   : > { %v8009_v2 = vadd.f32 %v7569_v52, %v2417_v39  ;;  %v8021_v39 = vadd.f32 %v7914_v26, %v2601_v12 }
 0x378   : > { %v2880_v33 = vpop.f32.mrf.mxu0 }
 0x37a   : > { %v6106_v31 = vpop.f32.mrf.mxu0  ;;  %1618 = vrot.lane.b32.xlu0 %v7984_v11, %s6858_s9 }
 0x37c   : > { %v2969_v21 = vpop.f32.mrf.mxu0 }
 0x37e   : > { %v6117_v56 = vpop.f32.mrf.mxu0  ;;  %1622 = vrot.lane.b32.xlu0 %v7990_v42, %s6858_s9 }
 0x37f   : > { %v6476_v27 = vpop.eup %6475  ;;  %v3284_v56 = vsel %vm1640_vm2, %v8009_v2, -inf }
 0x380   : > { %v2972_v24 = vpop.f32.mrf.mxu0  ;;  %v3556_v60 = vmul.f32 %v6476_v27, %v7789_v16 }
 0x381   : > { %v3265_v31 = vpop.xlane.xlu0 %3264 }
 0x382   : > { %v6118_v28 = vpop.f32.mrf.mxu0  ;;  %1626 = vrot.lane.b32.xlu0 %v7733_v54, %s6859_s19  ;;  %v3588_v25 = vpack.c.bf16 %v3556_v60, %v3556_v60  ;;  %v8015_v54 = vadd.f32 %v7900_v18, %v2509_v40  ;;  %v3341_v32 = vsub.f32 %v7794_v20, %v3265_v31  ;;  %v3296_v20 = vsel %vm1640_vm2, %v8021_v39, -inf }
 0x383   : > { %v8025_v28 = vpop.permute.xlu1 %1592  ;;  %v8035_v31 = vadd.f32 %v7569_v52, %v2785_v59  ;;  %v8049_v52 = vadd.f32 %v7665_v6, %v7961_v47 }
 0x384   : > { %v3061_v62 = vpop.f32.mrf.mxu0  ;;  %6140 = vmatmul.mubr.msk.bf16.vlgmr.msra.gmra.mxu0 %vm1640_vm2, %v3588_v25  ;;  %v3290_v60 = vsel %vm1640_vm2, %v8015_v54, -inf  ;;  %v3382_v40 = vmul.f32 1.442695, %v3341_v32 }
 0x385   : > { %6150 = vmatpush3.bf16.msra.mxu0 %v3717_v44  ;;  %6151 = vmatprep.mubr.msk.bf16.mxu0 %vm6851_vm1, %v8609_v43  ;;  %v8029_v44 = vadd.f32 %v7923_v53, %v2693_v3  ;;  %v8042_v3 = vadd.f32 %v7900_v18, %v2877_v4  ;;  %v8063_v6 = vadd.f32 %v7923_v53, %v3061_v62 }
 0x386   : > { %v6129_v33 = vpop.f32.mrf.mxu0  ;;  %6161 = vmatprep.subr.bf16.mxu0 %v8609_v43  ;;  %6477 = vpow2.f32 %v3382_v40  ;;  %v8054_v40 = vadd.f32 %v7914_v26, %v2969_v21 }
 0x387   : > { %v3314_v18 = vsel %vm1640_vm2, %v8042_v3, -inf  ;;  %v3326_v53 = vsel %vm1640_vm2, %v8063_v6, -inf }
 0x388   : > { %v3064_v16 = vpop.f32.mrf.mxu0  ;;  %v3320_v47 = vsel %vm1640_vm2, %v8054_v40, -inf }
 0x389   : > { %v3271_v24 = vpop.xlane.xlu0 %3270 }
 0x38a   : > { %v6130_v27 = vpop.f32.mrf.mxu0  ;;  %3285 = vmax.xlane.f32.xlu1 %v3284_v56  ;;  %v3343_v25 = vsub.f32 %v7807_v37, %v3271_v24  ;;  %v3302_v56 = vsel %vm1640_vm2, %v8029_v44, -inf  ;;  %v3308_v24 = vsel %vm1640_vm2, %v8035_v31, -inf }
 0x38b   : > { %v8039_v27 = vpop.permute.xlu1 %1596 }
 0x38c   : > { %v3386_v12 = vmul.f32 1.442695, %v3343_v25 }
 0x38e   : > { %3291 = vmax.xlane.f32.xlu1 %v3290_v60  ;;  %6479 = vpow2.f32 %v3386_v12 }
 0x38f   : > { %v8051_v59 = vpop.permute.xlu1 %1600 }
 0x391   : > { %v3277_v33 = vpop.xlane.xlu0 %3276 }
 0x392   : > { %3297 = vmax.xlane.f32.xlu1 %v3296_v20  ;;  %v3345_v16 = vsub.f32 %v7826_v63, %v3277_v33 }
 0x393   : > { %v8060_v4 = vpop.eup %6477  ;;  %v8067_v25 = vpop.permute.xlu1 %1604 }
 0x394   : > { %v3390_v37 = vmul.f32 1.442695, %v3345_v16  ;;  %v3455_v33 = vsel %vm1640_vm2, %v8060_v4, 0.0 }
 0x396   : > { %3303 = vmax.xlane.f32.xlu1 %v3302_v56  ;;  %6481 = vpow2.f32 %v3390_v37 }
 0x397   : > { %v8076_v62 = vpop.permute.xlu1 %1608 }
 0x399   : > { %v3283_v32 = vpop.xlane.xlu0 %3282 }
 0x39a   : > { %v3347_v63 = vsub.f32 %v7842_v22, %v3283_v32  ;;  %3309 = vmax.xlane.f32.xlu1 %v3308_v24  ;;  %v3329_v22 = vsel %vm1640_vm2, %v8049_v52, -inf }
 0x39b   : > { %v8072_v20 = vpop.eup %6479 }
 0x39c   : > { %v3394_v60 = vmul.f32 1.442695, %v3347_v63  ;;  %v3461_v16 = vsel %vm1640_vm2, %v8072_v20, 0.0 }
 0x39e   : > { %3315 = vmax.xlane.f32.xlu1 %v3314_v18  ;;  %6483 = vpow2.f32 %v3394_v60  ;;  %v8087_v18 = vpop.permute.xlu1 %1612 }
 0x3a1   : > { %3330 = vmax.xlane.f32.xlu0 %v3329_v22  ;;  %v3289_v26 = vpop.xlane.xlu0 %3288 }
 0x3a2   : > { %3321 = vmax.xlane.f32.xlu1 %v3320_v47  ;;  %v3349_v21 = vsub.f32 %v7862_v19, %v3289_v26 }
 0x3a3   : > { %v8080_v56 = vpop.eup %6481 }
 0x3a4   : > { %v3398_v12 = vmul.f32 1.442695, %v3349_v21  ;;  %v3467_v24 = vsel %vm1640_vm2, %v8080_v56, 0.0  ;;  %v8094_v21 = vpop.permute.xlu1 %1616 }
 0x3a5   : > { %3456 = vadd.xlane.f32.xlu0 %v3455_v33  ;;  %8651 = vst [vmem:[#allocation24_spill] sm:$0xff] %v8094_v21 }
 0x3a6   : > { %3327 = vmax.xlane.f32.xlu1 %v3326_v53  ;;  %6485 = vpow2.f32 %v3398_v12 }
 0x3a9   : > { %v3295_v19 = vpop.xlane.xlu0 %3294  ;;  %3462 = vadd.xlane.f32.xlu0 %v3461_v16 }
 0x3aa   : > { %v3351_v37 = vsub.f32 %v7871_v13, %v3295_v19  ;;  %v8098_v19 = vpop.permute.xlu1 %1620 }
 0x3ab   : > { %v8085_v63 = vpop.eup %6483  ;;  %8652 = vst [vmem:[#allocation25_spill] sm:$0xff] %v8098_v19 }
 0x3ac   : > { %v3402_v32 = vmul.f32 1.442695, %v3351_v37  ;;  %v3473_v22 = vsel %vm1640_vm2, %v8085_v63, 0.0 }
 0x3ad   : > { %v3433_v60 = vpop.xlane.xlu0 %3432  ;;  %3468 = vadd.xlane.f32.xlu0 %v3467_v24 }
 0x3ae   : > { %6487 = vpow2.f32 %v3402_v32 }
 0x3af   : > { %6489 = vrcp.f32 %v3433_v60 }
 0x3b1   : > { %v3301_v47 = vpop.xlane.xlu0 %3300  ;;  %3474 = vadd.xlane.f32.xlu0 %v3473_v22 }
 0x3b2   : > { %v3353_v26 = vsub.f32 %v7882_v5, %v3301_v47 }
 0x3b3   : > { %v8092_v13 = vpop.eup %6485 }
 0x3b4   : > { %v3406_v33 = vmul.f32 1.442695, %v3353_v26  ;;  %v3479_v53 = vsel %vm1640_vm2, %v8092_v13, 0.0  ;;  %v8106_v26 = vpop.permute.xlu1 %1624 }
 0x3b5   : > { %v3439_v12 = vpop.xlane.xlu0 %3438  ;;  %3480 = vadd.xlane.f32.xlu0 %v3479_v53  ;;  %8653 = vst [vmem:[#allocation26_spill] sm:$0xff] %v8106_v26 }
 0x3b6   : > { %6491 = vpow2.f32 %v3406_v33  ;;  %v3763_v33 = vsel %vm3623_vm4, %v7976_v23, 0 }
 0x3b7   : > { %6493 = vrcp.f32 %v3439_v12 }
 0x3b9   : > { %v3307_v16 = vpop.xlane.xlu0 %3306 }
 0x3ba   : > { %v3355_v37 = vsub.f32 %v7892_v34, %v3307_v16 }
 0x3bb   : > { %v8101_v32 = vpop.eup %6487 }
 0x3bc   : > { %v6490_v5 = vpop.eup %6489  ;;  %v3410_v24 = vmul.f32 1.442695, %v3355_v37  ;;  %v3485_v60 = vsel %vm1640_vm2, %v8101_v32, 0.0 }
 0x3bd   : > { %3486 = vadd.xlane.f32.xlu0 %v3485_v60  ;;  %v3557_v22 = vmul.f32 %v6490_v5, %v7877_v35 }
 0x3be   : > { %6495 = vpow2.f32 %v3410_v24  ;;  %v8120_v24 = vpop.permute.xlu1 %1628 }
 0x3bf   : > { %v3589_v47 = vpack.c.bf16 %v3557_v22, %v3557_v22  ;;  %8654 = vst [vmem:[#allocation27_spill] sm:$0xff] %v8120_v24 }
 0x3c1   : > { %6146 = vmatmul.mubr.msk.bf16.vlgmr.msra.gmra.mxu1 %vm1640_vm2, %v3589_v47  ;;  %v3313_v34 = vpop.xlane.xlu0 %3312  ;;  %v3855_v47 = vsel %vm3623_vm4, %v7984_v11, 0 }
 0x3c2   : > { %6156 = vmatpush3.bf16.msra.mxu1 %v3763_v33  ;;  %v3357_v12 = vsub.f32 %v7905_v36, %v3313_v34  ;;  %6157 = vmatprep.mubr.msk.bf16.mxu1 %vm6851_vm1, %v8609_v43 }
 0x3c3   : > { %v8114_v53 = vpop.eup %6491  ;;  %6167 = vmatprep.subr.bf16.mxu1 %v8609_v43 }
 0x3c4   : > { %v6494_v35 = vpop.eup %6493  ;;  %v3414_v16 = vmul.f32 1.442695, %v3357_v12  ;;  %v3491_v37 = vsel %vm1640_vm2, %v8114_v53, 0.0 }
 0x3c5   : > { %v3244_v5 = vpop.xlane.xlu0 %3243  ;;  %3492 = vadd.xlane.f32.xlu0 %v3491_v37  ;;  %v3559_v23 = vmul.f32 %v6494_v35, %v7886_v15 }
 0x3c6   : > { %6497 = vpow2.f32 %v3414_v16  ;;  %v3334_v36 = vsub.f32 %v7909_v48, %v3244_v5 }
 0x3c7   : > { %v3591_v60 = vpack.c.bf16 %v3559_v23, %v3559_v23 }
 0x3c8   : > { %v3368_v22 = vmul.f32 1.442695, %v3334_v36 }
 0x3c9   : > { %6158 = vmatmul.mubr.msk.bf16.vlgmr.msra.gmra.mxu1 %vm1640_vm2, %v3591_v60  ;;  %v3319_v33 = vpop.xlane.xlu0 %3318 }
 0x3ca   : > { %6499 = vpow2.f32 %v3368_v22  ;;  %6168 = vmatpush3.bf16.msra.mxu1 %v3855_v47  ;;  %v3359_v34 = vsub.f32 %v7926_v50, %v3319_v33  ;;  %v3250_v12 = vpop.xlane.xlu1 %3249  ;;  %6169 = vmatprep.mubr.msk.bf16.mxu1 %vm6851_vm1, %v8609_v43 }
 0x3cb   : > { %v8129_v15 = vpop.eup %6495  ;;  %v3336_v48 = vsub.f32 %v7920_v38, %v3250_v12  ;;  %6179 = vmatprep.subr.bf16.mxu1 %v8609_v43 }
 0x3cc   : > { %v3418_v35 = vmul.f32 1.442695, %v3359_v34  ;;  %v3497_v16 = vsel %vm1640_vm2, %v8129_v15, 0.0 }
 0x3cd   : > { %v3372_v37 = vmul.f32 1.442695, %v3336_v48  ;;  %v3445_v5 = vpop.xlane.xlu0 %3444  ;;  %3498 = vadd.xlane.f32.xlu0 %v3497_v16 }
 0x3ce   : > { %6501 = vpow2.f32 %v3418_v35  ;;  %v3256_v23 = vpop.xlane.xlu1 %3255 }
 0x3cf   : > { %6503 = vpow2.f32 %v3372_v37  ;;  %v3338_v50 = vsub.f32 %v7933_v58, %v3256_v23 }
 0x3d0   : > { %6505 = vrcp.f32 %v3445_v5 }
 0x3d1   : > { %v3376_v36 = vmul.f32 1.442695, %v3338_v50  ;;  %v8136_v60 = vpop.xlane.xlu0 %3324 }
 0x3d2   : > { %v3262_v22 = vpop.xlane.xlu1 %3261 }
 0x3d3   : > { %v8138_v38 = vpop.eup %6497  ;;  %6507 = vpow2.f32 %v3376_v36  ;;  %v3340_v47 = vsub.f32 %v7940_v17, %v3262_v22  ;;  %v6860_v17 = vmov 0  }
 0x3d4   : > { %v3503_v33 = vsel %vm1640_vm2, %v8138_v38, 0.0  ;;  %6420 = vset.pattern.permute.xlu0 %v6860_v17  ;;  %6421 = vset.pattern.permute.xlu1 %v6860_v17 }
 0x3d5   : > { %v3380_v34 = vmul.f32 1.442695, %v3340_v47  ;;  %v3451_v12 = vpop.xlane.xlu0 %3450  ;;  %3504 = vadd.xlane.f32.xlu0 %v3503_v33 }
 0x3d6   : > { %v3268_v48 = vpop.xlane.xlu1 %3267 }
 0x3d7   : > { %v8143_v35 = vpop.eup %6499  ;;  %6509 = vpow2.f32 %v3380_v34  ;;  %v3342_v58 = vsub.f32 %v7952_v29, %v3268_v48 }
 0x3d8   : > { %6511 = vrcp.f32 %v3451_v12  ;;  %v3434_v16 = vsel %vm1640_vm2, %v8143_v35, 0.0 }
 0x3d9   : > { %v3384_v37 = vmul.f32 1.442695, %v3342_v58  ;;  %3435 = vadd.xlane.f32.xlu1 %v3434_v16 }
 0x3da   : > { %v3274_v5 = vpop.xlane.xlu1 %3273 }
 0x3db   : > { %v8148_v23 = vpop.eup %6501  ;;  %6513 = vpow2.f32 %v3384_v37  ;;  %v3344_v50 = vsub.f32 %v7959_v55, %v3274_v5  ;;  %v3947_v5 = vsel %vm3623_vm4, %v7990_v42, 0 }
 0x3dc   : > { %v8151_v36 = vpop.eup %6503  ;;  %v3509_v29 = vsel %vm1640_vm2, %v8148_v23, 0.0 }
 0x3dd   : > { %v6506_v22 = vpop.eup %6505  ;;  %v3388_v47 = vmul.f32 1.442695, %v3344_v50  ;;  %3510 = vadd.xlane.f32.xlu0 %v3509_v29  ;;  %v3440_v33 = vsel %vm1640_vm2, %v8151_v36, 0.0  ;;  %v1595_v29 = vpop.permute.xlu0 %1594 }
 0x3de   : > { %v3280_v34 = vpop.xlane.xlu1 %3279  ;;  %3441 = vadd.xlane.f32.xlu1 %v3440_v33  ;;  %v3561_v12 = vmul.f32 %v6506_v22, %v7930_v9 }
 0x3df   : > { %6515 = vpow2.f32 %v3388_v47  ;;  %v3346_v48 = vsub.f32 %v7966_v45, %v3280_v34  ;;  %v4039_v34 = vsel %vm3623_vm4, %v1595_v29, 0 }
 0x3e0   : > { %v8159_v58 = vpop.eup %6507  ;;  %v3593_v55 = vpack.c.bf16 %v3561_v12, %v3561_v12 }
 0x3e1   : > { %v3392_v16 = vmul.f32 1.442695, %v3346_v48  ;;  %v3446_v37 = vsel %vm1640_vm2, %v8159_v58, 0.0 }
 0x3e2   : > { %6170 = vmatmul.mubr.msk.bf16.vlgmr.msra.gmra.mxu1 %vm1640_vm2, %v3593_v55  ;;  %3447 = vadd.xlane.f32.xlu1 %v3446_v37  ;;  %v8195_v37 = vpop.permute.xlu0 %1598 }
 0x3e3   : > { %6517 = vpow2.f32 %v3392_v16  ;;  %6180 = vmatpush3.bf16.msra.mxu1 %v3947_v5  ;;  %6181 = vmatprep.mubr.msk.bf16.mxu1 %vm6851_vm1, %v8609_v43  ;;  %v3361_v16 = vsub.f32 %v7945_v57, %v8136_v60 }
 0x3e4   : > { %v8168_v9 = vpop.eup %6509  ;;  %6191 = vmatprep.subr.bf16.mxu1 %v8609_v43 }
 0x3e5   : > { %v6512_v45 = vpop.eup %6511  ;;  %v3452_v17 = vsel %vm1640_vm2, %v8168_v9, 0.0  ;;  %v3422_v5 = vmul.f32 1.442695, %v3361_v16 }
 0x3e6   : > { %3453 = vadd.xlane.f32.xlu1 %v3452_v17  ;;  %v3563_v50 = vmul.f32 %v6512_v45, %v7949_v46  ;;  %v8197_v45 = vpop.permute.xlu0 %1602 }
 0x3e7   : > { %6519 = vpow2.f32 %v3422_v5 }
 0x3e8   : > { %v8174_v22 = vpop.eup %6513  ;;  %v3595_v47 = vpack.c.bf16 %v3563_v50, %v3563_v50 }
 0x3e9   : > { %v3458_v33 = vsel %vm1640_vm2, %v8174_v22, 0.0 }
 0x3ea   : > { %6182 = vmatmul.mubr.msk.bf16.vlgmr.msra.gmra.mxu1 %vm1640_vm2, %v3595_v47  ;;  %3459 = vadd.xlane.f32.xlu1 %v3458_v33  ;;  %v8199_v17 = vpop.permute.xlu0 %1606  ;;  %v8205_v47 = vpop.permute.xlu1 %1630 }
 0x3eb   : > { %6192 = vmatpush3.bf16.msra.mxu1 %v4039_v34  ;;  %6193 = vmatprep.mubr.msk.bf16.mxu1 %vm6851_vm1, %v8609_v43 }
 0x3ec   : > { %v8182_v12 = vpop.eup %6515  ;;  %6203 = vmatprep.subr.bf16.mxu1 %v8609_v43 }
 0x3ed   : > { %v3464_v46 = vsel %vm1640_vm2, %v8182_v12, 0.0 }
 0x3ee   : > { %3465 = vadd.xlane.f32.xlu1 %v3464_v46  ;;  %v8203_v29 = vpop.permute.xlu0 %1610 }
 0x3f0   : > { %v8187_v48 = vpop.eup %6517 }
 0x3f1   : > { %v3470_v55 = vsel %vm1640_vm2, %v8187_v48, 0.0 }
 0x3f2   : > { %3471 = vadd.xlane.f32.xlu1 %v3470_v55  ;;  %v8209_v57 = vpop.permute.xlu0 %1614 }
 0x3f3   : > { %1632 = vrot.lane.b32.xlu0 %v7811_v41, %s6859_s19 }
 0x3f4   : > { %v8201_v50 = vpop.eup %6519 }
 0x3f5   : > { %v3515_v33 = vsel %vm1640_vm2, %v8201_v50, 0.0 }
 0x3f6   : > { %v8213_v5 = vpop.permute.xlu0 %1618 }
 0x412   : > { %3516 = vadd.xlane.f32.xlu0 %v3515_v33  ;;  %v8216_v33 = vpop.permute.xlu0 %1622 }
 0x413   : > { %v3286_v34 = vpop.xlane.xlu1 %3285 }
 0x414   : > { %v3348_v60 = vsub.f32 %v8009_v2, %v3286_v34 }
 0x416   : > { %v3396_v46 = vmul.f32 1.442695, %v3348_v60 }
 0x417   : > { %v3292_v55 = vpop.xlane.xlu1 %3291 }
 0x418   : > { %6521 = vpow2.f32 %v3396_v46  ;;  %v3350_v16 = vsub.f32 %v8015_v54, %v3292_v55  ;;  %v8222_v46 = vpop.permute.xlu0 %1626 }
 0x41a   : > { %v3400_v43 = vmul.f32 1.442695, %v3350_v16 }
 0x41b   : > { %v3298_v30 = vpop.xlane.xlu1 %3297 }
 0x41c   : > { %6523 = vpow2.f32 %v3400_v43  ;;  %v3352_v24 = vsub.f32 %v8021_v39, %v3298_v30  ;;  %v8228_v39 = vld [vmem:[#allocation2] ss:$0 sm:$0xff] }
 0x41e   : > { %v3404_v26 = vmul.f32 1.442695, %v3352_v24 }
 0x41f   : > { %v3304_v19 = vpop.xlane.xlu1 %3303 }
 0x420   : > { %6525 = vpow2.f32 %v3404_v26  ;;  %v3354_v21 = vsub.f32 %v8029_v44, %v3304_v19  ;;  %v1418_v44 = vadd.f32 %v8228_v39, %v7823_v51 }
 0x422   : > { %v3408_v2 = vmul.f32 1.442695, %v3354_v21  ;;  %v5620_v16 = vmul.f32 -1.442695, %v1418_v44 }
 0x423   : > { %v3310_v34 = vpop.xlane.xlu1 %3309 }
 0x424   : > { %6527 = vpow2.f32 %v3408_v2  ;;  %v3356_v60 = vsub.f32 %v8035_v31, %v3310_v34  ;;  %v1429_v2 = vadd.f32 %v7830_v1, %v8228_v39 }
 0x425   : > { %v8220_v54 = vpop.eup %6521 }
 0x426   : > { %v3412_v55 = vmul.f32 1.442695, %v3356_v60  ;;  %v3476_v43 = vsel %vm1640_vm2, %v8220_v54, 0.0 }
 0x427   : > { %3477 = vadd.xlane.f32.xlu1 %v3476_v43 }
 0x428   : > { %6529 = vpow2.f32 %v3412_v55  ;;  %v5623_v55 = vmul.f32 -1.442695, %v1429_v2 }
 0x429   : > { %v8226_v30 = vpop.eup %6523 }
 0x42a   : > { %v3331_v21 = vpop.xlane.xlu0 %3330  ;;  %v3482_v31 = vsel %vm1640_vm2, %v8226_v30, 0.0 }
 0x42b   : > { %v3363_v19 = vsub.f32 %v8049_v52, %v3331_v21  ;;  %3483 = vadd.xlane.f32.xlu1 %v3482_v31  ;;  %v1437_v52 = vadd.f32 %v8228_v39, %v7854_v10  ;;  %v1445_v21 = vadd.f32 %v7850_v7, %v8228_v39 }
 0x42d   : > { %v8235_v26 = vpop.eup %6525  ;;  %v3426_v24 = vmul.f32 1.442695, %v3363_v19  ;;  %v5625_v31 = vmul.f32 -1.442695, %v1437_v52 }
 0x42e   : > { %v3457_v34 = vpop.xlane.xlu0 %3456  ;;  %v3488_v60 = vsel %vm1640_vm2, %v8235_v26, 0.0 }
 0x42f   : > { %6531 = vpow2.f32 %v3426_v24  ;;  %3489 = vadd.xlane.f32.xlu1 %v3488_v60  ;;  %v5627_v24 = vmul.f32 -1.442695, %v1445_v21  ;;  %v4131_v21 = vsel %vm3623_vm4, %v8195_v37, 0 }
 0x430   : > { %6533 = vrcp.f32 %v3457_v34 }
 0x431   : > { %v8241_v51 = vpop.eup %6527  ;;  %6535 = vpow2.f32 %v5620_v16 }
 0x432   : > { %v3463_v43 = vpop.xlane.xlu0 %3462  ;;  %v3494_v44 = vsel %vm1640_vm2, %v8241_v51, 0.0 }
 0x433   : > { %3495 = vadd.xlane.f32.xlu1 %v3494_v44  ;;  %6537 = vrcp.f32 %v3463_v43 }
 0x434   : > { %6539 = vpow2.f32 %v5623_v55 }
 0x435   : > { %v8247_v1 = vpop.eup %6529  ;;  %6541 = vpow2.f32 %v5625_v31 }
 0x436   : > { %8655 = vst [vmem:[#allocation28_spill] sm:$0xff] %v8247_v1  ;;  %v3500_v19 = vsel %vm1640_vm2, %v8247_v1, 0.0  ;;  %v3469_v10 = vpop.xlane.xlu0 %3468  ;;  %v3316_v1 = vpop.xlane.xlu1 %3315 }
 0x437   : > { %3501 = vadd.xlane.f32.xlu1 %v3500_v19  ;;  %6543 = vrcp.f32 %v3469_v10  ;;  %v8658_v10 = vmov 0.0  }
 0x438   : > { %6545 = vpow2.f32 %v5627_v24 }
 0x43a   : > { %v3475_v44 = vpop.xlane.xlu0 %3474 }
 0x43b   : > { %6547 = vrcp.f32 %v3475_v44  ;;  %v4223_v44 = vsel %vm3623_vm4, %v8197_v45, 0 }
 0x43c   : > { %v8253_v16 = vpop.eup %6531 }
 0x43d   : > { %8656 = vst [vmem:[#allocation29_spill] sm:$0xff] %v8253_v16  ;;  %v3521_v2 = vsel %vm1640_vm2, %v8253_v16, 0.0  ;;  %v6534_v34 = vpop.eup %6533 }
 0x43e   : > { %3522 = vadd.xlane.f32.xlu0 %v3521_v2  ;;  %v6536_v60 = vpop.eup %6535  ;;  %v3565_v7 = vmul.f32 %v6534_v34, %v8060_v4 }
 0x43f   : > { %v1472_v43 = vadd.f32 1.0, %v6536_v60 }
 0x440   : > { %v3597_v55 = vpack.c.bf16 %v3565_v7, %v3565_v7  ;;  %v6538_v52 = vpop.eup %6537 }
 0x441   : > { %v6540_v19 = vpop.eup %6539  ;;  %v3567_v4 = vmul.f32 %v6538_v52, %v8072_v20  ;;  %6549 = vrcp.f32 %v1472_v43  ;;  %v3322_v52 = vpop.xlane.xlu1 %3321 }
 0x442   : > { %6194 = vmatmul.mubr.msk.bf16.vlgmr.msra.gmra.mxu1 %vm1640_vm2, %v3597_v55  ;;  %v1475_v24 = vadd.f32 1.0, %v6540_v19  ;;  %v6542_v34 = vpop.eup %6541 }
 0x443   : > { %6204 = vmatpush3.bf16.msra.mxu1 %v4131_v21  ;;  %6205 = vmatprep.mubr.msk.bf16.mxu1 %vm6851_vm1, %v8658_v10  ;;  %v3599_v37 = vpack.c.bf16 %v3567_v4, %v3567_v4  ;;  %v1477_v55 = vadd.f32 1.0, %v6542_v34  ;;  %v3481_v21 = vpop.xlane.xlu0 %3480  ;;  %v4315_v4 = vsel %vm3623_vm4, %v8199_v17, 0  ;;  %v3360_v17 = vsub.f32 %v8054_v40, %v3322_v52 }
 0x444   : > { %v8261_v31 = vpop.f32.mrf.mxu0  ;;  %6215 = vmatprep.subr.bf16.mxu1 %v8658_v10  ;;  %v6544_v7 = vpop.eup %6543  ;;  %6551 = vrcp.f32 %v1475_v24  ;;  %v3358_v24 = vsub.f32 %v8042_v3, %v3316_v1  ;;  %v1421_v1 = vadd.f32 %v8228_v39, %v7836_v61 }
 0x445   : > { %8657 = vst [vmem:[#allocation30_spill] sm:$0xff] %v8261_v31  ;;  %v6546_v16 = vpop.eup %6545  ;;  %6553 = vrcp.f32 %v3481_v21  ;;  %v3328_v3 = vpop.xlane.xlu1 %3327 }
 0x446   : > { %v6141_v2 = vpop.f32.mrf.mxu0  ;;  %v1479_v20 = vadd.f32 1.0, %v6546_v16  ;;  %6555 = vrcp.f32 %v1477_v55  ;;  %v3416_v34 = vmul.f32 1.442695, %v3358_v24  ;;  %v5621_v40 = vmul.f32 -1.442695, %v1421_v1 }
 0x447   : > { %v4591_v1 = vsel %vm3623_vm4, %v8213_v5, 0 }
 0x448   : > { %v3664_v60 = vpop.f32.mrf.mxu0  ;;  %1634 = vrot.lane.b32.xlu1 %v7984_v11, %s6859_s19  ;;  %v3569_v11 = vmul.f32 %v6544_v7, %v8080_v56  ;;  %v6548_v19 = vpop.eup %6547  ;;  %6557 = vrcp.f32 %v1479_v20 }
 0x449   : > { %v3571_v56 = vmul.f32 %v6548_v19, %v8085_v63  ;;  %v3362_v63 = vsub.f32 %v8063_v6, %v3328_v3 }
 0x44a   : > { %v6142_v31 = vpop.f32.mrf.mxu0  ;;  %6206 = vmatmul.mubr.msk.bf16.vlgmr.msra.gmra.mxu1 %vm1640_vm2, %v3599_v37  ;;  %v3601_v43 = vpack.c.bf16 %v3569_v11, %v3569_v11  ;;  %v3420_v11 = vmul.f32 1.442695, %v3360_v17 }
 0x44b   : > { %6216 = vmatpush3.bf16.msra.mxu1 %v4223_v44  ;;  %6217 = vmatprep.mubr.msk.bf16.mxu1 %vm6851_vm1, %v8658_v10  ;;  %v3487_v31 = vpop.xlane.xlu0 %3486  ;;  %v3603_v60 = vpack.c.bf16 %v3571_v56, %v3571_v56  ;;  %v4407_v44 = vsel %vm3623_vm4, %v8203_v29, 0  ;;  %v3424_v61 = vmul.f32 1.442695, %v3362_v63  ;;  %v1426_v29 = vadd.f32 %v7819_v49, %v8228_v39 }
 0x44c   : > { %6227 = vmatprep.subr.bf16.mxu1 %v8658_v10  ;;  %6559 = vrcp.f32 %v3487_v31  ;;  %v4499_v56 = vsel %vm3623_vm4, %v8209_v57, 0 }
 0x44d   : > { %6561 = vpow2.f32 %v3416_v34  ;;  %v5622_v24 = vmul.f32 -1.442695, %v1426_v29 }
 0x44e   : > { %v6550_v45 = vpop.eup %6549 }
 0x44f   : > { %v5132_v16 = vadd.f32 1.0, %v6550_v45  ;;  %v3493_v7 = vpop.xlane.xlu0 %3492 }
 0x450   : > { %6563 = vrcp.f32 %v3493_v7 }
 0x451   : > { %v6552_v2 = vpop.eup %6551  ;;  %6565 = vpow2.f32 %v3420_v11 }
 0x452   : > { %6218 = vmatmul.mubr.msk.bf16.vlgmr.msra.gmra.mxu1 %vm1640_vm2, %v3601_v43  ;;  %v6554_v37 = vpop.eup %6553  ;;  %v5135_v55 = vadd.f32 1.0, %v6552_v2  ;;  %6567 = vpow2.f32 %v5621_v40 }
 0x453   : > { %6228 = vmatpush3.bf16.msra.mxu1 %v4315_v4  ;;  %6229 = vmatprep.mubr.msk.bf16.mxu1 %vm6851_vm1, %v8658_v10  ;;  %v6556_v21 = vpop.eup %6555  ;;  %v3573_v20 = vmul.f32 %v6554_v37, %v8092_v13  ;;  %v1434_v13 = vadd.f32 %v8228_v39, %v7846_v0  ;;  %6569 = vpow2.f32 %v3424_v61  ;;  %v1442_v0 = vadd.f32 %v7839_v14, %v8228_v39 }
 0x454   : > { %1636 = vrot.lane.b32.xlu0 %v7821_v8, %s6859_s19  ;;  %6239 = vmatprep.subr.bf16.mxu1 %v8658_v10  ;;  %v5137_v6 = vadd.f32 1.0, %v6556_v21 }
 0x455   : > { %v6558_v52 = vpop.eup %6557  ;;  %v3605_v43 = vpack.c.bf16 %v3573_v20, %v3573_v20  ;;  %v5626_v3 = vmul.f32 -1.442695, %v1442_v0  ;;  %v4683_v20 = vsel %vm3623_vm4, %v8216_v33, 0 }
 0x456   : > { %v3499_v31 = vpop.xlane.xlu0 %3498  ;;  %v5139_v4 = vadd.f32 1.0, %v6558_v52 }
 0x458   : > { %5142 = vperm.xlu0 %6420, %v5132_v16   ;;  %v5624_v16 = vmul.f32 -1.442695, %v1434_v13 }
 0x459   : > { %v6560_v19 = vpop.eup %6559 }
 0x45a   : > { %6230 = vmatmul.mubr.msk.bf16.vlgmr.msra.gmra.mxu1 %vm1640_vm2, %v3603_v60  ;;  %v3575_v49 = vmul.f32 %v6560_v19, %v8101_v32  ;;  %v8310_v57 = vpop.eup %6561 }
 0x45b   : > { %6240 = vmatpush3.bf16.msra.mxu1 %v4407_v44  ;;  %6241 = vmatprep.mubr.msk.bf16.mxu1 %vm6851_vm1, %v8658_v10  ;;  %v3506_v60 = vsel %vm1640_vm2, %v8310_v57, 0.0 }
 0x45c   : > { %5157 = vperm.xlu0 %6420, %v5135_v55   ;;  %6251 = vmatprep.subr.bf16.mxu1 %v8658_v10  ;;  %v3607_v34 = vpack.c.bf16 %v3575_v49, %v3575_v49 }
 0x45d   : > { %v6564_v17 = vpop.eup %6563 }
 0x45e   : > { %v3505_v32 = vpop.xlane.xlu0 %3504  ;;  %v8317_v14 = vpop.eup %6565  ;;  %v3577_v37 = vmul.f32 %v6564_v17, %v8114_v53 }
 0x45f   : > { %v6568_v63 = vpop.eup %6567  ;;  %v3512_v7 = vsel %vm1640_vm2, %v8317_v14, 0.0 }
 0x460   : > { %5167 = vperm.xlu0 %6420, %v5137_v6   ;;  %v8323_v5 = vpop.eup %6569  ;;  %v3609_v21 = vpack.c.bf16 %v3577_v37, %v3577_v37  ;;  %v1473_v11 = vadd.f32 1.0, %v6568_v63 }
 0x461   : > { %v3518_v61 = vsel %vm1640_vm2, %v8323_v5, 0.0 }
 0x462   : > { %v3436_v45 = vpop.xlane.xlu1 %3435  ;;  %6242 = vmatmul.mubr.msk.bf16.vlgmr.msra.gmra.mxu1 %vm1640_vm2, %v3605_v43 }
 0x463   : > { %6571 = vrcp.f32 %v3436_v45  ;;  %6252 = vmatpush3.bf16.msra.mxu1 %v4499_v56  ;;  %6253 = vmatprep.mubr.msk.bf16.mxu1 %vm6851_vm1, %v8658_v10 }
 0x464   : > { %5177 = vperm.xlu0 %6420, %v5139_v4   ;;  %6573 = vrcp.f32 %v3499_v31  ;;  %6263 = vmatprep.subr.bf16.mxu1 %v8658_v10 }
 0x465   : > { %6575 = vpow2.f32 %v5622_v24  ;;  %v4775_v24 = vsel %vm3623_vm4, %v8222_v46, 0 }
 0x466   : > { %v3511_v40 = vpop.xlane.xlu0 %3510 }
 0x467   : > { %v3442_v2 = vpop.xlane.xlu1 %3441 }
 0x468   : > { %6577 = vrcp.f32 %v3442_v2 }
 0x469   : > { %6579 = vpow2.f32 %v5624_v16 }
 0x46a   : > { %6254 = vmatmul.mubr.msk.bf16.vlgmr.msra.gmra.mxu1 %vm1640_vm2, %v3607_v34  ;;  %6581 = vrcp.f32 %v3505_v32 }
 0x46b   : > { %6264 = vmatpush3.bf16.msra.mxu1 %v4591_v1  ;;  %v3448_v39 = vpop.xlane.xlu1 %3447  ;;  %6265 = vmatprep.mubr.msk.bf16.mxu1 %vm6851_vm1, %v8658_v10  ;;  %6583 = vpow2.f32 %v5626_v3 }
 0x46c   : > { %3507 = vadd.xlane.f32.xlu1 %v3506_v60  ;;  %6275 = vmatprep.subr.bf16.mxu1 %v8658_v10  ;;  %6585 = vrcp.f32 %v3448_v39 }
 0x46d   : > { %6587 = vrcp.f32 %v3511_v40 }
 0x46e   : > { %6589 = vrcp.f32 %v1473_v11 }
 0x46f   : > { %v3454_v29 = vpop.xlane.xlu1 %3453 }
 0x470   : > { %v6572_v55 = vpop.eup %6571  ;;  %3513 = vadd.xlane.f32.xlu1 %v3512_v7  ;;  %6591 = vrcp.f32 %v3454_v29 }
 0x471   : > { %v3558_v44 = vmul.f32 %v6572_v55, %v8143_v35  ;;  %v6574_v53 = vpop.eup %6573  ;;  %v3809_v35 = vsel %vm3623_vm4, %v7811_v41, 0 }
 0x472   : > { %6266 = vmatmul.mubr.msk.bf16.vlgmr.msra.gmra.mxu1 %vm1640_vm2, %v3609_v21  ;;  %v6576_v52 = vpop.eup %6575  ;;  %v3579_v19 = vmul.f32 %v6574_v53, %v8129_v15 }
 0x473   : > { %v3590_v6 = vpack.c.bf16 %v3558_v44, %v3558_v44  ;;  %6276 = vmatpush3.bf16.msra.mxu1 %v4683_v20  ;;  %6277 = vmatprep.mubr.msk.bf16.mxu1 %vm6851_vm1, %v8658_v10  ;;  %v1474_v13 = vadd.f32 1.0, %v6576_v52  ;;  %v3460_v0 = vpop.xlane.xlu1 %3459 }
 0x474   : > { %3519 = vadd.xlane.f32.xlu1 %v3518_v61  ;;  %6287 = vmatprep.subr.bf16.mxu1 %v8658_v10  ;;  %v3611_v31 = vpack.c.bf16 %v3579_v19, %v3579_v19 }
 0x475   : > { %v6578_v43 = vpop.eup %6577  ;;  %6152 = vmatmul.mubr.msk.bf16.vlgmr.msra.gmra.mxu0 %vm1640_vm2, %v3590_v6  ;;  %6593 = vrcp.f32 %v1474_v13 }
 0x476   : > { %6162 = vmatpush3.bf16.msra.mxu0 %v3809_v35  ;;  %v6580_v33 = vpop.eup %6579  ;;  %6163 = vmatprep.mubr.msk.bf16.mxu0 %vm6851_vm1, %v8658_v10  ;;  %v3560_v15 = vmul.f32 %v6578_v43, %v8151_v36  ;;  %v3901_v36 = vsel %vm3623_vm4, %v7821_v8, 0  ;;  %v4867_v8 = vsel %vm3623_vm4, %v8205_v47, 0 }
 0x477   : > { %6173 = vmatprep.subr.bf16.mxu0 %v8658_v10  ;;  %v6582_v45 = vpop.eup %6581  ;;  %v1476_v41 = vadd.f32 1.0, %v6580_v33  ;;  %v3466_v39 = vpop.xlane.xlu1 %3465  ;;  %v4177_v33 = vsel %vm3623_vm4, %v8051_v59, 0 }
 0x478   : > { %v6584_v4 = vpop.eup %6583  ;;  %v3592_v56 = vpack.c.bf16 %v3560_v15, %v3560_v15  ;;  %v3581_v16 = vmul.f32 %v6582_v45, %v8138_v38 }
 0x479   : > { %v6586_v49 = vpop.eup %6585  ;;  %6595 = vrcp.f32 %v1476_v41  ;;  %v1478_v46 = vadd.f32 1.0, %v6584_v4 }
 0x47a   : > { %6278 = vmatmul.mubr.msk.bf16.vlgmr.msra.gmra.mxu1 %vm1640_vm2, %v3611_v31  ;;  %6597 = vrcp.f32 %v3460_v0  ;;  %v3562_v2 = vmul.f32 %v6586_v49, %v8159_v58  ;;  %v3613_v34 = vpack.c.bf16 %v3581_v16, %v3581_v16  ;;  %v6588_v17 = vpop.eup %6587  ;;  %v3993_v58 = vsel %vm3623_vm4, %v8025_v28, 0 }
 0x47b   : > { %6288 = vmatpush3.bf16.msra.mxu1 %v4775_v24  ;;  %6289 = vmatprep.mubr.msk.bf16.mxu1 %vm6851_vm1, %v8658_v10  ;;  %v6590_v3 = vpop.eup %6589  ;;  %6599 = vrcp.f32 %v1478_v46  ;;  %v3583_v37 = vmul.f32 %v6588_v17, %v8148_v23  ;;  %v3472_v20 = vpop.xlane.xlu1 %3471  ;;  %v4269_v31 = vsel %vm3623_vm4, %v8067_v25, 0 }
 0x47c   : > { %6299 = vmatprep.subr.bf16.mxu1 %v8658_v10  ;;  %v3594_v1 = vpack.c.bf16 %v3562_v2, %v3562_v2  ;;  %6601 = vrcp.f32 %v3466_v39  ;;  %v5133_v7 = vadd.f32 1.0, %v6590_v3  ;;  %v4453_v39 = vsel %vm3623_vm4, %v8087_v18, 0 }
 0x47d   : > { %6164 = vmatmul.mubr.msk.bf16.vlgmr.msra.gmra.mxu0 %vm1640_vm2, %v3592_v56  ;;  %v6592_v60 = vpop.eup %6591  ;;  %v3615_v23 = vpack.c.bf16 %v3583_v37, %v3583_v37  ;;  %6603 = vrcp.f32 %v3472_v20  ;;  %v8412_v56 = vpop.permute.xlu0 %1632 }
 0x47e   : > { %6174 = vmatpush3.bf16.msra.mxu0 %v3901_v36  ;;  %6175 = vmatprep.mubr.msk.bf16.mxu0 %vm6851_vm1, %v8658_v10  ;;  %v3564_v55 = vmul.f32 %v6592_v60, %v8168_v9  ;;  %v4085_v9 = vsel %vm3623_vm4, %v8039_v27, 0 }
 0x47f   : > { %6185 = vmatprep.subr.bf16.mxu0 %v8658_v10 }
 0x480   : > { %v3596_v11 = vpack.c.bf16 %v3564_v55, %v3564_v55 }
 0x481   : > { %v8358_v38 = vpop.f32.mrf.mxu1 }
 0x482   : > { %6290 = vmatmul.mubr.msk.bf16.vlgmr.msra.gmra.mxu1 %vm1640_vm2, %v3613_v34  ;;  %v6594_v28 = vpop.eup %6593 }
 0x483   : > { %v6147_v32 = vpop.f32.mrf.mxu1  ;;  %6300 = vmatpush3.bf16.msra.mxu1 %v4867_v8  ;;  %6301 = vmatprep.mubr.msk.bf16.mxu1 %vm6851_vm1, %v8658_v10  ;;  %v5134_v53 = vadd.f32 1.0, %v6594_v28 }
 0x484   : > { %6311 = vmatprep.subr.bf16.mxu1 %v8658_v10 }
 0x485   : > { %v3710_v63 = vpop.f32.mrf.mxu1  ;;  %1638 = vrot.lane.b32.xlu1 %v7990_v42, %s6859_s19  ;;  %6176 = vmatmul.mubr.msk.bf16.vlgmr.msra.gmra.mxu0 %vm1640_vm2, %v3594_v1 }
 0x486   : > { %6186 = vmatpush3.bf16.msra.mxu0 %v3993_v58  ;;  %6187 = vmatprep.mubr.msk.bf16.mxu0 %vm6851_vm1, %v8658_v10  ;;  %v6596_v42 = vpop.eup %6595 }
 0x487   : > { %v6148_v47 = vpop.f32.mrf.mxu1  ;;  %6197 = vmatprep.subr.bf16.mxu0 %v8658_v10  ;;  %v6598_v40 = vpop.eup %6597  ;;  %v5136_v52 = vadd.f32 1.0, %v6596_v42  ;;  %v8660_v42 = vld [vmem:[#allocation25_spill] sm:$0xff] }
 0x488   : > { %v3566_v29 = vmul.f32 %v6598_v40, %v8174_v22  ;;  %v6600_v43 = vpop.eup %6599  ;;  %v8661_v40 = vld [vmem:[#allocation26_spill] sm:$0xff] }
 0x489   : > { %v8376_v21 = vpop.f32.mrf.mxu1  ;;  %5147 = vperm.xlu1 %6421, %v5133_v7   ;;  %v5138_v19 = vadd.f32 1.0, %v6600_v43  ;;  %v6602_v27 = vpop.eup %6601  ;;  %v8659_v7 = vld [vmem:[#allocation24_spill] sm:$0xff]  ;;  %v4729_v20 = vsel %vm3623_vm4, %v8661_v40, 0 }
 0x48a   : > { %6302 = vmatmul.mubr.msk.bf16.vlgmr.msra.gmra.mxu1 %vm1640_vm2, %v3615_v23  ;;  %v3598_v35 = vpack.c.bf16 %v3566_v29, %v3566_v29  ;;  %v3568_v13 = vmul.f32 %v6602_v27, %v8182_v12  ;;  %v6604_v15 = vpop.eup %6603  ;;  %v4361_v12 = vsel %vm3623_vm4, %v8076_v62, 0  ;;  %v4545_v55 = vsel %vm3623_vm4, %v8659_v7, 0 }
 0x48b   : > { %v6159_v44 = vpop.f32.mrf.mxu1  ;;  %6313 = vmatprep.mubr.msk.bf16.mxu1 %vm6851_vm1, %v8658_v10  ;;  %v3570_v59 = vmul.f32 %v6604_v15, %v8187_v48 }
 0x48c   : > { %v3600_v22 = vpack.c.bf16 %v3568_v13, %v3568_v13  ;;  %v4637_v44 = vsel %vm3623_vm4, %v8660_v42, 0 }
 0x48d   : > { %v3802_v61 = vpop.f32.mrf.mxu1  ;;  %5152 = vperm.xlu1 %6421, %v5134_v53   ;;  %6188 = vmatmul.mubr.msk.bf16.vlgmr.msra.gmra.mxu0 %vm1640_vm2, %v3596_v11  ;;  %v3602_v41 = vpack.c.bf16 %v3570_v59, %v3570_v59 }
 0x48e   : > { %6198 = vmatpush3.bf16.msra.mxu0 %v4085_v9  ;;  %6199 = vmatprep.mubr.msk.bf16.mxu0 %vm6851_vm1, %v8658_v10  ;;  %v8662_v9 = vld [vmem:[#allocation28_spill] sm:$0xff] }
 0x48f   : > { %v6160_v6 = vpop.f32.mrf.mxu1  ;;  %6209 = vmatprep.subr.bf16.mxu0 %v8658_v10 }
 0x491   : > { %5162 = vperm.xlu1 %6421, %v5136_v52   ;;  %v8663_v52 = vld [vmem:[#allocation27_spill] sm:$0xff] }
 0x495   : > { %5172 = vperm.xlu1 %6421, %v5138_v19   ;;  %6200 = vmatmul.mubr.msk.bf16.vlgmr.msra.gmra.mxu0 %vm1640_vm2, %v3598_v35 }
 0x496   : > { %6210 = vmatpush3.bf16.msra.mxu0 %v4177_v33  ;;  %6211 = vmatprep.mubr.msk.bf16.mxu0 %vm6851_vm1, %v8658_v10  ;;  %v8664_v33 = vld [vmem:[#allocation29_spill] sm:$0xff] }
 0x497   : > { %6221 = vmatprep.subr.bf16.mxu0 %v8658_v10 }
 0x49b   : > { %v3517_v16 = vpop.xlane.xlu0 %3516 }
 0x49d   : > { %6212 = vmatmul.mubr.msk.bf16.vlgmr.msra.gmra.mxu0 %vm1640_vm2, %v3600_v22 }
 0x49e   : > { %6222 = vmatpush3.bf16.msra.mxu0 %v4269_v31  ;;  %6223 = vmatprep.mubr.msk.bf16.mxu0 %vm6851_vm1, %v8658_v10 }
 0x49f   : > { %6233 = vmatprep.subr.bf16.mxu0 %v8658_v10 }
 0x4a2   : > { %v8402_v45 = vpop.f32.mrf.mxu1 }
 0x4a4   : > { %v6171_v4 = vpop.f32.mrf.mxu1 }
 0x4a5   : > { %6224 = vmatmul.mubr.msk.bf16.vlgmr.msra.gmra.mxu0 %vm1640_vm2, %v3602_v41 }
 0x4a6   : > { %v3894_v25 = vpop.f32.mrf.mxu1  ;;  %6234 = vmatpush3.bf16.msra.mxu0 %v4361_v12  ;;  %6235 = vmatprep.mubr.msk.bf16.mxu0 %vm6851_vm1, %v8658_v10 }
 0x4a7   : > { %6245 = vmatprep.subr.bf16.mxu0 %v8658_v10 }
 0x4a8   : > { %v6172_v24 = vpop.f32.mrf.mxu1 }
 0x4aa   : > { %v8410_v48 = vpop.f32.mrf.mxu1 }
 0x4ac   : > { %v6183_v49 = vpop.f32.mrf.mxu1 }
 0x4ae   : > { %v3986_v0 = vpop.f32.mrf.mxu1 }
 0x4af   : > { %v4913_v0 = vsel %vm3623_vm4, %v8412_v56, 0 }
 0x4b0   : > { %v6184_v36 = vpop.f32.mrf.mxu1  ;;  %v3478_v46 = vpop.xlane.xlu1 %3477 }
 0x4b1   : > { %6605 = vrcp.f32 %v3478_v46 }
 0x4b2   : > { %6607 = vrcp.f32 %v3517_v16 }
 0x4b4   : > { %v3484_v62 = vpop.xlane.xlu1 %3483 }
 0x4b5   : > { %6609 = vrcp.f32 %v3484_v62 }
 0x4b8   : > { %v3490_v2 = vpop.xlane.xlu1 %3489 }
 0x4b9   : > { %6611 = vrcp.f32 %v3490_v2 }
 0x4bc   : > { %v3496_v34 = vpop.xlane.xlu1 %3495 }
 0x4bd   : > { %6613 = vrcp.f32 %v3496_v34 }
 0x4be   : > { %v6606_v17 = vpop.eup %6605 }
 0x4bf   : > { %v3572_v3 = vmul.f32 %v6606_v17, %v8220_v54  ;;  %v6608_v8 = vpop.eup %6607 }
 0x4c0   : > { %v3502_v32 = vpop.xlane.xlu1 %3501  ;;  %v3585_v58 = vmul.f32 %v6608_v8, %v8201_v50 }
 0x4c1   : > { %v3604_v1 = vpack.c.bf16 %v3572_v3, %v3572_v3  ;;  %6615 = vrcp.f32 %v3502_v32 }
 0x4c2   : > { %v6610_v60 = vpop.eup %6609  ;;  %v3617_v47 = vpack.c.bf16 %v3585_v58, %v3585_v58 }
 0x4c3   : > { %6236 = vmatmul.mubr.msk.bf16.vlgmr.msra.gmra.mxu0 %vm1640_vm2, %v3604_v1  ;;  %v3574_v63 = vmul.f32 %v6610_v60, %v8226_v30 }
 0x4c4   : > { %6246 = vmatpush3.bf16.msra.mxu0 %v4453_v39  ;;  %v1635_v37 = vpop.permute.xlu1 %1634  ;;  %6247 = vmatprep.mubr.msk.bf16.mxu0 %vm6851_vm1, %v8658_v10 }
 0x4c5   : > { %v4959_v54 = vsel %vm3623_vm4, %v1635_v37, 0  ;;  %6257 = vmatprep.subr.bf16.mxu0 %v8658_v10  ;;  %v3606_v18 = vpack.c.bf16 %v3574_v63, %v3574_v63 }
 0x4c6   : > { %6312 = vmatpush3.bf16.msra.mxu1 %v4959_v54  ;;  %v6612_v50 = vpop.eup %6611 }
 0x4c7   : > { %6323 = vmatprep.subr.bf16.mxu1 %v8658_v10  ;;  %v3576_v30 = vmul.f32 %v6612_v50, %v8235_v26  ;;  %v3523_v29 = vpop.xlane.xlu0 %3522 }
 0x4c8   : > { %6617 = vrcp.f32 %v3523_v29 }
 0x4c9   : > { %6314 = vmatmul.mubr.msk.bf16.vlgmr.msra.gmra.mxu1 %vm1640_vm2, %v3617_v47  ;;  %v3608_v28 = vpack.c.bf16 %v3576_v30, %v3576_v30 }
 0x4ca   : > { %6325 = vmatprep.mubr.msk.bf16.mxu1 %vm6851_vm1, %v8658_v10  ;;  %v6614_v23 = vpop.eup %6613 }
 0x4cb   : > { %6248 = vmatmul.mubr.msk.bf16.vlgmr.msra.gmra.mxu0 %vm1640_vm2, %v3606_v18  ;;  %v3578_v53 = vmul.f32 %v6614_v23, %v8241_v51  ;;  %v4821_v51 = vsel %vm3623_vm4, %v8663_v52, 0  ;;  %v1637_v46 = vpop.permute.xlu0 %1636 }
 0x4cc   : > { %6258 = vmatpush3.bf16.msra.mxu0 %v4545_v55  ;;  %6259 = vmatprep.mubr.msk.bf16.mxu0 %vm6851_vm1, %v8658_v10  ;;  %v5005_v3 = vsel %vm3623_vm4, %v1637_v46, 0 }
 0x4cd   : > { %6269 = vmatprep.subr.bf16.mxu0 %v8658_v10  ;;  %v3610_v11 = vpack.c.bf16 %v3578_v53, %v3578_v53 }
 0x4ce   : > { %v6616_v26 = vpop.eup %6615 }
 0x4cf   : > { %v3580_v61 = vmul.f32 %v6616_v26, %v8662_v9 }
 0x4d1   : > { %v3612_v6 = vpack.c.bf16 %v3580_v61, %v3580_v61 }
 0x4d3   : > { %6260 = vmatmul.mubr.msk.bf16.vlgmr.msra.gmra.mxu0 %vm1640_vm2, %v3608_v28 }
 0x4d4   : > { %6270 = vmatpush3.bf16.msra.mxu0 %v4637_v44  ;;  %6271 = vmatprep.mubr.msk.bf16.mxu0 %vm6851_vm1, %v8658_v10 }
 0x4d5   : > { %6281 = vmatprep.subr.bf16.mxu0 %v8658_v10  ;;  %v6618_v35 = vpop.eup %6617 }
 0x4d6   : > { %v3587_v13 = vmul.f32 %v6618_v35, %v8664_v33 }
 0x4d8   : > { %v3619_v41 = vpack.c.bf16 %v3587_v13, %v3587_v13 }
 0x4db   : > { %6272 = vmatmul.mubr.msk.bf16.vlgmr.msra.gmra.mxu0 %vm1640_vm2, %v3610_v11 }
 0x4dc   : > { %6282 = vmatpush3.bf16.msra.mxu0 %v4729_v20  ;;  %6283 = vmatprep.mubr.msk.bf16.mxu0 %vm6851_vm1, %v8658_v10 }
 0x4dd   : > { %6293 = vmatprep.subr.bf16.mxu0 %v8658_v10 }
 0x4e3   : > { %6284 = vmatmul.mubr.msk.bf16.vlgmr.msra.gmra.mxu0 %vm1640_vm2, %v3612_v6 }
 0x4e4   : > { %6294 = vmatpush3.bf16.msra.mxu0 %v4821_v51  ;;  %6295 = vmatprep.mubr.msk.bf16.mxu0 %vm6851_vm1, %v8658_v10 }
 0x4e5   : > { %6305 = vmatprep.subr.bf16.mxu0 %v8658_v10 }
 0x4f5   : > { %v3508_v43 = vpop.xlane.xlu1 %3507 }
 0x4f6   : > { %6619 = vrcp.f32 %v3508_v43 }
 0x4f9   : > { %v3514_v19 = vpop.xlane.xlu1 %3513 }
 0x4fa   : > { %6621 = vrcp.f32 %v3514_v19 }
 0x4fd   : > { %v3520_v27 = vpop.xlane.xlu1 %3519 }
 0x4fe   : > { %6623 = vrcp.f32 %v3520_v27 }
 0x501   : > { %v1639_v22 = vpop.permute.xlu1 %1638 }
 0x502   : > { %v5051_v15 = vsel %vm3623_vm4, %v1639_v22, 0  ;;  %v4075_v59 = vpop.f32.mrf.mxu1 }
 0x503   : > { %v6620_v31 = vpop.eup %6619  ;;  %6324 = vmatpush3.bf16.msra.mxu1 %v5051_v15  ;;  %v5094_v47 = vadd.f32 %v4075_v59, %v8358_v38 }
 0x504   : > { %v3582_v4 = vmul.f32 %v6620_v31, %v8310_v57  ;;  %v6195_v12 = vpop.f32.mrf.mxu1 }
 0x505   : > { %v8480_v12 = vpop.permute.xlu0 %5142 }
 0x506   : > { %v3614_v25 = vpack.c.bf16 %v3582_v4, %v3582_v4  ;;  %6326 = vmatmul.mubr.msk.bf16.vlgmr.msra.gmra.mxu1 %vm1640_vm2, %v3619_v41  ;;  %v4078_v49 = vpop.f32.mrf.mxu1 }
 0x507   : > { %v6622_v24 = vpop.eup %6621 }
 0x508   : > { %6296 = vmatmul.mubr.msk.bf16.vlgmr.msra.gmra.mxu0 %vm1640_vm2, %v3614_v25  ;;  %v6196_v16 = vpop.f32.mrf.mxu1  ;;  %v3584_v36 = vmul.f32 %v6622_v24, %v8317_v14 }
 0x509   : > { %6306 = vmatpush3.bf16.msra.mxu0 %v4913_v0  ;;  %6307 = vmatprep.mubr.msk.bf16.mxu0 %vm6851_vm1, %v8658_v10 }
 0x50a   : > { %6317 = vmatprep.subr.bf16.mxu0 %v8658_v10  ;;  %v4167_v57 = vpop.f32.mrf.mxu1  ;;  %v3616_v2 = vpack.c.bf16 %v3584_v36, %v3584_v36 }
 0x50b   : > { %v6624_v34 = vpop.eup %6623 }
 0x50c   : > { %v6207_v62 = vpop.f32.mrf.mxu1  ;;  %v3586_v8 = vmul.f32 %v6624_v34, %v8323_v5  ;;  %v5096_v5 = vadd.f32 %v4167_v57, %v8376_v21 }
 0x50d   : > { %v5158_v62 = vpop.permute.xlu0 %5157 }
 0x50e   : > { %v4170_v17 = vpop.f32.mrf.mxu1  ;;  %v3618_v1 = vpack.c.bf16 %v3586_v8, %v3586_v8 }
 0x510   : > { %6308 = vmatmul.mubr.msk.bf16.vlgmr.msra.gmra.mxu0 %vm1640_vm2, %v3616_v2  ;;  %v6208_v56 = vpop.f32.mrf.mxu1  ;;  %v5148_v2 = vpop.permute.xlu1 %5147 }
 0x511   : > { %6318 = vmatpush3.bf16.msra.mxu0 %v5005_v3  ;;  %6319 = vmatprep.mubr.msk.bf16.mxu0 %vm6851_vm1, %v8658_v10 }
 0x512   : > { %v4259_v14 = vpop.f32.mrf.mxu1 }
 0x513   : > { %v5098_v53 = vadd.f32 %v4259_v14, %v8402_v45 }
 0x514   : > { %v6219_v32 = vpop.f32.mrf.mxu1 }
 0x516   : > { %v4262_v60 = vpop.f32.mrf.mxu1 }
 0x518   : > { %6320 = vmatmul.mubr.msk.bf16.vlgmr.msra.gmra.mxu0 %vm1640_vm2, %v3618_v1  ;;  %v6220_v39 = vpop.f32.mrf.mxu1 }
 0x51a   : > { %v4351_v58 = vpop.f32.mrf.mxu1 }
 0x51b   : > { %v5100_v52 = vadd.f32 %v4351_v58, %v8410_v48  ;;  %v8485_v48 = vld [vmem:[%s8665_s14] ss:$0 sm:$0xff] }
 0x51c   : > { %v6231_v37 = vpop.f32.mrf.mxu1 }
 0x51e   : > { %v4354_v63 = vpop.f32.mrf.mxu1 }
 0x520   : > { %v6232_v54 = vpop.f32.mrf.mxu1 }
 0x522   : > { %v4443_v18 = vpop.f32.mrf.mxu1 }
 0x523   : > { %v5102_v50 = vadd.f32 %v5094_v47, %v4443_v18 }
 0x524   : > { %v6243_v7 = vpop.f32.mrf.mxu1 }
 0x526   : > { %v4446_v55 = vpop.f32.mrf.mxu1 }
 0x528   : > { %v6244_v10 = vpop.f32.mrf.mxu1 }
 0x52a   : > { %v4535_v30 = vpop.f32.mrf.mxu1 }
 0x52b   : > { %v5104_v28 = vadd.f32 %v5096_v5, %v4535_v30 }
 0x52c   : > { %v6255_v23 = vpop.f32.mrf.mxu1 }
 0x52e   : > { %v4538_v42 = vpop.f32.mrf.mxu1 }
 0x530   : > { %v6256_v44 = vpop.f32.mrf.mxu1 }
 0x531   : > { %v8666_v44 = vld [vmem:[#allocation30_spill] sm:$0xff] }
 0x532   : > { %v4627_v11 = vpop.f32.mrf.mxu1 }
 0x533   : > { %v8475_v26 = vadd.f32 %v5098_v53, %v4627_v11 }
 0x534   : > { %v6267_v40 = vpop.f32.mrf.mxu1 }
 0x535   : > { %v3753_v20 = vpop.f32.mrf.mxu0 }
 0x536   : > { %v4630_v38 = vpop.f32.mrf.mxu1 }
 0x537   : > { %v6153_v9 = vpop.f32.mrf.mxu0 }
 0x538   : > { %v6268_v61 = vpop.f32.mrf.mxu1 }
 0x539   : > { %v3756_v6 = vpop.f32.mrf.mxu0 }
 0x53a   : > { %v4719_v51 = vpop.f32.mrf.mxu1 }
 0x53b   : > { %v6154_v21 = vpop.f32.mrf.mxu0  ;;  %v8478_v29 = vadd.f32 %v5100_v52, %v4719_v51 }
 0x53c   : > { %v6279_v43 = vpop.f32.mrf.mxu1 }
 0x53d   : > { %v3845_v19 = vpop.f32.mrf.mxu0 }
 0x53e   : > { %v4722_v35 = vpop.f32.mrf.mxu1 }
 0x53f   : > { %v6165_v27 = vpop.f32.mrf.mxu0 }
 0x540   : > { %v6280_v45 = vpop.f32.mrf.mxu1 }
 0x541   : > { %v3848_v33 = vpop.f32.mrf.mxu0 }
 0x542   : > { %v4811_v13 = vpop.f32.mrf.mxu1 }
 0x543   : > { %v6166_v22 = vpop.f32.mrf.mxu0  ;;  %v5110_v15 = vadd.f32 %v5102_v50, %v4811_v13 }
 0x544   : > { %v6291_v31 = vpop.f32.mrf.mxu1 }
 0x545   : > { %v3937_v59 = vpop.f32.mrf.mxu0  ;;  %v5125_v16 = vadd.f32 %v8485_v48, %v5110_v15 }
 0x546   : > { %v4814_v41 = vpop.f32.mrf.mxu1 }
 0x547   : > { %v6177_v4 = vpop.f32.mrf.mxu0  ;;  %v8489_v56 = vmul.f32 %v5148_v2, %v5125_v16  ;;  %v5168_v16 = vpop.permute.xlu0 %5167 }
 0x548   : > { %v6292_v25 = vpop.f32.mrf.mxu1 }
 0x549   : > { %v3940_v24 = vpop.f32.mrf.mxu0 }
 0x54a   : > { %v4903_v49 = vpop.f32.mrf.mxu1 }
 0x54b   : > { %v6178_v0 = vpop.f32.mrf.mxu0  ;;  %v5112_v36 = vadd.f32 %v5104_v28, %v4903_v49 }
 0x54c   : > { %v6303_v57 = vpop.f32.mrf.mxu1 }
 0x54d   : > { %v4029_v46 = vpop.f32.mrf.mxu0  ;;  %v5127_v34 = vadd.f32 %v8485_v48, %v5112_v36  ;;  %v6861_v36 = vmov 1983009808  }
 0x54e   : > { %v4906_v17 = vpop.f32.mrf.mxu1  ;;  %v5093_v53 = vadd.f32 %v4029_v46, %v8666_v44  ;;  %v5191_v57 = vunpack.c.l.s4 %v6861_v36 }
 0x54f   : > { %v6189_v3 = vpop.f32.mrf.mxu0  ;;  %v8491_v8 = vmul.f32 %v5158_v62, %v5127_v34 }
 0x550   : > { %v6304_v14 = vpop.f32.mrf.mxu1  ;;  %v5192_v17 = vunpack.c.0.s8 %v5191_v57 }
 0x551   : > { %v4032_v32 = vpop.f32.mrf.mxu0  ;;  %v5204_v1 = vcombine.low %v8489_v56, %v8491_v8  ;;  %v5205_v60 = vcombine.high %v8489_v56, %v8491_v8 }
 0x552   : > { %v5178_v32 = vpop.permute.xlu0 %5177 }
 0x553   : > { %v6190_v39 = vpop.f32.mrf.mxu0 }
 0x555   : > { %v4121_v58 = vpop.f32.mrf.mxu0 }
 0x556   : > { %v5095_v37 = vadd.f32 %v4121_v58, %v3753_v20 }
 0x557   : > { %v6201_v63 = vpop.f32.mrf.mxu0 }
 0x559   : > { %v4124_v54 = vpop.f32.mrf.mxu0 }
 0x55b   : > { %v6202_v47 = vpop.f32.mrf.mxu0 }
 0x55c   : > { %v5153_v47 = vpop.permute.xlu1 %5152 }
 0x55d   : > { %v4213_v18 = vpop.f32.mrf.mxu0 }
 0x55e   : > { %v5097_v50 = vadd.f32 %v4213_v18, %v3845_v19 }
 0x55f   : > { %v6213_v7 = vpop.f32.mrf.mxu0 }
 0x561   : > { %v4216_v55 = vpop.f32.mrf.mxu0 }
 0x562   : > { %v8667_v55 = vld [vmem:[#allocation23_spill] sm:$0xff] }
 0x563   : > { %v6214_v10 = vpop.f32.mrf.mxu0 }
 0x564   : > { %v5195_v10 = vsub.s32 %v5192_v17, %v8667_v55 }
 0x565   : > { %v4305_v5 = vpop.f32.mrf.mxu0 }
 0x566   : > { %v8497_v30 = vadd.f32 %v4305_v5, %v3937_v59 }
 0x567   : > { %v6225_v28 = vpop.f32.mrf.mxu0 }
 0x569   : > { %v4308_v23 = vpop.f32.mrf.mxu0 }
 0x56b   : > { %v6226_v42 = vpop.f32.mrf.mxu0 }
 0x583   : > { %v4397_v11 = vpop.f32.mrf.mxu0 }
 0x584   : > { %v5101_v40 = vadd.f32 %v5093_v53, %v4397_v11 }
 0x585   : > { %v6237_v38 = vpop.f32.mrf.mxu0 }
 0x587   : > { %v4400_v20 = vpop.f32.mrf.mxu0 }
 0x588   : > { %v5212_v20 = vrot.slane %v5204_v1, %v5195_v10 }
 0x589   : > { %v6238_v9 = vpop.f32.mrf.mxu0  ;;  %v4995_v61 = vpop.f32.mrf.mxu1 }
 0x58a   : > { %v5114_v6 = vadd.f32 %v8475_v26, %v4995_v61  ;;  %v5219_v9 = vrot.slane %v5205_v60, %v5195_v10 }
 0x58b   : > { %v4489_v52 = vpop.f32.mrf.mxu0  ;;  %v6315_v51 = vpop.f32.mrf.mxu1 }
 0x58c   : > { %v5103_v21 = vadd.f32 %v5095_v37, %v4489_v52  ;;  %v5129_v2 = vadd.f32 %v8485_v48, %v5114_v6 }
 0x58d   : > { %v6249_v43 = vpop.f32.mrf.mxu0  ;;  %v4998_v19 = vpop.f32.mrf.mxu1 }
 0x58e   : > { %v5185_v18 = vmul.f32 %v5168_v16, %v5129_v2 }
 0x58f   : > { %v4492_v35 = vpop.f32.mrf.mxu0  ;;  %v6316_v27 = vpop.f32.mrf.mxu1 }
 0x590   : > { %v5163_v27 = vpop.permute.xlu1 %5162 }
 0x591   : > { %v6250_v45 = vpop.f32.mrf.mxu0 }
 0x593   : > { %v4581_v33 = vpop.f32.mrf.mxu0 }
 0x594   : > { %v5105_v13 = vadd.f32 %v5097_v50, %v4581_v33 }
 0x595   : > { %v6261_v22 = vpop.f32.mrf.mxu0 }
 0x597   : > { %v4584_v15 = vpop.f32.mrf.mxu0 }
 0x598   : > { %v6862_v15 = vmov 1934713408  }
 0x599   : > { %v6262_v31 = vpop.f32.mrf.mxu0  ;;  %v5255_v1 = vunpack.c.l.s4 %v6862_v15 }
 0x59b   : > { %v4673_v59 = vpop.f32.mrf.mxu0 }
 0x59c   : > { %v5107_v33 = vadd.f32 %v8497_v30, %v4673_v59 }
 0x59d   : > { %v6273_v41 = vpop.f32.mrf.mxu0 }
 0x59e   : > { %v5173_v41 = vpop.permute.xlu1 %5172 }
 0x59f   : > { %v4676_v4 = vpop.f32.mrf.mxu0 }
 0x5a1   : > { %v6274_v25 = vpop.f32.mrf.mxu0 }
 0x5a2   : > { %v5256_v25 = vunpack.c.0.s8 %v5255_v1 }
 0x5a3   : > { %v4765_v24 = vpop.f32.mrf.mxu0 }
 0x5a4   : > { %v5109_v46 = vadd.f32 %v5101_v40, %v4765_v24  ;;  %v5259_v16 = vsub.s32 %v5256_v25, %v8667_v55 }
 0x5a5   : > { %v6285_v49 = vpop.f32.mrf.mxu0 }
 0x5a6   : > { %v5124_v39 = vadd.f32 %v8485_v48, %v5109_v46 }
 0x5a7   : > { %v4768_v26 = vpop.f32.mrf.mxu0 }
 0x5a8   : > { %v5180_v28 = vmul.f32 %v8480_v12, %v5124_v39 }
 0x5a9   : > { %v6286_v0 = vpop.f32.mrf.mxu0 }
 0x5c6   : > { %v5087_v62 = vpop.f32.mrf.mxu1 }
 0x5c7   : > { %v5116_v34 = vadd.f32 %v8478_v29, %v5087_v62 }
 0x5c8   : > { %v4857_v3 = vpop.f32.mrf.mxu0  ;;  %v6327_v14 = vpop.f32.mrf.mxu1 }
 0x5c9   : > { %v5131_v58 = vadd.f32 %v8485_v48, %v5116_v34  ;;  %v5111_v37 = vadd.f32 %v5103_v21, %v4857_v3 }
 0x5ca   : > { %v6297_v63 = vpop.f32.mrf.mxu0  ;;  %v5090_v54 = vpop.f32.mrf.mxu1 }
 0x5cb   : > { %v5187_v50 = vmul.f32 %v5178_v32, %v5131_v58  ;;  %v5126_v7 = vadd.f32 %v8485_v48, %v5111_v37 }
 0x5cc   : > { %v4860_v5 = vpop.f32.mrf.mxu0  ;;  %v6328_v29 = vpop.f32.mrf.mxu1 }
 0x5cd   : > { %v5236_v23 = vcombine.low %v5185_v18, %v5187_v50  ;;  %v5237_v42 = vcombine.high %v5185_v18, %v5187_v50  ;;  %v5182_v44 = vmul.f32 %v5153_v47, %v5126_v7 }
 0x5ce   : > { %v6298_v53 = vpop.f32.mrf.mxu0 }
 0x5cf   : > { %v5188_v11 = vcombine.low %v5180_v28, %v5182_v44  ;;  %v5189_v40 = vcombine.high %v5180_v28, %v5182_v44  ;;  %v5244_v30 = vrot.slane %v5236_v23, %v5195_v10  ;;  %v5251_v59 = vrot.slane %v5237_v42, %v5195_v10 }
 0x5d0   : > { %v4949_v38 = vpop.f32.mrf.mxu0 }
 0x5d1   : > { %v5196_v61 = vrot.slane %v5188_v11, %v5195_v10  ;;  %v5203_v6 = vrot.slane %v5189_v40, %v5195_v10  ;;  %v5113_v35 = vadd.f32 %v5105_v13, %v4949_v38 }
 0x5d2   : > { %v6309_v52 = vpop.f32.mrf.mxu0 }
 0x5d3   : > { %v5252_v51 = vcombine.low %v5196_v61, %v5212_v20  ;;  %v5253_v12 = vcombine.high %v5196_v61, %v5212_v20  ;;  %v5268_v21 = vcombine.low %v5203_v6, %v5219_v9  ;;  %v5269_v43 = vcombine.high %v5203_v6, %v5219_v9 }
 0x5d4   : > { %v4952_v19 = vpop.f32.mrf.mxu0  ;;  %v5128_v31 = vadd.f32 %v8485_v48, %v5113_v35 }
 0x5d5   : > { %v5276_v17 = vrot.slane %v5268_v21, %v5259_v16  ;;  %v5283_v3 = vrot.slane %v5269_v43, %v5259_v16  ;;  %v5267_v14 = vrot.slane %v5253_v12, %v5259_v16 }
 0x5d6   : > { %v6310_v45 = vpop.f32.mrf.mxu0  ;;  %v5184_v24 = vmul.f32 %v5163_v27, %v5128_v31 }
 0x5d8   : > { %v5041_v22 = vpop.f32.mrf.mxu0 }
 0x5d9   : > { %v5115_v56 = vadd.f32 %v5107_v33, %v5041_v22 }
 0x5da   : > { %v6321_v8 = vpop.f32.mrf.mxu0 }
 0x5db   : > { %v5130_v60 = vadd.f32 %v8485_v48, %v5115_v56  ;;  %v5260_v48 = vrot.slane %v5252_v51, %v5259_v16 }
 0x5dc   : > { %v5044_v4 = vpop.f32.mrf.mxu0 }
 0x5dd   : > { %v5186_v49 = vmul.f32 %v5173_v41, %v5130_v60 }
 0x5de   : > { %v6322_v26 = vpop.f32.mrf.mxu0 }
 0x5df   : > { %v5220_v13 = vcombine.low %v5184_v24, %v5186_v49  ;;  %v5221_v0 = vcombine.high %v5184_v24, %v5186_v49 }
 0x5e1   : > { %v5228_v36 = vrot.slane %v5220_v13, %v5195_v10  ;;  %v5235_v57 = vrot.slane %v5221_v0, %v5195_v10 }
 0x5e3   : > { %v5284_v46 = vcombine.low %v5228_v36, %v5244_v30  ;;  %v5285_v62 = vcombine.high %v5228_v36, %v5244_v30  ;;  %v5300_v2 = vcombine.low %v5235_v57, %v5251_v59  ;;  %v5301_v34 = vcombine.high %v5235_v57, %v5251_v59 }
 0x5e5   : > { %v5308_v32 = vrot.slane %v5300_v2, %v5259_v16  ;;  %v5292_v39 = vrot.slane %v5284_v46, %v5259_v16  ;;  %v5315_v58 = vrot.slane %v5301_v34, %v5259_v16  ;;  %v5299_v37 = vrot.slane %v5285_v62, %v5259_v16 }
 0x5e7   : > { %v5321_v63 = vcombine.high %v5276_v17, %v5308_v32  ;;  %v5317_v54 = vcombine.high %v5260_v48, %v5292_v39  ;;  %v5322_v47 = vcombine.low %v5283_v3, %v5315_v58  ;;  %v5318_v18 = vcombine.low %v5267_v14, %v5299_v37 }
 0x5e8   : > { %v5323_v50 = vcombine.high %v5283_v3, %v5315_v58  ;;  %v5319_v7 = vcombine.high %v5267_v14, %v5299_v37  ;;  %v5320_v55 = vcombine.low %v5276_v17, %v5308_v32  ;;  %v5316_v10 = vcombine.low %v5260_v48, %v5292_v39 }
 0x5e9   : > { %5337 = vrot.lane.b32.xlu0 %v5321_v63, %s6859_s19  ;;  %5325 = vrot.lane.b32.xlu1 %v5317_v54, %s6859_s19 }
 0x5ed   : > { %5341 = vrot.lane.b32.xlu0 %v5322_v47, %s6858_s9  ;;  %5329 = vrot.lane.b32.xlu1 %v5318_v18, %s6858_s9 }
 0x5f1   : > { %5345 = vrot.lane.b32.xlu0 %v5323_v50, %s6857_s18  ;;  %5333 = vrot.lane.b32.xlu1 %v5319_v7, %s6857_s18  ;;  %s6767_s18 = sshll.u32 %s6863_s25, 4  ;;  %s6768_s18 = int_to_ptr.vmem [resolvable:$false] %s6767_s18 }
 0x5f2   : > { %s6769_s9 = scalar_lea.vmem %s6768_s18, 512  ;;  %p6770_p13 = scmp.lt.s32.totalorder %s8533_s20, %s6768_s18 }
 0x5f3   : > { %p6771_p0 = scmp.lt.s32.totalorder %s6769_s9, %s6763_s29 }
 0x5f5   : > { %p6772_p2 = por %p6771_p0, %p6770_p13 }
 0x5f7   : > { %p6773_p3 = pnand %p6772_p2, %p6766_p4 }
 0x65b   : > { %v5338_v5 = vpop.permute.xlu0 %5337  ;;  %v5326_v29 = vpop.permute.xlu1 %5325 }
 0x65c   : > { %v5353_v42 = vsel %vm739_vm0, %v5320_v55, %v5338_v5  ;;  %v5348_v44 = vsel %vm739_vm0, %v5316_v10, %v5326_v29 }
 0x65f   : > { %v5342_v28 = vpop.permute.xlu0 %5341  ;;  %v5330_v23 = vpop.permute.xlu1 %5329 }
 0x660   : > { %v5354_v53 = vsel %vm5349_vm5, %v5353_v42, %v5342_v28  ;;  %v5350_v11 = vsel %vm5349_vm5, %v5348_v44, %v5330_v23 }
 0x663   : > { %v5346_v40 = vpop.permute.xlu0 %5345  ;;  %v5334_v38 = vpop.permute.xlu1 %5333 }
 0x664   : > { %v5355_v20 = vsel %vm5351_vm6, %v5354_v53, %v5346_v40  ;;  %v5352_v9 = vsel %vm5351_vm6, %v5350_v11, %v5334_v38 }
 0x665   : > { %5357 = vst [vmem:[%s658_s0 + $0x8] sm:$0xff] %v5355_v20  ;;  %5356 = vst [vmem:[%s658_s0] sm:$0xff] %v5352_v9 }
 0x666   : > { %6776 = shalt.err (!%p6773_p3)
}
 0x667   : > { %s6777_s19 = scalar_lea.hbm %s8531_s10, 256  ;;  %s6781_s16 = scalar_lea.hbm %s8669_s4, 512 }
 0x668   : > { %p6778_p7 = scmp.ne.s32.totalorder %s8531_s10, %s6777_s19  ;;  %p6782_p6 = scmp.lt.s32.totalorder %s8531_s10, %s8669_s4 }
 0x669   : > { %p6783_p9 = scmp.lt.s32.totalorder %s6781_s16, %s6777_s19 }
 0x66a   : > { %p6779_p11 = pnand %p6778_p7, %p8670_p5 }
 0x66b   : > { %p6784_p10 = por %p6783_p9, %p6782_p6 }
 0x66c   : > { %p6780_p8 = pneg %p6779_p11 }
 0x66e   : > { %p6785_p1 = pnand %p6784_p10, %p6780_p8 }
 0x670   : > { %6788 = shalt.err (!%p6785_p1)
}
 0x671   : > { %6341 = dma.vmem_to_hbm [thread:$0]  (%p8670_p5), %s8533_s20, 256, %s8531_s10, %s5359_s13  }
 0x672 PF: > { %s8671_s0 = sld [smem:[#allocation18_spill]]  ;;  %p8674_p4 = scmp.ge.s32.totalorder %s6839_s23, 2 }
 0x673   : > { %s8672_s28 = sld [smem:[#allocation22_spill]] }
 0x678   : > { %s5385_s17 = sand.u32 1, %s8671_s0  }
 0x679   : > { %p8673_p12 = scmp.ne.s32.totalorder %s8672_s28, 0  ;;  %s5386_s27 = scalar_lea.sflag [#allocation5], %s5385_s17 }
 0x67b   : > { %p6361_p13 = pnand %p8674_p4, %p8673_p12 }
 0x67d   : > { %p6362_p0 = pneg %p6361_p13 }
 0x67f   : > { %6822 = dma.done.wait (%p6362_p0), %s5386_s27, 256  }
 0x680   : > { %6824 = vsyncadd (%p6362_p0), %s5386_s27, 4294967040  ;;  %s8675_s23 = sld [smem:[#allocation19_spill]]  ;;  %s8677_s20 = smov %s6831_s21 }
 0x681   : > { %s8676_s29 = sld [smem:[#allocation20_spill]]  ;;  %s8678_s21 = smov %s6835_s22 }
 0x686   : > { %p36_p2 = scmp.ge.s32.totalorder %s8675_s23, 4  }
 0x687   : > { %s8679_s22 = smov %s8676_s29 }
 0x688   :  { %38 = sbr.rel (!%p36_p2) target bundleno = 18 (0x12), region = 169 }
 0x68d   :  { %5391 = vsyncpa [#allocation4], 1 }
 0x68e   :  { %5393 = vsyncpa [#allocation4 + $0x1], 1 }
 0x68f   :  { %5394 = vsyncpa [#allocation7], 1 }
 0x690   :  { %5396 = vsyncpa [#allocation7 + $0x1], 1 }
 0x691   :  { %5397 = vsyncpa [#allocation10], 1 }
 0x692   :  { %5399 = vsyncpa [#allocation10 + $0x1], 1 }
 0x693   :  { %5400 = vsyncpa [#allocation5], 1 }
 0x694   :  { %5402 = vsyncpa [#allocation5 + $0x1], 1 }

</bundles_post_ra>
